<compile_context>
chip_gen: v7x
topology: tpu7x:2x2x1
jax: 0.10.0
libtpu: 0.0.40
codegen_flags: <defaults>
</compile_context>

<pallas_src>
import functools
import numpy as np

import jax
import jax.numpy as jnp
from jax.experimental import pallas as pl
from jax.experimental.pallas import tpu as pltpu


def _round_up(n, m):
    return ((n + m - 1) // m) * m


# ----------------------------------------------------------------------------
# Trace-time (numpy) constants: tap-validity masks & resample selection mats.
# (Hoisted out of the kernel per perf review -- JAX does not CSE iotas.)
# ----------------------------------------------------------------------------
_TAP_OFFSETS = [(dy, dx) for dy in (-1, 0, 1) for dx in (-1, 0, 1)]


def _build_tap_masks(H, W, s_pad):
    """(8, s_pad) validity masks for the 8 non-center 3x3 taps (f32 0/1)."""
    pos = np.arange(s_pad)
    row, col = pos // W, pos % W
    rows = []
    for dy, dx in _TAP_OFFSETS:
        if dy == 0 and dx == 0:
            continue
        valid = ((row + dy >= 0) & (row + dy < H) &
                 (col + dx >= 0) & (col + dx < W))
        rows.append(valid.astype(np.float32))
    return np.stack(rows, axis=0)


def _build_down_mat(H, W, s_hi_pad, s_lo_pad):
    """Selection matrix for stride-2 (even rows/cols) subsampling, (S_hi, S_lo)."""
    wl = W // 2
    sl = (H // 2) * wl
    q = np.arange(s_hi_pad)[:, None]
    p = np.arange(s_lo_pad)[None, :]
    tgt = (p // wl) * (2 * W) + (p % wl) * 2
    return ((q == tgt) & (p < sl)).astype(np.float32)


def _build_up_mat(H, W, s_hi_pad, s_lo_pad):
    """Selection matrix for nearest-neighbor 2x upsampling, (S_lo, S_hi).
    H, W are the HIGH-resolution dims."""
    wl = W // 2
    q = np.arange(s_lo_pad)[:, None]
    p = np.arange(s_hi_pad)[None, :]
    tgt = ((p // W) // 2) * wl + (p % W) // 2
    return ((q == tgt) & (p < H * W)).astype(np.float32)


# ----------------------------------------------------------------------------
# In-kernel building block: 3x3 "same" conv, channels-first, lane-flattened.
# ----------------------------------------------------------------------------
def _conv3x3_cf(x, w_bf16, bias, mask, *, W, act):
    """x: (Cin, S_pad) f32, w_bf16: (Cout, 9*Cin) bf16, bias: (Cout, 1) f32,
    mask: (8, S_pad) f32 precomputed tap-validity (row order = _TAP_OFFSETS
    minus the center tap). Taps are lane rotations (XLU); the nine shifted
    copies are contracted in ONE bf16 MXU matmul with f32 accumulation.
    Padded lane columns (>= H*W at low res) stay finite but are don't-care;
    every cross-position read of a valid output column is masked."""
    s_pad = x.shape[1]
    taps, mi = [], 0
    for dy, dx in _TAP_OFFSETS:
        shift = dy * W + dx
        if shift == 0:
            taps.append(x)
            continue
        rolled = pltpu.roll(x, shift=(-shift) % s_pad, axis=1)
        taps.append(rolled * mask[mi:mi + 1, :])          # mask in f32, then cast
        mi += 1
    patches = jnp.concatenate(taps, axis=0).astype(jnp.bfloat16)  # (9*Cin, S)
    acc = jnp.dot(w_bf16, patches, preferred_element_type=jnp.float32) + bias
    if act:
        acc = acc * jax.nn.sigmoid(acc)                   # SiLU
    return acc


# ----------------------------------------------------------------------------
# Fused sampler kernel: preprocess (step 0) + UNet + DDPM update, per (b, step)
# ----------------------------------------------------------------------------
def _momo_sample_kernel(*refs, H, W, n_down, n_steps, n_ctx, pad_extra,
                        bias_offsets, norm_in):
    f32 = jnp.float32
    n_conv = 3 * n_down + 2

    k = 0
    ctx_ref = refs[k]; k += 1                    # (1, n_ctx, S)
    lat0_ref = refs[k]; k += 1                   # (1, 4, S)
    noise_ref = refs[k]; k += 1                  # (1, 1, 4, S)
    bias_ref = refs[k]; k += 1                   # (1, C_pad, 1)
    coef_ref = refs[k]; k += 1                   # (n_steps, 4) SMEM
    w_refs = refs[k:k + n_conv]; k += n_conv     # bf16 (Cout, 9*Cin) each
    mask_refs = refs[k:k + n_down]; k += n_down  # f32 (8, S_lvl) each
    down_refs = refs[k:k + n_down - 1]; k += n_down - 1
    up_refs = refs[k:k + n_down - 1]; k += n_down - 1
    o_ref = refs[k]; k += 1                      # (1, 4, S)
    lat_vmem = refs[k]; k += 1                   # (4, S) resident latents
    ctx_vmem = refs[k]; k += 1                   # (in_ch_pad-4, S) resident ctx

    step = pl.program_id(1)

    # ---- step 0: per-sample preprocess (MoMo.preprocess) + latent init ------
    @pl.when(step == 0)
    def _():
        x = ctx_ref[0].astype(f32)                        # (n_ctx, S)
        if norm_in:
            n = x.size
            mean = jnp.sum(x) / n
            d = x - mean
            var = jnp.sum(d * d) / (n - 1)                # unbiased (torch.std)
            normed = d / (jnp.sqrt(var) + 1e-8)
        else:
            normed = x * 2.0 - 1.0
        if pad_extra:
            normed = jnp.concatenate(
                [normed, jnp.zeros((pad_extra, x.shape[1]), f32)], axis=0)
        ctx_vmem[...] = normed
        lat_vmem[...] = lat0_ref[0].astype(f32)

    # ---- time-conditioned UNet denoiser, entirely in VMEM -------------------
    bias_all = bias_ref[0]                                # (C_pad, 1) f32
    ws = [r[...] for r in w_refs]                         # bf16 weights
    masks = [r[...] for r in mask_refs]                   # f32 masks

    conv_i = [0]

    def conv(h, lvl, act):
        j = conv_i[0]
        conv_i[0] += 1
        b_j = bias_all[bias_offsets[j]:bias_offsets[j + 1], :]
        return _conv3x3_cf(h, ws[j], b_j, masks[lvl], W=W >> lvl, act=act)

    h = jnp.concatenate([lat_vmem[...], ctx_vmem[...]], axis=0)   # (Cin0, S)
    h = conv(h, 0, False)                                 # conv_in
    skips = []
    lvl = 0
    for i in range(n_down):
        h = conv(h, lvl, True)                            # block conv (+temb)
        skips.append(h)
        if i < n_down - 1:
            h = conv(h, lvl, False)                       # pre-downsample conv
            h = jnp.dot(h.astype(jnp.bfloat16), down_refs[lvl][...],
                        preferred_element_type=f32)       # fused stride-2 select
            lvl += 1
    h = conv(h, lvl, True)                                # mid block
    for i in range(n_down):
        h = jnp.concatenate([h, skips.pop()], axis=0)     # skip concat
        h = conv(h, lvl, True)                            # up conv (+temb)
        if i < n_down - 1:
            h = jnp.dot(h.astype(jnp.bfloat16), up_refs[lvl - 1][...],
                        preferred_element_type=f32)       # nearest 2x upsample
            lvl -= 1
    pred = conv(h, 0, False)                              # conv_out -> (4, S)

    # ---- fused DDPM step (prediction_type='sample', fixed_small variance) ---
    c1 = coef_ref[step, 0]
    c2 = coef_ref[step, 1]
    sigma = coef_ref[step, 2]
    clip = coef_ref[step, 3]
    x0 = jnp.clip(pred, -clip, clip)
    new_lat = c1 * x0 + c2 * lat_vmem[...] + sigma * noise_ref[0, 0]
    lat_vmem[...] = new_lat

    @pl.when(step == n_steps - 1)
    def _():
        o_ref[0] = new_lat.astype(o_ref.dtype)


def momo_sample(conv_ws_bf16, masks, downs, ups, ctx, lat0, noise, biases,
                coefs, *, H, W, n_down, n_ctx, in_ch_pad, bias_offsets,
                norm_in):
    """Single pallas_call running all n_steps of sampling for all B samples.

    ctx:    (B, n_ctx, S)       raw context (normalized in-kernel at step 0)
    lat0:   (B, 4, S)           initial latents (already * init_noise_sigma)
    noise:  (B, n_steps, 4, S)  per-step variance noise
    biases: (n_steps, C_pad, 1) packed per-conv bias + timestep projection
    coefs:  (n_steps, 4)        [c1, c2, sigma, clip] per step (SMEM)
    """
    B, _, S = ctx.shape
    n_steps = int(noise.shape[1])
    C_pad = int(biases.shape[1])
    pad_extra = in_ch_pad - 4 - n_ctx

    kern = functools.partial(
        _momo_sample_kernel, H=H, W=W, n_down=n_down, n_steps=n_steps,
        n_ctx=n_ctx, pad_extra=pad_extra, bias_offsets=tuple(bias_offsets),
        norm_in=norm_in)

    def const_spec(a):
        return pl.BlockSpec(a.shape, lambda b, s: (0,) * a.ndim)

    in_specs = [
        pl.BlockSpec((1, n_ctx, S), lambda b, s: (b, 0, 0)),      # ctx
        pl.BlockSpec((1, 4, S), lambda b, s: (b, 0, 0)),          # lat0
        pl.BlockSpec((1, 1, 4, S), lambda b, s: (b, s, 0, 0)),    # step noise
        pl.BlockSpec((1, C_pad, 1), lambda b, s: (s, 0, 0)),      # packed bias
        pl.BlockSpec(memory_space=pltpu.MemorySpace.SMEM),        # coefs
    ]
    in_specs += [const_spec(w) for w in conv_ws_bf16]
    in_specs += [const_spec(m) for m in masks]
    in_specs += [const_spec(m) for m in downs]
    in_specs += [const_spec(m) for m in ups]

    # VMEM hint (review: v5e scoped default is 16 MiB, v7x physical is 64 MiB).
    nbytes = lambda a: int(np.prod(a.shape)) * a.dtype.itemsize
    bytes_const = sum(nbytes(a) for a in (*conv_ws_bf16, *masks, *downs, *ups))
    max_k = max(int(w.shape[1]) for w in conv_ws_bf16)            # largest 9*Cin
    sum_cout = sum(int(w.shape[0]) for w in conv_ws_bf16)
    bytes_work = (max_k + 2 * in_ch_pad + 2 * sum_cout + 2 * (n_ctx + 8)) * S * 4
    vmem_limit = int(min(max(4 * (bytes_const + bytes_work), 16 * 2 ** 20),
                         48 * 2 ** 20))

    return pl.pallas_call(
        kern,
        out_shape=jax.ShapeDtypeStruct((B, 4, S), jnp.float32),
        grid_spec=pltpu.PrefetchScalarGridSpec(
            num_scalar_prefetch=0,
            grid=(B, n_steps),
            in_specs=in_specs,
            out_specs=pl.BlockSpec((1, 4, S), lambda b, s: (b, 0, 0)),
            scratch_shapes=[pltpu.VMEM((4, S), jnp.float32),            # latents
                            pltpu.VMEM((in_ch_pad - 4, S), jnp.float32)]),  # ctx
        compiler_params=pltpu.CompilerParams(
            dimension_semantics=("parallel", "arbitrary"),
            vmem_limit_bytes=vmem_limit),
    )(ctx, lat0, noise, biases, coefs, *conv_ws_bf16, *masks, *downs, *ups)


# ----------------------------------------------------------------------------
# UNet parameters / time embedding (stand-in for ConvexUpUNet2DModel).
# TODO(synk): ConvexUpUNet2DModel / DownBlock2D / UpBlock2D source is not part
# of this module -- a structurally equivalent time-conditioned UNet is used,
# with all conv / resample compute executed inside the single Pallas kernel.
# ----------------------------------------------------------------------------
def silu(x):
    return x * jax.nn.sigmoid(x)


def timestep_embedding(t, dim):
    half = dim // 2
    freqs = jnp.exp(-np.log(10000.0) * jnp.arange(half, dtype=jnp.float32) / half)
    args = t.astype(jnp.float32)[:, None] * freqs[None, :]
    return jnp.concatenate([jnp.sin(args), jnp.cos(args)], axis=-1)


def init_unet_params(key, in_ch, out_ch, dims, temb_dim):
    assert all(d % 8 == 0 for d in dims), "channel widths must be multiples of 8"
    n_down = len(dims)
    cin0 = _round_up(in_ch, 8)                   # pad input channels to 8-multiple

    specs = []                                   # (cin, cout, has_temb)
    ch = cin0
    specs.append((ch, dims[0], False)); ch = dims[0]            # conv_in
    for i, d in enumerate(dims):
        specs.append((ch, d, True)); ch = d                     # block conv
        if i < n_down - 1:
            specs.append((ch, ch, False))                       # downsample conv
    specs.append((ch, ch, True))                                # mid
    for i in reversed(range(n_down)):
        d = dims[i]
        specs.append((ch + d, d, True)); ch = d                 # up conv
    specs.append((ch, out_ch, False))                           # conv_out

    keys = iter(jax.random.split(key, 4 + 2 * len(specs)))

    def lin(k, a, b):
        return {"w": jax.random.normal(k, (a, b), jnp.float32) / np.sqrt(a),
                "b": jnp.zeros((b,), jnp.float32)}

    params = {"time1": lin(next(keys), dims[0], temb_dim),
              "time2": lin(next(keys), temb_dim, temb_dim),
              "convs": []}
    for cin, cout, has_temb in specs:
        conv = {"w": (jax.random.normal(next(keys), (cout, 9 * cin), jnp.float32)
                      / np.sqrt(9 * cin)),
                "b": jnp.zeros((cout,), jnp.float32),
                "temb": lin(next(keys), temb_dim, cout) if has_temb else None}
        params["convs"].append(conv)
    return params, cin0


def step_biases_packed(params, t_vec, c_pad, emb_dim):
    """Per-conv additive bias (conv bias + timestep-MLP projection) for ALL
    diffusion steps, packed along one channel axis -> (n_steps, C_pad, 1)."""
    emb = timestep_embedding(t_vec, emb_dim)                     # (n_steps, emb)
    temb = silu(emb @ params["time1"]["w"] + params["time1"]["b"])
    temb = temb @ params["time2"]["w"] + params["time2"]["b"]
    st = silu(temb)
    cols = []
    for conv in params["convs"]:
        b = conv["b"][None, :]                                   # (1, Cout)
        if conv["temb"] is not None:
            b = b + st @ conv["temb"]["w"] + conv["temb"]["b"]   # (n_steps, Cout)
        else:
            b = jnp.broadcast_to(b, (t_vec.shape[0], b.shape[1]))
        cols.append(b)
    packed = jnp.concatenate(cols, axis=1)                       # (n_steps, tot)
    pad = c_pad - packed.shape[1]
    if pad:
        packed = jnp.pad(packed, ((0, 0), (0, pad)))
    return packed[:, :, None]                                    # (n_steps, C_pad, 1)


# ----------------------------------------------------------------------------
# DDPM scheduler (linear betas, prediction_type='sample', fixed_small variance,
# timestep_spacing='trailing') -- scalar math on host, update fused in-kernel.
# ----------------------------------------------------------------------------
class DDPMSchedulerJax:
    def __init__(self, num_train_timesteps=1000, beta_start=1e-4, beta_end=0.02,
                 clip_sample=True, clip_sample_range=1.0):
        self.T = num_train_timesteps
        betas = np.linspace(beta_start, beta_end, num_train_timesteps,
                            dtype=np.float64)
        self.alphas_cumprod = np.cumprod(1.0 - betas)
        self.init_noise_sigma = 1.0
        self.clip_range = float(clip_sample_range) if clip_sample else 1e30
        self.num_inference_steps = None
        self.timesteps = None

    def set_timesteps(self, num_inference_steps):
        self.num_inference_steps = num_inference_steps
        step_ratio = self.T / num_inference_steps
        self.timesteps = (np.round(np.arange(self.T, 0, -step_ratio))
                          .astype(np.int64) - 1)
        return self.timesteps

    def step_coefs(self, t):
        prev_t = t - self.T // self.num_inference_steps
        ap_t = self.alphas_cumprod[t]
        ap_prev = self.alphas_cumprod[prev_t] if prev_t >= 0 else 1.0
        bp_t = 1.0 - ap_t
        bp_prev = 1.0 - ap_prev
        cur_alpha = ap_t / ap_prev
        cur_beta = 1.0 - cur_alpha
        c1 = (ap_prev ** 0.5) * cur_beta / bp_t          # pred_original coeff
        c2 = (cur_alpha ** 0.5) * bp_prev / bp_t         # current-sample coeff
        sigma = max(bp_prev / bp_t * cur_beta, 1e-20) ** 0.5 if t > 0 else 0.0
        return np.array([c1, c2, sigma, self.clip_range], dtype=np.float32)


# ----------------------------------------------------------------------------
# MoMo (inference path)
# ----------------------------------------------------------------------------
class MoMoPallas:
    def __init__(self, dims=(8, 16), T=1000, flow_scaler=128,
                 prediction_type="sample", clip_sample=True, max_rel_offset=1,
                 norm_in=True, key=None):
        assert prediction_type == "sample"
        self.dims = tuple(dims)
        self.flow_scaler = float(flow_scaler)
        self.norm_in = norm_in
        self.min_ds = 2 + len(dims)
        self.temb_dim = 4 * dims[0]
        self.ctx_ch = 6                       # 2 frames * 3 rgb
        self.scheduler = DDPMSchedulerJax(T, clip_sample=clip_sample,
                                          clip_sample_range=max_rel_offset)
        key = key if key is not None else jax.random.PRNGKey(42)
        # UNet input = 4 noisy-flow channels + context, zero-padded to 8-multiple.
        self.params, self.in_ch_pad = init_unet_params(
            key, in_ch=4 + self.ctx_ch, out_ch=4, dims=self.dims,
            temb_dim=self.temb_dim)
        couts = [int(c["w"].shape[0]) for c in self.params["convs"]]
        offs = [0]
        for c in couts:
            offs.append(offs[-1] + c)
        self.bias_offsets = tuple(offs)       # per-conv slice offsets in packed bias
        self.c_pad = _round_up(offs[-1], 8)
        # TODO(synk): training branch (add_noise + l1 loss) not implemented;
        # only the eval/sampling path of MoMo.forward is reproduced here.

    def forward(self, x, num_inference_steps=8, key=None):
        """x: (B, C=3, F=2, H, W) -- PyTorch 'b c f h w'. Returns (xt, flows NCHW)."""
        key = key if key is not None else jax.random.PRNGKey(1)
        B, C, F, H, W = x.shape
        assert F * C == self.ctx_ch
        ds = 2 ** self.min_ds
        # TODO(synk): bicubic+antialias resize of ensure_resolution_fit has no
        # clean Pallas equivalent; inputs must already be multiples of 2**min_ds.
        assert H % ds == 0 and W % ds == 0
        S = H * W
        n_down = len(self.dims)

        # ---- trace-time constants (hoisted out of the kernel) --------------
        levels = []
        hh, ww = H, W
        for _ in range(n_down):
            levels.append((hh, ww, _round_up(hh * ww, 128)))
            hh, ww = hh // 2, ww // 2
        masks = [jnp.asarray(_build_tap_masks(h_, w_, sp))
                 for (h_, w_, sp) in levels]
        downs = [jnp.asarray(_build_down_mat(levels[l][0], levels[l][1],
                                             levels[l][2], levels[l + 1][2])
                             ).astype(jnp.bfloat16)
                 for l in range(n_down - 1)]
        ups = [jnp.asarray(_build_up_mat(levels[l][0], levels[l][1],
                                         levels[l][2], levels[l + 1][2])
                           ).astype(jnp.bfloat16)
               for l in range(n_down - 1)]

        # ---- scheduler scalars (host) ---------------------------------------
        timesteps = self.scheduler.set_timesteps(num_inference_steps)
        coefs = jnp.asarray(np.stack([self.scheduler.step_coefs(int(t))
                                      for t in timesteps]).astype(np.float32))
        n_steps = len(timesteps)

        # ---- inputs ----------------------------------------------------------
        # rearrange 'b c f h w -> b (f c) h w', then flatten spatial (lane dim).
        x_ctx = jnp.transpose(x, (0, 2, 1, 3, 4)).reshape(B, F * C, S)
        x_ctx = x_ctx.astype(jnp.float32)

        k_lat, k_noise = jax.random.split(key)
        lat0 = (jax.random.normal(k_lat, (B, 4, S), jnp.float32)
                * self.scheduler.init_noise_sigma)
        noise = jax.random.normal(k_noise, (n_steps * B * 4 * S,),
                                  jnp.float32).reshape(B, n_steps, 4, S)

        bias_offsets = self.bias_offsets
        c_pad, in_ch_pad, n_ctx = self.c_pad, self.in_ch_pad, self.ctx_ch
        emb_dim, norm_in = self.dims[0], self.norm_in
        t_np = np.asarray(timesteps, np.float32)

        @jax.jit
        def run(params, ctx, lat0_, noise_, coefs_):
            biases = step_biases_packed(params, jnp.asarray(t_np), c_pad, emb_dim)
            conv_ws_bf16 = [c["w"].astype(jnp.bfloat16) for c in params["convs"]]
            return momo_sample(conv_ws_bf16, masks, downs, ups,
                               ctx, lat0_, noise_, biases, coefs_,
                               H=H, W=W, n_down=n_down, n_ctx=n_ctx,
                               in_ch_pad=in_ch_pad, bias_offsets=bias_offsets,
                               norm_in=norm_in)

        latents = run(self.params, x_ctx, lat0, noise, coefs)      # (B, 4, S)

        flows = (latents * self.flow_scaler).reshape(B, 4, H, W)   # denormalize
        # restore_orig_resolution: output size == original size here, so the
        # bicubic resample is the identity and scale_factor == [1, 1, 1, 1].
        scale = jnp.ones((1, 4, 1, 1), jnp.float32)
        flows = flows * scale

        # TODO(synk): synth_model is an external frame-synthesis network (passed
        # in, not defined in this module); stand-in = temporal mean of inputs.
        xt = jnp.mean(x, axis=2)
        return xt, flows


if __name__ == "__main__":
    root = jax.random.PRNGKey(0)
    kx, kp, ks = jax.random.split(root, 3)
    B, C, F, H, W = 2, 3, 2, 16, 16                 # two RGB frames, 16x16
    x = jax.random.uniform(kx, (B, C, F, H, W), jnp.float32)

    model = MoMoPallas(dims=(8, 16), key=kp)        # min_ds=4 -> H,W % 16 == 0
    xt, flows = model.forward(x, num_inference_steps=8, key=ks)
    jax.block_until_ready((xt, flows))
    assert xt.shape == (B, 3, H, W) and flows.shape == (B, 4, H, W)
    assert bool(jnp.all(jnp.isfinite(flows)))
    print("KERNEL_OK")
</pallas_src>

<mosaic_0001>
module attributes {stable_mosaic.version = 11 : i64} {
  func.func @_momo_sample_kernel(%arg0: i32, %arg1: i32, %arg2: memref<1x6x256xf32, #tpu.memory_space<vmem>>, %arg3: memref<1x4x256xf32, #tpu.memory_space<vmem>>, %arg4: memref<1x1x4x256xf32, #tpu.memory_space<vmem>>, %arg5: memref<1x88x1xf32, #tpu.memory_space<vmem>>, %arg6: memref<8x4xf32, #tpu.memory_space<smem>>, %arg7: memref<8x144xbf16, #tpu.memory_space<vmem>>, %arg8: memref<8x72xbf16, #tpu.memory_space<vmem>>, %arg9: memref<8x72xbf16, #tpu.memory_space<vmem>>, %arg10: memref<16x72xbf16, #tpu.memory_space<vmem>>, %arg11: memref<16x144xbf16, #tpu.memory_space<vmem>>, %arg12: memref<16x288xbf16, #tpu.memory_space<vmem>>, %arg13: memref<8x216xbf16, #tpu.memory_space<vmem>>, %arg14: memref<4x72xbf16, #tpu.memory_space<vmem>>, %arg15: memref<8x256xf32, #tpu.memory_space<vmem>>, %arg16: memref<8x128xf32, #tpu.memory_space<vmem>>, %arg17: memref<256x128xbf16, #tpu.memory_space<vmem>>, %arg18: memref<128x256xbf16, #tpu.memory_space<vmem>>, %arg19: memref<1x4x256xf32, #tpu.memory_space<vmem>>, %arg20: memref<4x256xf32, #tpu.memory_space<vmem>>, %arg21: memref<12x256xf32, #tpu.memory_space<vmem>>) attributes {dimension_semantics = [#tpu.dimension_semantics<parallel>, #tpu.dimension_semantics<arbitrary>], iteration_bounds = array<i64: 2, 8>, scalar_prefetch = 0 : i64, scratch_operands = 2 : i64, tpu.core_type = #tpu.core_type<tc>, window_params = [{transform_indices = @transform_0, window_bounds = array<i64: 1, 6, 256>}, {transform_indices = @transform_1, window_bounds = array<i64: 1, 4, 256>}, {transform_indices = @transform_2, window_bounds = array<i64: 1, 1, 4, 256>}, {transform_indices = @transform_3, window_bounds = array<i64: 1, 88, 1>}, {transform_indices = @transform_4, window_bounds = array<i64: 8, 4>}, {pipeline_mode = #tpu.pipeline_mode<synchronous>, transform_indices = @transform_5, window_bounds = array<i64: 8, 144>}, {pipeline_mode = #tpu.pipeline_mode<synchronous>, transform_indices = @transform_6, window_bounds = array<i64: 8, 72>}, {pipeline_mode = #tpu.pipeline_mode<synchronous>, transform_indices = @transform_7, window_bounds = array<i64: 8, 72>}, {pipeline_mode = #tpu.pipeline_mode<synchronous>, transform_indices = @transform_8, window_bounds = array<i64: 16, 72>}, {pipeline_mode = #tpu.pipeline_mode<synchronous>, transform_indices = @transform_9, window_bounds = array<i64: 16, 144>}, {pipeline_mode = #tpu.pipeline_mode<synchronous>, transform_indices = @transform_10, window_bounds = array<i64: 16, 288>}, {pipeline_mode = #tpu.pipeline_mode<synchronous>, transform_indices = @transform_11, window_bounds = array<i64: 8, 216>}, {pipeline_mode = #tpu.pipeline_mode<synchronous>, transform_indices = @transform_12, window_bounds = array<i64: 4, 72>}, {pipeline_mode = #tpu.pipeline_mode<synchronous>, transform_indices = @transform_13, window_bounds = array<i64: 8, 256>}, {pipeline_mode = #tpu.pipeline_mode<synchronous>, transform_indices = @transform_14, window_bounds = array<i64: 8, 128>}, {pipeline_mode = #tpu.pipeline_mode<synchronous>, transform_indices = @transform_15, window_bounds = array<i64: 256, 128>}, {pipeline_mode = #tpu.pipeline_mode<synchronous>, transform_indices = @transform_16, window_bounds = array<i64: 128, 256>}, {transform_indices = @transform_17, window_bounds = array<i64: 1, 4, 256>}]} {
    %c0_i32 = arith.constant 0 : i32
    %0 = arith.cmpi eq, %arg1, %c0_i32 : i32
    %1 = arith.extui %0 : i1 to i32
    %c0_i32_0 = arith.constant 0 : i32
    %2 = arith.cmpi ne, %1, %c0_i32_0 : i32
    scf.if %2 {
      %c0_106 = arith.constant 0 : index
      %c0_107 = arith.constant 0 : index
      %c0_108 = arith.constant 0 : index
      %388 = vector.load %arg2[%c0_106, %c0_107, %c0_108] : memref<1x6x256xf32, #tpu.memory_space<vmem>>, vector<1x6x256xf32>
      %389 = vector.shape_cast %388 : vector<1x6x256xf32> to vector<6x256xf32>
      %390 = vector.shape_cast %389 : vector<6x256xf32> to vector<1x6x256xf32>
      %cst_109 = arith.constant dense<0.000000e+00> : vector<1xf32>
      %391 = vector.multi_reduction <add>, %390, %cst_109 [1, 2] : vector<1x6x256xf32> to vector<1xf32>
      %392 = vector.shape_cast %391 : vector<1xf32> to vector<1x1x1xf32>
      %393 = vector.extract %392[0, 0, 0] : f32 from vector<1x1x1xf32>
      %cst_110 = arith.constant 1.536000e+03 : f32
      %394 = arith.divf %393, %cst_110 : f32
      %395 = vector.broadcast %394 : f32 to vector<6x256xf32>
      %396 = arith.subf %389, %395 : vector<6x256xf32>
      %397 = arith.mulf %396, %396 : vector<6x256xf32>
      %398 = vector.shape_cast %397 : vector<6x256xf32> to vector<1x6x256xf32>
      %cst_111 = arith.constant dense<0.000000e+00> : vector<1xf32>
      %399 = vector.multi_reduction <add>, %398, %cst_111 [1, 2] : vector<1x6x256xf32> to vector<1xf32>
      %400 = vector.shape_cast %399 : vector<1xf32> to vector<1x1x1xf32>
      %401 = vector.extract %400[0, 0, 0] : f32 from vector<1x1x1xf32>
      %cst_112 = arith.constant 1.535000e+03 : f32
      %402 = arith.divf %401, %cst_112 : f32
      %403 = math.sqrt %402 : f32
      %cst_113 = arith.constant 9.99999993E-9 : f32
      %404 = arith.addf %403, %cst_113 : f32
      %405 = vector.broadcast %404 : f32 to vector<6x256xf32>
      %406 = arith.divf %396, %405 : vector<6x256xf32>
      %cst_114 = arith.constant 0.000000e+00 : f32
      %407 = vector.broadcast %cst_114 : f32 to vector<6x256xf32>
      %408 = tpu.concatenate %406, %407 in 0 : vector<6x256xf32>, vector<6x256xf32> -> vector<12x256xf32>
      %c0_115 = arith.constant 0 : index
      %c0_116 = arith.constant 0 : index
      %409 = vector.load %arg21[%c0_115, %c0_116] : memref<12x256xf32, #tpu.memory_space<vmem>>, vector<12x256xf32>
      tpu.vector_store %arg21[%c0_115, %c0_116], %408 {strides = array<i32>} : memref<12x256xf32, #tpu.memory_space<vmem>>, vector<12x256xf32>,
      %c0_117 = arith.constant 0 : index
      %c0_118 = arith.constant 0 : index
      %c0_119 = arith.constant 0 : index
      %410 = vector.load %arg3[%c0_117, %c0_118, %c0_119] : memref<1x4x256xf32, #tpu.memory_space<vmem>>, vector<1x4x256xf32>
      %411 = vector.shape_cast %410 : vector<1x4x256xf32> to vector<4x256xf32>
      %c0_120 = arith.constant 0 : index
      %c0_121 = arith.constant 0 : index
      %412 = vector.load %arg20[%c0_120, %c0_121] : memref<4x256xf32, #tpu.memory_space<vmem>>, vector<4x256xf32>
      tpu.vector_store %arg20[%c0_120, %c0_121], %411 {strides = array<i32>} : memref<4x256xf32, #tpu.memory_space<vmem>>, vector<4x256xf32>,
    } else {
    }
    %c0 = arith.constant 0 : index
    %c0_1 = arith.constant 0 : index
    %c0_2 = arith.constant 0 : index
    %3 = vector.load %arg5[%c0, %c0_1, %c0_2] : memref<1x88x1xf32, #tpu.memory_space<vmem>>, vector<1x88x1xf32>
    %4 = vector.shape_cast %3 : vector<1x88x1xf32> to vector<88x1xf32>
    %c0_3 = arith.constant 0 : index
    %c0_4 = arith.constant 0 : index
    %5 = vector.load %arg7[%c0_3, %c0_4] : memref<8x144xbf16, #tpu.memory_space<vmem>>, vector<8x144xbf16>
    %c0_5 = arith.constant 0 : index
    %c0_6 = arith.constant 0 : index
    %6 = vector.load %arg8[%c0_5, %c0_6] : memref<8x72xbf16, #tpu.memory_space<vmem>>, vector<8x72xbf16>
    %c0_7 = arith.constant 0 : index
    %c0_8 = arith.constant 0 : index
    %7 = vector.load %arg9[%c0_7, %c0_8] : memref<8x72xbf16, #tpu.memory_space<vmem>>, vector<8x72xbf16>
    %c0_9 = arith.constant 0 : index
    %c0_10 = arith.constant 0 : index
    %8 = vector.load %arg10[%c0_9, %c0_10] : memref<16x72xbf16, #tpu.memory_space<vmem>>, vector<16x72xbf16>
    %c0_11 = arith.constant 0 : index
    %c0_12 = arith.constant 0 : index
    %9 = vector.load %arg11[%c0_11, %c0_12] : memref<16x144xbf16, #tpu.memory_space<vmem>>, vector<16x144xbf16>
    %c0_13 = arith.constant 0 : index
    %c0_14 = arith.constant 0 : index
    %10 = vector.load %arg12[%c0_13, %c0_14] : memref<16x288xbf16, #tpu.memory_space<vmem>>, vector<16x288xbf16>
    %c0_15 = arith.constant 0 : index
    %c0_16 = arith.constant 0 : index
    %11 = vector.load %arg13[%c0_15, %c0_16] : memref<8x216xbf16, #tpu.memory_space<vmem>>, vector<8x216xbf16>
    %c0_17 = arith.constant 0 : index
    %c0_18 = arith.constant 0 : index
    %12 = vector.load %arg14[%c0_17, %c0_18] : memref<4x72xbf16, #tpu.memory_space<vmem>>, vector<4x72xbf16>
    %c0_19 = arith.constant 0 : index
    %c0_20 = arith.constant 0 : index
    %13 = vector.load %arg15[%c0_19, %c0_20] : memref<8x256xf32, #tpu.memory_space<vmem>>, vector<8x256xf32>
    %c0_21 = arith.constant 0 : index
    %c0_22 = arith.constant 0 : index
    %14 = vector.load %arg16[%c0_21, %c0_22] : memref<8x128xf32, #tpu.memory_space<vmem>>, vector<8x128xf32>
    %c0_23 = arith.constant 0 : index
    %c0_24 = arith.constant 0 : index
    %15 = vector.load %arg20[%c0_23, %c0_24] : memref<4x256xf32, #tpu.memory_space<vmem>>, vector<4x256xf32>
    %c0_25 = arith.constant 0 : index
    %c0_26 = arith.constant 0 : index
    %16 = vector.load %arg21[%c0_25, %c0_26] : memref<12x256xf32, #tpu.memory_space<vmem>>, vector<12x256xf32>
    %17 = tpu.concatenate %15, %16 in 0 : vector<4x256xf32>, vector<12x256xf32> -> vector<16x256xf32>
    %18 = vector.extract_strided_slice %4 {offsets = [0, 0], sizes = [8, 1], strides = [1, 1]} : vector<88x1xf32> to vector<8x1xf32>
    %c17_i32 = arith.constant 17 : i32
    %19 = tpu.dynamic_rotate %17 by %c17_i32 dim 1 : vector<16x256xf32>, i32 -> vector<16x256xf32>
    %20 = vector.extract_strided_slice %13 {offsets = [0, 0], sizes = [1, 256], strides = [1, 1]} : vector<8x256xf32> to vector<1x256xf32>
    %21 = vector.broadcast %20 : vector<1x256xf32> to vector<16x256xf32>
    %22 = arith.mulf %19, %21 : vector<16x256xf32>
    %c16_i32 = arith.constant 16 : i32
    %23 = tpu.dynamic_rotate %17 by %c16_i32 dim 1 : vector<16x256xf32>, i32 -> vector<16x256xf32>
    %24 = vector.extract_strided_slice %13 {offsets = [1, 0], sizes = [1, 256], strides = [1, 1]} : vector<8x256xf32> to vector<1x256xf32>
    %25 = vector.broadcast %24 : vector<1x256xf32> to vector<16x256xf32>
    %26 = arith.mulf %23, %25 : vector<16x256xf32>
    %c15_i32 = arith.constant 15 : i32
    %27 = tpu.dynamic_rotate %17 by %c15_i32 dim 1 : vector<16x256xf32>, i32 -> vector<16x256xf32>
    %28 = vector.extract_strided_slice %13 {offsets = [2, 0], sizes = [1, 256], strides = [1, 1]} : vector<8x256xf32> to vector<1x256xf32>
    %29 = vector.broadcast %28 : vector<1x256xf32> to vector<16x256xf32>
    %30 = arith.mulf %27, %29 : vector<16x256xf32>
    %c1_i32 = arith.constant 1 : i32
    %31 = tpu.dynamic_rotate %17 by %c1_i32 dim 1 : vector<16x256xf32>, i32 -> vector<16x256xf32>
    %32 = vector.extract_strided_slice %13 {offsets = [3, 0], sizes = [1, 256], strides = [1, 1]} : vector<8x256xf32> to vector<1x256xf32>
    %33 = vector.broadcast %32 : vector<1x256xf32> to vector<16x256xf32>
    %34 = arith.mulf %31, %33 : vector<16x256xf32>
    %c255_i32 = arith.constant 255 : i32
    %35 = tpu.dynamic_rotate %17 by %c255_i32 dim 1 : vector<16x256xf32>, i32 -> vector<16x256xf32>
    %36 = vector.extract_strided_slice %13 {offsets = [4, 0], sizes = [1, 256], strides = [1, 1]} : vector<8x256xf32> to vector<1x256xf32>
    %37 = vector.broadcast %36 : vector<1x256xf32> to vector<16x256xf32>
    %38 = arith.mulf %35, %37 : vector<16x256xf32>
    %c241_i32 = arith.constant 241 : i32
    %39 = tpu.dynamic_rotate %17 by %c241_i32 dim 1 : vector<16x256xf32>, i32 -> vector<16x256xf32>
    %40 = vector.extract_strided_slice %13 {offsets = [5, 0], sizes = [1, 256], strides = [1, 1]} : vector<8x256xf32> to vector<1x256xf32>
    %41 = vector.broadcast %40 : vector<1x256xf32> to vector<16x256xf32>
    %42 = arith.mulf %39, %41 : vector<16x256xf32>
    %c240_i32 = arith.constant 240 : i32
    %43 = tpu.dynamic_rotate %17 by %c240_i32 dim 1 : vector<16x256xf32>, i32 -> vector<16x256xf32>
    %44 = vector.extract_strided_slice %13 {offsets = [6, 0], sizes = [1, 256], strides = [1, 1]} : vector<8x256xf32> to vector<1x256xf32>
    %45 = vector.broadcast %44 : vector<1x256xf32> to vector<16x256xf32>
    %46 = arith.mulf %43, %45 : vector<16x256xf32>
    %c239_i32 = arith.constant 239 : i32
    %47 = tpu.dynamic_rotate %17 by %c239_i32 dim 1 : vector<16x256xf32>, i32 -> vector<16x256xf32>
    %48 = vector.extract_strided_slice %13 {offsets = [7, 0], sizes = [1, 256], strides = [1, 1]} : vector<8x256xf32> to vector<1x256xf32>
    %49 = vector.broadcast %48 : vector<1x256xf32> to vector<16x256xf32>
    %50 = arith.mulf %47, %49 : vector<16x256xf32>
    %51 = tpu.concatenate %22, %26, %30, %34, %17, %38, %42, %46, %50 in 0 : vector<16x256xf32>, vector<16x256xf32>, vector<16x256xf32>, vector<16x256xf32>, vector<16x256xf32>, vector<16x256xf32>, vector<16x256xf32>, vector<16x256xf32>, vector<16x256xf32> -> vector<144x256xf32>
    %52 = arith.truncf %51 : vector<144x256xf32> to vector<144x256xbf16>
    %cst = arith.constant dense<0.000000e+00> : vector<8x256xf32>
    %53 = tpu.matmul %5, %52, %cst {dimension_numbers = #tpu.dot_dimension_numbers<[1], [0], [0], [1], [0, 0, 1, 1], [], []>} : vector<8x144xbf16>, vector<144x256xbf16>, vector<8x256xf32> -> vector<8x256xf32>
    %54 = vector.broadcast %18 : vector<8x1xf32> to vector<8x256xf32>
    %55 = arith.addf %53, %54 : vector<8x256xf32>
    %56 = vector.extract_strided_slice %4 {offsets = [8, 0], sizes = [8, 1], strides = [1, 1]} : vector<88x1xf32> to vector<8x1xf32>
    %c17_i32_27 = arith.constant 17 : i32
    %57 = tpu.dynamic_rotate %55 by %c17_i32_27 dim 1 : vector<8x256xf32>, i32 -> vector<8x256xf32>
    %58 = vector.extract_strided_slice %13 {offsets = [0, 0], sizes = [1, 256], strides = [1, 1]} : vector<8x256xf32> to vector<1x256xf32>
    %59 = vector.broadcast %58 : vector<1x256xf32> to vector<8x256xf32>
    %60 = arith.mulf %57, %59 : vector<8x256xf32>
    %c16_i32_28 = arith.constant 16 : i32
    %61 = tpu.dynamic_rotate %55 by %c16_i32_28 dim 1 : vector<8x256xf32>, i32 -> vector<8x256xf32>
    %62 = vector.extract_strided_slice %13 {offsets = [1, 0], sizes = [1, 256], strides = [1, 1]} : vector<8x256xf32> to vector<1x256xf32>
    %63 = vector.broadcast %62 : vector<1x256xf32> to vector<8x256xf32>
    %64 = arith.mulf %61, %63 : vector<8x256xf32>
    %c15_i32_29 = arith.constant 15 : i32
    %65 = tpu.dynamic_rotate %55 by %c15_i32_29 dim 1 : vector<8x256xf32>, i32 -> vector<8x256xf32>
    %66 = vector.extract_strided_slice %13 {offsets = [2, 0], sizes = [1, 256], strides = [1, 1]} : vector<8x256xf32> to vector<1x256xf32>
    %67 = vector.broadcast %66 : vector<1x256xf32> to vector<8x256xf32>
    %68 = arith.mulf %65, %67 : vector<8x256xf32>
    %c1_i32_30 = arith.constant 1 : i32
    %69 = tpu.dynamic_rotate %55 by %c1_i32_30 dim 1 : vector<8x256xf32>, i32 -> vector<8x256xf32>
    %70 = vector.extract_strided_slice %13 {offsets = [3, 0], sizes = [1, 256], strides = [1, 1]} : vector<8x256xf32> to vector<1x256xf32>
    %71 = vector.broadcast %70 : vector<1x256xf32> to vector<8x256xf32>
    %72 = arith.mulf %69, %71 : vector<8x256xf32>
    %c255_i32_31 = arith.constant 255 : i32
    %73 = tpu.dynamic_rotate %55 by %c255_i32_31 dim 1 : vector<8x256xf32>, i32 -> vector<8x256xf32>
    %74 = vector.extract_strided_slice %13 {offsets = [4, 0], sizes = [1, 256], strides = [1, 1]} : vector<8x256xf32> to vector<1x256xf32>
    %75 = vector.broadcast %74 : vector<1x256xf32> to vector<8x256xf32>
    %76 = arith.mulf %73, %75 : vector<8x256xf32>
    %c241_i32_32 = arith.constant 241 : i32
    %77 = tpu.dynamic_rotate %55 by %c241_i32_32 dim 1 : vector<8x256xf32>, i32 -> vector<8x256xf32>
    %78 = vector.extract_strided_slice %13 {offsets = [5, 0], sizes = [1, 256], strides = [1, 1]} : vector<8x256xf32> to vector<1x256xf32>
    %79 = vector.broadcast %78 : vector<1x256xf32> to vector<8x256xf32>
    %80 = arith.mulf %77, %79 : vector<8x256xf32>
    %c240_i32_33 = arith.constant 240 : i32
    %81 = tpu.dynamic_rotate %55 by %c240_i32_33 dim 1 : vector<8x256xf32>, i32 -> vector<8x256xf32>
    %82 = vector.extract_strided_slice %13 {offsets = [6, 0], sizes = [1, 256], strides = [1, 1]} : vector<8x256xf32> to vector<1x256xf32>
    %83 = vector.broadcast %82 : vector<1x256xf32> to vector<8x256xf32>
    %84 = arith.mulf %81, %83 : vector<8x256xf32>
    %c239_i32_34 = arith.constant 239 : i32
    %85 = tpu.dynamic_rotate %55 by %c239_i32_34 dim 1 : vector<8x256xf32>, i32 -> vector<8x256xf32>
    %86 = vector.extract_strided_slice %13 {offsets = [7, 0], sizes = [1, 256], strides = [1, 1]} : vector<8x256xf32> to vector<1x256xf32>
    %87 = vector.broadcast %86 : vector<1x256xf32> to vector<8x256xf32>
    %88 = arith.mulf %85, %87 : vector<8x256xf32>
    %89 = tpu.concatenate %60, %64, %68, %72, %55, %76, %80, %84, %88 in 0 : vector<8x256xf32>, vector<8x256xf32>, vector<8x256xf32>, vector<8x256xf32>, vector<8x256xf32>, vector<8x256xf32>, vector<8x256xf32>, vector<8x256xf32>, vector<8x256xf32> -> vector<72x256xf32>
    %90 = arith.truncf %89 : vector<72x256xf32> to vector<72x256xbf16>
    %cst_35 = arith.constant dense<0.000000e+00> : vector<8x256xf32>
    %91 = tpu.matmul %6, %90, %cst_35 {dimension_numbers = #tpu.dot_dimension_numbers<[1], [0], [0], [1], [0, 0, 1, 1], [], []>} : vector<8x72xbf16>, vector<72x256xbf16>, vector<8x256xf32> -> vector<8x256xf32>
    %92 = vector.broadcast %56 : vector<8x1xf32> to vector<8x256xf32>
    %93 = arith.addf %91, %92 : vector<8x256xf32>
    %94 = arith.negf %93 : vector<8x256xf32>
    %95 = math.exp %94 : vector<8x256xf32>
    %cst_36 = arith.constant 1.000000e+00 : f32
    %96 = vector.broadcast %cst_36 : f32 to vector<8x256xf32>
    %97 = arith.addf %96, %95 : vector<8x256xf32>
    %98 = arith.divf %96, %97 : vector<8x256xf32>
    %99 = arith.mulf %93, %98 : vector<8x256xf32>
    %100 = vector.extract_strided_slice %4 {offsets = [16, 0], sizes = [8, 1], strides = [1, 1]} : vector<88x1xf32> to vector<8x1xf32>
    %c17_i32_37 = arith.constant 17 : i32
    %101 = tpu.dynamic_rotate %99 by %c17_i32_37 dim 1 : vector<8x256xf32>, i32 -> vector<8x256xf32>
    %102 = vector.extract_strided_slice %13 {offsets = [0, 0], sizes = [1, 256], strides = [1, 1]} : vector<8x256xf32> to vector<1x256xf32>
    %103 = vector.broadcast %102 : vector<1x256xf32> to vector<8x256xf32>
    %104 = arith.mulf %101, %103 : vector<8x256xf32>
    %c16_i32_38 = arith.constant 16 : i32
    %105 = tpu.dynamic_rotate %99 by %c16_i32_38 dim 1 : vector<8x256xf32>, i32 -> vector<8x256xf32>
    %106 = vector.extract_strided_slice %13 {offsets = [1, 0], sizes = [1, 256], strides = [1, 1]} : vector<8x256xf32> to vector<1x256xf32>
    %107 = vector.broadcast %106 : vector<1x256xf32> to vector<8x256xf32>
    %108 = arith.mulf %105, %107 : vector<8x256xf32>
    %c15_i32_39 = arith.constant 15 : i32
    %109 = tpu.dynamic_rotate %99 by %c15_i32_39 dim 1 : vector<8x256xf32>, i32 -> vector<8x256xf32>
    %110 = vector.extract_strided_slice %13 {offsets = [2, 0], sizes = [1, 256], strides = [1, 1]} : vector<8x256xf32> to vector<1x256xf32>
    %111 = vector.broadcast %110 : vector<1x256xf32> to vector<8x256xf32>
    %112 = arith.mulf %109, %111 : vector<8x256xf32>
    %c1_i32_40 = arith.constant 1 : i32
    %113 = tpu.dynamic_rotate %99 by %c1_i32_40 dim 1 : vector<8x256xf32>, i32 -> vector<8x256xf32>
    %114 = vector.extract_strided_slice %13 {offsets = [3, 0], sizes = [1, 256], strides = [1, 1]} : vector<8x256xf32> to vector<1x256xf32>
    %115 = vector.broadcast %114 : vector<1x256xf32> to vector<8x256xf32>
    %116 = arith.mulf %113, %115 : vector<8x256xf32>
    %c255_i32_41 = arith.constant 255 : i32
    %117 = tpu.dynamic_rotate %99 by %c255_i32_41 dim 1 : vector<8x256xf32>, i32 -> vector<8x256xf32>
    %118 = vector.extract_strided_slice %13 {offsets = [4, 0], sizes = [1, 256], strides = [1, 1]} : vector<8x256xf32> to vector<1x256xf32>
    %119 = vector.broadcast %118 : vector<1x256xf32> to vector<8x256xf32>
    %120 = arith.mulf %117, %119 : vector<8x256xf32>
    %c241_i32_42 = arith.constant 241 : i32
    %121 = tpu.dynamic_rotate %99 by %c241_i32_42 dim 1 : vector<8x256xf32>, i32 -> vector<8x256xf32>
    %122 = vector.extract_strided_slice %13 {offsets = [5, 0], sizes = [1, 256], strides = [1, 1]} : vector<8x256xf32> to vector<1x256xf32>
    %123 = vector.broadcast %122 : vector<1x256xf32> to vector<8x256xf32>
    %124 = arith.mulf %121, %123 : vector<8x256xf32>
    %c240_i32_43 = arith.constant 240 : i32
    %125 = tpu.dynamic_rotate %99 by %c240_i32_43 dim 1 : vector<8x256xf32>, i32 -> vector<8x256xf32>
    %126 = vector.extract_strided_slice %13 {offsets = [6, 0], sizes = [1, 256], strides = [1, 1]} : vector<8x256xf32> to vector<1x256xf32>
    %127 = vector.broadcast %126 : vector<1x256xf32> to vector<8x256xf32>
    %128 = arith.mulf %125, %127 : vector<8x256xf32>
    %c239_i32_44 = arith.constant 239 : i32
    %129 = tpu.dynamic_rotate %99 by %c239_i32_44 dim 1 : vector<8x256xf32>, i32 -> vector<8x256xf32>
    %130 = vector.extract_strided_slice %13 {offsets = [7, 0], sizes = [1, 256], strides = [1, 1]} : vector<8x256xf32> to vector<1x256xf32>
    %131 = vector.broadcast %130 : vector<1x256xf32> to vector<8x256xf32>
    %132 = arith.mulf %129, %131 : vector<8x256xf32>
    %133 = tpu.concatenate %104, %108, %112, %116, %99, %120, %124, %128, %132 in 0 : vector<8x256xf32>, vector<8x256xf32>, vector<8x256xf32>, vector<8x256xf32>, vector<8x256xf32>, vector<8x256xf32>, vector<8x256xf32>, vector<8x256xf32>, vector<8x256xf32> -> vector<72x256xf32>
    %134 = arith.truncf %133 : vector<72x256xf32> to vector<72x256xbf16>
    %cst_45 = arith.constant dense<0.000000e+00> : vector<8x256xf32>
    %135 = tpu.matmul %7, %134, %cst_45 {dimension_numbers = #tpu.dot_dimension_numbers<[1], [0], [0], [1], [0, 0, 1, 1], [], []>} : vector<8x72xbf16>, vector<72x256xbf16>, vector<8x256xf32> -> vector<8x256xf32>
    %136 = vector.broadcast %100 : vector<8x1xf32> to vector<8x256xf32>
    %137 = arith.addf %135, %136 : vector<8x256xf32>
    %138 = arith.truncf %137 : vector<8x256xf32> to vector<8x256xbf16>
    %c0_46 = arith.constant 0 : index
    %c0_47 = arith.constant 0 : index
    %139 = vector.load %arg17[%c0_46, %c0_47] : memref<256x128xbf16, #tpu.memory_space<vmem>>, vector<256x128xbf16>
    %cst_48 = arith.constant dense<0.000000e+00> : vector<8x128xf32>
    %140 = tpu.matmul %138, %139, %cst_48 {dimension_numbers = #tpu.dot_dimension_numbers<[1], [0], [0], [1], [0, 0, 1, 1], [], []>} : vector<8x256xbf16>, vector<256x128xbf16>, vector<8x128xf32> -> vector<8x128xf32>
    %141 = vector.extract_strided_slice %4 {offsets = [24, 0], sizes = [16, 1], strides = [1, 1]} : vector<88x1xf32> to vector<16x1xf32>
    %c9_i32 = arith.constant 9 : i32
    %142 = tpu.dynamic_rotate %140 by %c9_i32 dim 1 : vector<8x128xf32>, i32 -> vector<8x128xf32>
    %143 = vector.extract_strided_slice %14 {offsets = [0, 0], sizes = [1, 128], strides = [1, 1]} : vector<8x128xf32> to vector<1x128xf32>
    %144 = vector.broadcast %143 : vector<1x128xf32> to vector<8x128xf32>
    %145 = arith.mulf %142, %144 : vector<8x128xf32>
    %c8_i32 = arith.constant 8 : i32
    %146 = tpu.dynamic_rotate %140 by %c8_i32 dim 1 : vector<8x128xf32>, i32 -> vector<8x128xf32>
    %147 = vector.extract_strided_slice %14 {offsets = [1, 0], sizes = [1, 128], strides = [1, 1]} : vector<8x128xf32> to vector<1x128xf32>
    %148 = vector.broadcast %147 : vector<1x128xf32> to vector<8x128xf32>
    %149 = arith.mulf %146, %148 : vector<8x128xf32>
    %c7_i32 = arith.constant 7 : i32
    %150 = tpu.dynamic_rotate %140 by %c7_i32 dim 1 : vector<8x128xf32>, i32 -> vector<8x128xf32>
    %151 = vector.extract_strided_slice %14 {offsets = [2, 0], sizes = [1, 128], strides = [1, 1]} : vector<8x128xf32> to vector<1x128xf32>
    %152 = vector.broadcast %151 : vector<1x128xf32> to vector<8x128xf32>
    %153 = arith.mulf %150, %152 : vector<8x128xf32>
    %c1_i32_49 = arith.constant 1 : i32
    %154 = tpu.dynamic_rotate %140 by %c1_i32_49 dim 1 : vector<8x128xf32>, i32 -> vector<8x128xf32>
    %155 = vector.extract_strided_slice %14 {offsets = [3, 0], sizes = [1, 128], strides = [1, 1]} : vector<8x128xf32> to vector<1x128xf32>
    %156 = vector.broadcast %155 : vector<1x128xf32> to vector<8x128xf32>
    %157 = arith.mulf %154, %156 : vector<8x128xf32>
    %c127_i32 = arith.constant 127 : i32
    %158 = tpu.dynamic_rotate %140 by %c127_i32 dim 1 : vector<8x128xf32>, i32 -> vector<8x128xf32>
    %159 = vector.extract_strided_slice %14 {offsets = [4, 0], sizes = [1, 128], strides = [1, 1]} : vector<8x128xf32> to vector<1x128xf32>
    %160 = vector.broadcast %159 : vector<1x128xf32> to vector<8x128xf32>
    %161 = arith.mulf %158, %160 : vector<8x128xf32>
    %c121_i32 = arith.constant 121 : i32
    %162 = tpu.dynamic_rotate %140 by %c121_i32 dim 1 : vector<8x128xf32>, i32 -> vector<8x128xf32>
    %163 = vector.extract_strided_slice %14 {offsets = [5, 0], sizes = [1, 128], strides = [1, 1]} : vector<8x128xf32> to vector<1x128xf32>
    %164 = vector.broadcast %163 : vector<1x128xf32> to vector<8x128xf32>
    %165 = arith.mulf %162, %164 : vector<8x128xf32>
    %c120_i32 = arith.constant 120 : i32
    %166 = tpu.dynamic_rotate %140 by %c120_i32 dim 1 : vector<8x128xf32>, i32 -> vector<8x128xf32>
    %167 = vector.extract_strided_slice %14 {offsets = [6, 0], sizes = [1, 128], strides = [1, 1]} : vector<8x128xf32> to vector<1x128xf32>
    %168 = vector.broadcast %167 : vector<1x128xf32> to vector<8x128xf32>
    %169 = arith.mulf %166, %168 : vector<8x128xf32>
    %c119_i32 = arith.constant 119 : i32
    %170 = tpu.dynamic_rotate %140 by %c119_i32 dim 1 : vector<8x128xf32>, i32 -> vector<8x128xf32>
    %171 = vector.extract_strided_slice %14 {offsets = [7, 0], sizes = [1, 128], strides = [1, 1]} : vector<8x128xf32> to vector<1x128xf32>
    %172 = vector.broadcast %171 : vector<1x128xf32> to vector<8x128xf32>
    %173 = arith.mulf %170, %172 : vector<8x128xf32>
    %174 = tpu.concatenate %145, %149, %153, %157, %140, %161, %165, %169, %173 in 0 : vector<8x128xf32>, vector<8x128xf32>, vector<8x128xf32>, vector<8x128xf32>, vector<8x128xf32>, vector<8x128xf32>, vector<8x128xf32>, vector<8x128xf32>, vector<8x128xf32> -> vector<72x128xf32>
    %175 = arith.truncf %174 : vector<72x128xf32> to vector<72x128xbf16>
    %cst_50 = arith.constant dense<0.000000e+00> : vector<16x128xf32>
    %176 = tpu.matmul %8, %175, %cst_50 {dimension_numbers = #tpu.dot_dimension_numbers<[1], [0], [0], [1], [0, 0, 1, 1], [], []>} : vector<16x72xbf16>, vector<72x128xbf16>, vector<16x128xf32> -> vector<16x128xf32>
    %177 = vector.broadcast %141 : vector<16x1xf32> to vector<16x128xf32>
    %178 = arith.addf %176, %177 : vector<16x128xf32>
    %179 = arith.negf %178 : vector<16x128xf32>
    %180 = math.exp %179 : vector<16x128xf32>
    %cst_51 = arith.constant 1.000000e+00 : f32
    %181 = vector.broadcast %cst_51 : f32 to vector<16x128xf32>
    %182 = arith.addf %181, %180 : vector<16x128xf32>
    %183 = arith.divf %181, %182 : vector<16x128xf32>
    %184 = arith.mulf %178, %183 : vector<16x128xf32>
    %185 = vector.extract_strided_slice %4 {offsets = [40, 0], sizes = [16, 1], strides = [1, 1]} : vector<88x1xf32> to vector<16x1xf32>
    %c9_i32_52 = arith.constant 9 : i32
    %186 = tpu.dynamic_rotate %184 by %c9_i32_52 dim 1 : vector<16x128xf32>, i32 -> vector<16x128xf32>
    %187 = vector.extract_strided_slice %14 {offsets = [0, 0], sizes = [1, 128], strides = [1, 1]} : vector<8x128xf32> to vector<1x128xf32>
    %188 = vector.broadcast %187 : vector<1x128xf32> to vector<16x128xf32>
    %189 = arith.mulf %186, %188 : vector<16x128xf32>
    %c8_i32_53 = arith.constant 8 : i32
    %190 = tpu.dynamic_rotate %184 by %c8_i32_53 dim 1 : vector<16x128xf32>, i32 -> vector<16x128xf32>
    %191 = vector.extract_strided_slice %14 {offsets = [1, 0], sizes = [1, 128], strides = [1, 1]} : vector<8x128xf32> to vector<1x128xf32>
    %192 = vector.broadcast %191 : vector<1x128xf32> to vector<16x128xf32>
    %193 = arith.mulf %190, %192 : vector<16x128xf32>
    %c7_i32_54 = arith.constant 7 : i32
    %194 = tpu.dynamic_rotate %184 by %c7_i32_54 dim 1 : vector<16x128xf32>, i32 -> vector<16x128xf32>
    %195 = vector.extract_strided_slice %14 {offsets = [2, 0], sizes = [1, 128], strides = [1, 1]} : vector<8x128xf32> to vector<1x128xf32>
    %196 = vector.broadcast %195 : vector<1x128xf32> to vector<16x128xf32>
    %197 = arith.mulf %194, %196 : vector<16x128xf32>
    %c1_i32_55 = arith.constant 1 : i32
    %198 = tpu.dynamic_rotate %184 by %c1_i32_55 dim 1 : vector<16x128xf32>, i32 -> vector<16x128xf32>
    %199 = vector.extract_strided_slice %14 {offsets = [3, 0], sizes = [1, 128], strides = [1, 1]} : vector<8x128xf32> to vector<1x128xf32>
    %200 = vector.broadcast %199 : vector<1x128xf32> to vector<16x128xf32>
    %201 = arith.mulf %198, %200 : vector<16x128xf32>
    %c127_i32_56 = arith.constant 127 : i32
    %202 = tpu.dynamic_rotate %184 by %c127_i32_56 dim 1 : vector<16x128xf32>, i32 -> vector<16x128xf32>
    %203 = vector.extract_strided_slice %14 {offsets = [4, 0], sizes = [1, 128], strides = [1, 1]} : vector<8x128xf32> to vector<1x128xf32>
    %204 = vector.broadcast %203 : vector<1x128xf32> to vector<16x128xf32>
    %205 = arith.mulf %202, %204 : vector<16x128xf32>
    %c121_i32_57 = arith.constant 121 : i32
    %206 = tpu.dynamic_rotate %184 by %c121_i32_57 dim 1 : vector<16x128xf32>, i32 -> vector<16x128xf32>
    %207 = vector.extract_strided_slice %14 {offsets = [5, 0], sizes = [1, 128], strides = [1, 1]} : vector<8x128xf32> to vector<1x128xf32>
    %208 = vector.broadcast %207 : vector<1x128xf32> to vector<16x128xf32>
    %209 = arith.mulf %206, %208 : vector<16x128xf32>
    %c120_i32_58 = arith.constant 120 : i32
    %210 = tpu.dynamic_rotate %184 by %c120_i32_58 dim 1 : vector<16x128xf32>, i32 -> vector<16x128xf32>
    %211 = vector.extract_strided_slice %14 {offsets = [6, 0], sizes = [1, 128], strides = [1, 1]} : vector<8x128xf32> to vector<1x128xf32>
    %212 = vector.broadcast %211 : vector<1x128xf32> to vector<16x128xf32>
    %213 = arith.mulf %210, %212 : vector<16x128xf32>
    %c119_i32_59 = arith.constant 119 : i32
    %214 = tpu.dynamic_rotate %184 by %c119_i32_59 dim 1 : vector<16x128xf32>, i32 -> vector<16x128xf32>
    %215 = vector.extract_strided_slice %14 {offsets = [7, 0], sizes = [1, 128], strides = [1, 1]} : vector<8x128xf32> to vector<1x128xf32>
    %216 = vector.broadcast %215 : vector<1x128xf32> to vector<16x128xf32>
    %217 = arith.mulf %214, %216 : vector<16x128xf32>
    %218 = tpu.concatenate %189, %193, %197, %201, %184, %205, %209, %213, %217 in 0 : vector<16x128xf32>, vector<16x128xf32>, vector<16x128xf32>, vector<16x128xf32>, vector<16x128xf32>, vector<16x128xf32>, vector<16x128xf32>, vector<16x128xf32>, vector<16x128xf32> -> vector<144x128xf32>
    %219 = arith.truncf %218 : vector<144x128xf32> to vector<144x128xbf16>
    %cst_60 = arith.constant dense<0.000000e+00> : vector<16x128xf32>
    %220 = tpu.matmul %9, %219, %cst_60 {dimension_numbers = #tpu.dot_dimension_numbers<[1], [0], [0], [1], [0, 0, 1, 1], [], []>} : vector<16x144xbf16>, vector<144x128xbf16>, vector<16x128xf32> -> vector<16x128xf32>
    %221 = vector.broadcast %185 : vector<16x1xf32> to vector<16x128xf32>
    %222 = arith.addf %220, %221 : vector<16x128xf32>
    %223 = arith.negf %222 : vector<16x128xf32>
    %224 = math.exp %223 : vector<16x128xf32>
    %cst_61 = arith.constant 1.000000e+00 : f32
    %225 = vector.broadcast %cst_61 : f32 to vector<16x128xf32>
    %226 = arith.addf %225, %224 : vector<16x128xf32>
    %227 = arith.divf %225, %226 : vector<16x128xf32>
    %228 = arith.mulf %222, %227 : vector<16x128xf32>
    %229 = tpu.concatenate %228, %184 in 0 : vector<16x128xf32>, vector<16x128xf32> -> vector<32x128xf32>
    %230 = vector.extract_strided_slice %4 {offsets = [56, 0], sizes = [16, 1], strides = [1, 1]} : vector<88x1xf32> to vector<16x1xf32>
    %c9_i32_62 = arith.constant 9 : i32
    %231 = tpu.dynamic_rotate %229 by %c9_i32_62 dim 1 : vector<32x128xf32>, i32 -> vector<32x128xf32>
    %232 = vector.extract_strided_slice %14 {offsets = [0, 0], sizes = [1, 128], strides = [1, 1]} : vector<8x128xf32> to vector<1x128xf32>
    %233 = vector.broadcast %232 : vector<1x128xf32> to vector<32x128xf32>
    %234 = arith.mulf %231, %233 : vector<32x128xf32>
    %c8_i32_63 = arith.constant 8 : i32
    %235 = tpu.dynamic_rotate %229 by %c8_i32_63 dim 1 : vector<32x128xf32>, i32 -> vector<32x128xf32>
    %236 = vector.extract_strided_slice %14 {offsets = [1, 0], sizes = [1, 128], strides = [1, 1]} : vector<8x128xf32> to vector<1x128xf32>
    %237 = vector.broadcast %236 : vector<1x128xf32> to vector<32x128xf32>
    %238 = arith.mulf %235, %237 : vector<32x128xf32>
    %c7_i32_64 = arith.constant 7 : i32
    %239 = tpu.dynamic_rotate %229 by %c7_i32_64 dim 1 : vector<32x128xf32>, i32 -> vector<32x128xf32>
    %240 = vector.extract_strided_slice %14 {offsets = [2, 0], sizes = [1, 128], strides = [1, 1]} : vector<8x128xf32> to vector<1x128xf32>
    %241 = vector.broadcast %240 : vector<1x128xf32> to vector<32x128xf32>
    %242 = arith.mulf %239, %241 : vector<32x128xf32>
    %c1_i32_65 = arith.constant 1 : i32
    %243 = tpu.dynamic_rotate %229 by %c1_i32_65 dim 1 : vector<32x128xf32>, i32 -> vector<32x128xf32>
    %244 = vector.extract_strided_slice %14 {offsets = [3, 0], sizes = [1, 128], strides = [1, 1]} : vector<8x128xf32> to vector<1x128xf32>
    %245 = vector.broadcast %244 : vector<1x128xf32> to vector<32x128xf32>
    %246 = arith.mulf %243, %245 : vector<32x128xf32>
    %c127_i32_66 = arith.constant 127 : i32
    %247 = tpu.dynamic_rotate %229 by %c127_i32_66 dim 1 : vector<32x128xf32>, i32 -> vector<32x128xf32>
    %248 = vector.extract_strided_slice %14 {offsets = [4, 0], sizes = [1, 128], strides = [1, 1]} : vector<8x128xf32> to vector<1x128xf32>
    %249 = vector.broadcast %248 : vector<1x128xf32> to vector<32x128xf32>
    %250 = arith.mulf %247, %249 : vector<32x128xf32>
    %c121_i32_67 = arith.constant 121 : i32
    %251 = tpu.dynamic_rotate %229 by %c121_i32_67 dim 1 : vector<32x128xf32>, i32 -> vector<32x128xf32>
    %252 = vector.extract_strided_slice %14 {offsets = [5, 0], sizes = [1, 128], strides = [1, 1]} : vector<8x128xf32> to vector<1x128xf32>
    %253 = vector.broadcast %252 : vector<1x128xf32> to vector<32x128xf32>
    %254 = arith.mulf %251, %253 : vector<32x128xf32>
    %c120_i32_68 = arith.constant 120 : i32
    %255 = tpu.dynamic_rotate %229 by %c120_i32_68 dim 1 : vector<32x128xf32>, i32 -> vector<32x128xf32>
    %256 = vector.extract_strided_slice %14 {offsets = [6, 0], sizes = [1, 128], strides = [1, 1]} : vector<8x128xf32> to vector<1x128xf32>
    %257 = vector.broadcast %256 : vector<1x128xf32> to vector<32x128xf32>
    %258 = arith.mulf %255, %257 : vector<32x128xf32>
    %c119_i32_69 = arith.constant 119 : i32
    %259 = tpu.dynamic_rotate %229 by %c119_i32_69 dim 1 : vector<32x128xf32>, i32 -> vector<32x128xf32>
    %260 = vector.extract_strided_slice %14 {offsets = [7, 0], sizes = [1, 128], strides = [1, 1]} : vector<8x128xf32> to vector<1x128xf32>
    %261 = vector.broadcast %260 : vector<1x128xf32> to vector<32x128xf32>
    %262 = arith.mulf %259, %261 : vector<32x128xf32>
    %263 = tpu.concatenate %234, %238, %242, %246, %229, %250, %254, %258, %262 in 0 : vector<32x128xf32>, vector<32x128xf32>, vector<32x128xf32>, vector<32x128xf32>, vector<32x128xf32>, vector<32x128xf32>, vector<32x128xf32>, vector<32x128xf32>, vector<32x128xf32> -> vector<288x128xf32>
    %264 = arith.truncf %263 : vector<288x128xf32> to vector<288x128xbf16>
    %cst_70 = arith.constant dense<0.000000e+00> : vector<16x128xf32>
    %265 = tpu.matmul %10, %264, %cst_70 {dimension_numbers = #tpu.dot_dimension_numbers<[1], [0], [0], [1], [0, 0, 1, 1], [], []>} : vector<16x288xbf16>, vector<288x128xbf16>, vector<16x128xf32> -> vector<16x128xf32>
    %266 = vector.broadcast %230 : vector<16x1xf32> to vector<16x128xf32>
    %267 = arith.addf %265, %266 : vector<16x128xf32>
    %268 = arith.negf %267 : vector<16x128xf32>
    %269 = math.exp %268 : vector<16x128xf32>
    %cst_71 = arith.constant 1.000000e+00 : f32
    %270 = vector.broadcast %cst_71 : f32 to vector<16x128xf32>
    %271 = arith.addf %270, %269 : vector<16x128xf32>
    %272 = arith.divf %270, %271 : vector<16x128xf32>
    %273 = arith.mulf %267, %272 : vector<16x128xf32>
    %274 = arith.truncf %273 : vector<16x128xf32> to vector<16x128xbf16>
    %c0_72 = arith.constant 0 : index
    %c0_73 = arith.constant 0 : index
    %275 = vector.load %arg18[%c0_72, %c0_73] : memref<128x256xbf16, #tpu.memory_space<vmem>>, vector<128x256xbf16>
    %cst_74 = arith.constant dense<0.000000e+00> : vector<16x256xf32>
    %276 = tpu.matmul %274, %275, %cst_74 {dimension_numbers = #tpu.dot_dimension_numbers<[1], [0], [0], [1], [0, 0, 1, 1], [], []>} : vector<16x128xbf16>, vector<128x256xbf16>, vector<16x256xf32> -> vector<16x256xf32>
    %277 = tpu.concatenate %276, %99 in 0 : vector<16x256xf32>, vector<8x256xf32> -> vector<24x256xf32>
    %278 = vector.extract_strided_slice %4 {offsets = [72, 0], sizes = [8, 1], strides = [1, 1]} : vector<88x1xf32> to vector<8x1xf32>
    %c17_i32_75 = arith.constant 17 : i32
    %279 = tpu.dynamic_rotate %277 by %c17_i32_75 dim 1 : vector<24x256xf32>, i32 -> vector<24x256xf32>
    %280 = vector.extract_strided_slice %13 {offsets = [0, 0], sizes = [1, 256], strides = [1, 1]} : vector<8x256xf32> to vector<1x256xf32>
    %281 = vector.broadcast %280 : vector<1x256xf32> to vector<24x256xf32>
    %282 = arith.mulf %279, %281 : vector<24x256xf32>
    %c16_i32_76 = arith.constant 16 : i32
    %283 = tpu.dynamic_rotate %277 by %c16_i32_76 dim 1 : vector<24x256xf32>, i32 -> vector<24x256xf32>
    %284 = vector.extract_strided_slice %13 {offsets = [1, 0], sizes = [1, 256], strides = [1, 1]} : vector<8x256xf32> to vector<1x256xf32>
    %285 = vector.broadcast %284 : vector<1x256xf32> to vector<24x256xf32>
    %286 = arith.mulf %283, %285 : vector<24x256xf32>
    %c15_i32_77 = arith.constant 15 : i32
    %287 = tpu.dynamic_rotate %277 by %c15_i32_77 dim 1 : vector<24x256xf32>, i32 -> vector<24x256xf32>
    %288 = vector.extract_strided_slice %13 {offsets = [2, 0], sizes = [1, 256], strides = [1, 1]} : vector<8x256xf32> to vector<1x256xf32>
    %289 = vector.broadcast %288 : vector<1x256xf32> to vector<24x256xf32>
    %290 = arith.mulf %287, %289 : vector<24x256xf32>
    %c1_i32_78 = arith.constant 1 : i32
    %291 = tpu.dynamic_rotate %277 by %c1_i32_78 dim 1 : vector<24x256xf32>, i32 -> vector<24x256xf32>
    %292 = vector.extract_strided_slice %13 {offsets = [3, 0], sizes = [1, 256], strides = [1, 1]} : vector<8x256xf32> to vector<1x256xf32>
    %293 = vector.broadcast %292 : vector<1x256xf32> to vector<24x256xf32>
    %294 = arith.mulf %291, %293 : vector<24x256xf32>
    %c255_i32_79 = arith.constant 255 : i32
    %295 = tpu.dynamic_rotate %277 by %c255_i32_79 dim 1 : vector<24x256xf32>, i32 -> vector<24x256xf32>
    %296 = vector.extract_strided_slice %13 {offsets = [4, 0], sizes = [1, 256], strides = [1, 1]} : vector<8x256xf32> to vector<1x256xf32>
    %297 = vector.broadcast %296 : vector<1x256xf32> to vector<24x256xf32>
    %298 = arith.mulf %295, %297 : vector<24x256xf32>
    %c241_i32_80 = arith.constant 241 : i32
    %299 = tpu.dynamic_rotate %277 by %c241_i32_80 dim 1 : vector<24x256xf32>, i32 -> vector<24x256xf32>
    %300 = vector.extract_strided_slice %13 {offsets = [5, 0], sizes = [1, 256], strides = [1, 1]} : vector<8x256xf32> to vector<1x256xf32>
    %301 = vector.broadcast %300 : vector<1x256xf32> to vector<24x256xf32>
    %302 = arith.mulf %299, %301 : vector<24x256xf32>
    %c240_i32_81 = arith.constant 240 : i32
    %303 = tpu.dynamic_rotate %277 by %c240_i32_81 dim 1 : vector<24x256xf32>, i32 -> vector<24x256xf32>
    %304 = vector.extract_strided_slice %13 {offsets = [6, 0], sizes = [1, 256], strides = [1, 1]} : vector<8x256xf32> to vector<1x256xf32>
    %305 = vector.broadcast %304 : vector<1x256xf32> to vector<24x256xf32>
    %306 = arith.mulf %303, %305 : vector<24x256xf32>
    %c239_i32_82 = arith.constant 239 : i32
    %307 = tpu.dynamic_rotate %277 by %c239_i32_82 dim 1 : vector<24x256xf32>, i32 -> vector<24x256xf32>
    %308 = vector.extract_strided_slice %13 {offsets = [7, 0], sizes = [1, 256], strides = [1, 1]} : vector<8x256xf32> to vector<1x256xf32>
    %309 = vector.broadcast %308 : vector<1x256xf32> to vector<24x256xf32>
    %310 = arith.mulf %307, %309 : vector<24x256xf32>
    %311 = tpu.concatenate %282, %286, %290, %294, %277, %298, %302, %306, %310 in 0 : vector<24x256xf32>, vector<24x256xf32>, vector<24x256xf32>, vector<24x256xf32>, vector<24x256xf32>, vector<24x256xf32>, vector<24x256xf32>, vector<24x256xf32>, vector<24x256xf32> -> vector<216x256xf32>
    %312 = arith.truncf %311 : vector<216x256xf32> to vector<216x256xbf16>
    %cst_83 = arith.constant dense<0.000000e+00> : vector<8x256xf32>
    %313 = tpu.matmul %11, %312, %cst_83 {dimension_numbers = #tpu.dot_dimension_numbers<[1], [0], [0], [1], [0, 0, 1, 1], [], []>} : vector<8x216xbf16>, vector<216x256xbf16>, vector<8x256xf32> -> vector<8x256xf32>
    %314 = vector.broadcast %278 : vector<8x1xf32> to vector<8x256xf32>
    %315 = arith.addf %313, %314 : vector<8x256xf32>
    %316 = arith.negf %315 : vector<8x256xf32>
    %317 = math.exp %316 : vector<8x256xf32>
    %cst_84 = arith.constant 1.000000e+00 : f32
    %318 = vector.broadcast %cst_84 : f32 to vector<8x256xf32>
    %319 = arith.addf %318, %317 : vector<8x256xf32>
    %320 = arith.divf %318, %319 : vector<8x256xf32>
    %321 = arith.mulf %315, %320 : vector<8x256xf32>
    %322 = vector.extract_strided_slice %4 {offsets = [80, 0], sizes = [4, 1], strides = [1, 1]} : vector<88x1xf32> to vector<4x1xf32>
    %c17_i32_85 = arith.constant 17 : i32
    %323 = tpu.dynamic_rotate %321 by %c17_i32_85 dim 1 : vector<8x256xf32>, i32 -> vector<8x256xf32>
    %324 = vector.extract_strided_slice %13 {offsets = [0, 0], sizes = [1, 256], strides = [1, 1]} : vector<8x256xf32> to vector<1x256xf32>
    %325 = vector.broadcast %324 : vector<1x256xf32> to vector<8x256xf32>
    %326 = arith.mulf %323, %325 : vector<8x256xf32>
    %c16_i32_86 = arith.constant 16 : i32
    %327 = tpu.dynamic_rotate %321 by %c16_i32_86 dim 1 : vector<8x256xf32>, i32 -> vector<8x256xf32>
    %328 = vector.extract_strided_slice %13 {offsets = [1, 0], sizes = [1, 256], strides = [1, 1]} : vector<8x256xf32> to vector<1x256xf32>
    %329 = vector.broadcast %328 : vector<1x256xf32> to vector<8x256xf32>
    %330 = arith.mulf %327, %329 : vector<8x256xf32>
    %c15_i32_87 = arith.constant 15 : i32
    %331 = tpu.dynamic_rotate %321 by %c15_i32_87 dim 1 : vector<8x256xf32>, i32 -> vector<8x256xf32>
    %332 = vector.extract_strided_slice %13 {offsets = [2, 0], sizes = [1, 256], strides = [1, 1]} : vector<8x256xf32> to vector<1x256xf32>
    %333 = vector.broadcast %332 : vector<1x256xf32> to vector<8x256xf32>
    %334 = arith.mulf %331, %333 : vector<8x256xf32>
    %c1_i32_88 = arith.constant 1 : i32
    %335 = tpu.dynamic_rotate %321 by %c1_i32_88 dim 1 : vector<8x256xf32>, i32 -> vector<8x256xf32>
    %336 = vector.extract_strided_slice %13 {offsets = [3, 0], sizes = [1, 256], strides = [1, 1]} : vector<8x256xf32> to vector<1x256xf32>
    %337 = vector.broadcast %336 : vector<1x256xf32> to vector<8x256xf32>
    %338 = arith.mulf %335, %337 : vector<8x256xf32>
    %c255_i32_89 = arith.constant 255 : i32
    %339 = tpu.dynamic_rotate %321 by %c255_i32_89 dim 1 : vector<8x256xf32>, i32 -> vector<8x256xf32>
    %340 = vector.extract_strided_slice %13 {offsets = [4, 0], sizes = [1, 256], strides = [1, 1]} : vector<8x256xf32> to vector<1x256xf32>
    %341 = vector.broadcast %340 : vector<1x256xf32> to vector<8x256xf32>
    %342 = arith.mulf %339, %341 : vector<8x256xf32>
    %c241_i32_90 = arith.constant 241 : i32
    %343 = tpu.dynamic_rotate %321 by %c241_i32_90 dim 1 : vector<8x256xf32>, i32 -> vector<8x256xf32>
    %344 = vector.extract_strided_slice %13 {offsets = [5, 0], sizes = [1, 256], strides = [1, 1]} : vector<8x256xf32> to vector<1x256xf32>
    %345 = vector.broadcast %344 : vector<1x256xf32> to vector<8x256xf32>
    %346 = arith.mulf %343, %345 : vector<8x256xf32>
    %c240_i32_91 = arith.constant 240 : i32
    %347 = tpu.dynamic_rotate %321 by %c240_i32_91 dim 1 : vector<8x256xf32>, i32 -> vector<8x256xf32>
    %348 = vector.extract_strided_slice %13 {offsets = [6, 0], sizes = [1, 256], strides = [1, 1]} : vector<8x256xf32> to vector<1x256xf32>
    %349 = vector.broadcast %348 : vector<1x256xf32> to vector<8x256xf32>
    %350 = arith.mulf %347, %349 : vector<8x256xf32>
    %c239_i32_92 = arith.constant 239 : i32
    %351 = tpu.dynamic_rotate %321 by %c239_i32_92 dim 1 : vector<8x256xf32>, i32 -> vector<8x256xf32>
    %352 = vector.extract_strided_slice %13 {offsets = [7, 0], sizes = [1, 256], strides = [1, 1]} : vector<8x256xf32> to vector<1x256xf32>
    %353 = vector.broadcast %352 : vector<1x256xf32> to vector<8x256xf32>
    %354 = arith.mulf %351, %353 : vector<8x256xf32>
    %355 = tpu.concatenate %326, %330, %334, %338, %321, %342, %346, %350, %354 in 0 : vector<8x256xf32>, vector<8x256xf32>, vector<8x256xf32>, vector<8x256xf32>, vector<8x256xf32>, vector<8x256xf32>, vector<8x256xf32>, vector<8x256xf32>, vector<8x256xf32> -> vector<72x256xf32>
    %356 = arith.truncf %355 : vector<72x256xf32> to vector<72x256xbf16>
    %cst_93 = arith.constant dense<0.000000e+00> : vector<4x256xf32>
    %357 = tpu.matmul %12, %356, %cst_93 {dimension_numbers = #tpu.dot_dimension_numbers<[1], [0], [0], [1], [0, 0, 1, 1], [], []>} : vector<4x72xbf16>, vector<72x256xbf16>, vector<4x256xf32> -> vector<4x256xf32>
    %358 = vector.broadcast %322 : vector<4x1xf32> to vector<4x256xf32>
    %359 = arith.addf %357, %358 : vector<4x256xf32>
    %360 = arith.index_cast %arg1 : i32 to index
    %c0_94 = arith.constant 0 : index
    %361 = memref.load %arg6[%360, %c0_94] : memref<8x4xf32, #tpu.memory_space<smem>>
    %362 = arith.index_cast %arg1 : i32 to index
    %c1 = arith.constant 1 : index
    %363 = memref.load %arg6[%362, %c1] : memref<8x4xf32, #tpu.memory_space<smem>>
    %364 = arith.index_cast %arg1 : i32 to index
    %c2 = arith.constant 2 : index
    %365 = memref.load %arg6[%364, %c2] : memref<8x4xf32, #tpu.memory_space<smem>>
    %366 = arith.index_cast %arg1 : i32 to index
    %c3 = arith.constant 3 : index
    %367 = memref.load %arg6[%366, %c3] : memref<8x4xf32, #tpu.memory_space<smem>>
    %cst_95 = arith.constant 0.000000e+00 : f32
    %368 = arith.subf %cst_95, %367 : f32
    %369 = vector.broadcast %368 : f32 to vector<4x256xf32>
    %370 = arith.maximumf %369, %359 : vector<4x256xf32>
    %371 = vector.broadcast %367 : f32 to vector<4x256xf32>
    %372 = arith.minimumf %371, %370 : vector<4x256xf32>
    %373 = vector.broadcast %361 : f32 to vector<4x256xf32>
    %374 = arith.mulf %373, %372 : vector<4x256xf32>
    %c0_96 = arith.constant 0 : index
    %c0_97 = arith.constant 0 : index
    %375 = vector.load %arg20[%c0_96, %c0_97] : memref<4x256xf32, #tpu.memory_space<vmem>>, vector<4x256xf32>
    %376 = vector.broadcast %363 : f32 to vector<4x256xf32>
    %377 = arith.mulf %376, %375 : vector<4x256xf32>
    %378 = arith.addf %374, %377 : vector<4x256xf32>
    %c0_98 = arith.constant 0 : index
    %c0_99 = arith.constant 0 : index
    %c0_100 = arith.constant 0 : index
    %c0_101 = arith.constant 0 : index
    %379 = vector.load %arg4[%c0_98, %c0_99, %c0_100, %c0_101] : memref<1x1x4x256xf32, #tpu.memory_space<vmem>>, vector<1x1x4x256xf32>
    %380 = vector.shape_cast %379 : vector<1x1x4x256xf32> to vector<4x256xf32>
    %381 = vector.broadcast %365 : f32 to vector<4x256xf32>
    %382 = arith.mulf %381, %380 : vector<4x256xf32>
    %383 = arith.addf %378, %382 : vector<4x256xf32>
    %c0_102 = arith.constant 0 : index
    %c0_103 = arith.constant 0 : index
    %384 = vector.load %arg20[%c0_102, %c0_103] : memref<4x256xf32, #tpu.memory_space<vmem>>, vector<4x256xf32>
    tpu.vector_store %arg20[%c0_102, %c0_103], %383 {strides = array<i32>} : memref<4x256xf32, #tpu.memory_space<vmem>>, vector<4x256xf32>,
    %c7_i32_104 = arith.constant 7 : i32
    %385 = arith.cmpi eq, %arg1, %c7_i32_104 : i32
    %386 = arith.extui %385 : i1 to i32
    %c0_i32_105 = arith.constant 0 : i32
    %387 = arith.cmpi ne, %386, %c0_i32_105 : i32
    scf.if %387 {
      %c0_106 = arith.constant 0 : index
      %c0_107 = arith.constant 0 : index
      %c0_108 = arith.constant 0 : index
      %388 = vector.load %arg19[%c0_106, %c0_107, %c0_108] : memref<1x4x256xf32, #tpu.memory_space<vmem>>, vector<1x4x256xf32>
      %389 = vector.shape_cast %388 : vector<1x4x256xf32> to vector<4x256xf32>
      %390 = vector.shape_cast %383 : vector<4x256xf32> to vector<1x4x256xf32>
      tpu.vector_store %arg19[%c0_106, %c0_107, %c0_108], %390 {strides = array<i32>} : memref<1x4x256xf32, #tpu.memory_space<vmem>>, vector<1x4x256xf32>,
    } else {
    }
    return
  }
  func.func @transform_0(%arg0: i32, %arg1: i32) -> (i32, i32, i32) {
    %c0_i32 = arith.constant 0 : i32
    %c0_i32_0 = arith.constant 0 : i32
    %c0_i32_1 = arith.constant 0 : i32
    return %arg0, %c0_i32, %c0_i32_0 : i32, i32, i32
  }
  func.func @transform_1(%arg0: i32, %arg1: i32) -> (i32, i32, i32) {
    %c0_i32 = arith.constant 0 : i32
    %c0_i32_0 = arith.constant 0 : i32
    %c0_i32_1 = arith.constant 0 : i32
    return %arg0, %c0_i32, %c0_i32_0 : i32, i32, i32
  }
  func.func @transform_2(%arg0: i32, %arg1: i32) -> (i32, i32, i32, i32) {
    %c0_i32 = arith.constant 0 : i32
    %c0_i32_0 = arith.constant 0 : i32
    %c0_i32_1 = arith.constant 0 : i32
    return %arg0, %arg1, %c0_i32, %c0_i32_0 : i32, i32, i32, i32
  }
  func.func @transform_3(%arg0: i32, %arg1: i32) -> (i32, i32, i32) {
    %c0_i32 = arith.constant 0 : i32
    %c0_i32_0 = arith.constant 0 : i32
    %c0_i32_1 = arith.constant 0 : i32
    return %arg1, %c0_i32, %c0_i32_0 : i32, i32, i32
  }
  func.func @transform_4(%arg0: i32, %arg1: i32) -> (i32, i32) {
    %c0_i32 = arith.constant 0 : i32
    %c0_i32_0 = arith.constant 0 : i32
    %c0_i32_1 = arith.constant 0 : i32
    return %c0_i32, %c0_i32_0 : i32, i32
  }
  func.func @transform_5(%arg0: i32, %arg1: i32) -> (i32, i32) {
    %c0_i32 = arith.constant 0 : i32
    %c0_i32_0 = arith.constant 0 : i32
    %c0_i32_1 = arith.constant 0 : i32
    return %c0_i32, %c0_i32_0 : i32, i32
  }
  func.func @transform_6(%arg0: i32, %arg1: i32) -> (i32, i32) {
    %c0_i32 = arith.constant 0 : i32
    %c0_i32_0 = arith.constant 0 : i32
    %c0_i32_1 = arith.constant 0 : i32
    return %c0_i32, %c0_i32_0 : i32, i32
  }
  func.func @transform_7(%arg0: i32, %arg1: i32) -> (i32, i32) {
    %c0_i32 = arith.constant 0 : i32
    %c0_i32_0 = arith.constant 0 : i32
    %c0_i32_1 = arith.constant 0 : i32
    return %c0_i32, %c0_i32_0 : i32, i32
  }
  func.func @transform_8(%arg0: i32, %arg1: i32) -> (i32, i32) {
    %c0_i32 = arith.constant 0 : i32
    %c0_i32_0 = arith.constant 0 : i32
    %c0_i32_1 = arith.constant 0 : i32
    return %c0_i32, %c0_i32_0 : i32, i32
  }
  func.func @transform_9(%arg0: i32, %arg1: i32) -> (i32, i32) {
    %c0_i32 = arith.constant 0 : i32
    %c0_i32_0 = arith.constant 0 : i32
    %c0_i32_1 = arith.constant 0 : i32
    return %c0_i32, %c0_i32_0 : i32, i32
  }
  func.func @transform_10(%arg0: i32, %arg1: i32) -> (i32, i32) {
    %c0_i32 = arith.constant 0 : i32
    %c0_i32_0 = arith.constant 0 : i32
    %c0_i32_1 = arith.constant 0 : i32
    return %c0_i32, %c0_i32_0 : i32, i32
  }
  func.func @transform_11(%arg0: i32, %arg1: i32) -> (i32, i32) {
    %c0_i32 = arith.constant 0 : i32
    %c0_i32_0 = arith.constant 0 : i32
    %c0_i32_1 = arith.constant 0 : i32
    return %c0_i32, %c0_i32_0 : i32, i32
  }
  func.func @transform_12(%arg0: i32, %arg1: i32) -> (i32, i32) {
    %c0_i32 = arith.constant 0 : i32
    %c0_i32_0 = arith.constant 0 : i32
    %c0_i32_1 = arith.constant 0 : i32
    return %c0_i32, %c0_i32_0 : i32, i32
  }
  func.func @transform_13(%arg0: i32, %arg1: i32) -> (i32, i32) {
    %c0_i32 = arith.constant 0 : i32
    %c0_i32_0 = arith.constant 0 : i32
    %c0_i32_1 = arith.constant 0 : i32
    return %c0_i32, %c0_i32_0 : i32, i32
  }
  func.func @transform_14(%arg0: i32, %arg1: i32) -> (i32, i32) {
    %c0_i32 = arith.constant 0 : i32
    %c0_i32_0 = arith.constant 0 : i32
    %c0_i32_1 = arith.constant 0 : i32
    return %c0_i32, %c0_i32_0 : i32, i32
  }
  func.func @transform_15(%arg0: i32, %arg1: i32) -> (i32, i32) {
    %c0_i32 = arith.constant 0 : i32
    %c0_i32_0 = arith.constant 0 : i32
    %c0_i32_1 = arith.constant 0 : i32
    return %c0_i32, %c0_i32_0 : i32, i32
  }
  func.func @transform_16(%arg0: i32, %arg1: i32) -> (i32, i32) {
    %c0_i32 = arith.constant 0 : i32
    %c0_i32_0 = arith.constant 0 : i32
    %c0_i32_1 = arith.constant 0 : i32
    return %c0_i32, %c0_i32_0 : i32, i32
  }
  func.func @transform_17(%arg0: i32, %arg1: i32) -> (i32, i32, i32) {
    %c0_i32 = arith.constant 0 : i32
    %c0_i32_0 = arith.constant 0 : i32
    %c0_i32_1 = arith.constant 0 : i32
    return %arg0, %c0_i32, %c0_i32_0 : i32, i32, i32
  }
}

</mosaic_0001>

<bundles_post_ra>
// kernel: run.1
= control target key start
LH: loop header
LB: loop body
LE: loop exit
PB: predicated region body
PF: predicated region fallthrough
CT: control target
= control target key end

     0   :  { %s4505_s0 = inlined_call_operand.vmem [shape: f32[2,6,256], index: 0, kind: input, shape index: {}]   ;;  %s4506_s1 = inlined_call_operand.vmem [shape: f32[2,4,256], index: 1, kind: input, shape index: {}]   ;;  %s4507_s2 = inlined_call_operand.vmem [shape: f32[2,8,4,256], index: 2, kind: input, shape index: {}]   ;;  %s4508_s3 = inlined_call_operand.vmem [shape: f32[8,88,1], index: 3, kind: input, shape index: {}]   ;;  %s4509_s4 = inlined_call_operand.vmem [shape: f32[8,4], index: 4, kind: input, shape index: {}]   ;;  %s4510_s5 = inlined_call_operand.vmem [shape: bf16[8,144], index: 5, kind: input, shape index: {}]   ;;  %s4511_s6 = inlined_call_operand.vmem [shape: bf16[8,72], index: 6, kind: input, shape index: {}]   ;;  %s4512_s7 = inlined_call_operand.vmem [shape: bf16[8,72], index: 7, kind: input, shape index: {}]   ;;  %s4513_s8 = inlined_call_operand.vmem [shape: bf16[16,72], index: 8, kind: input, shape index: {}]   ;;  %s4514_s9 = inlined_call_operand.vmem [shape: bf16[16,144], index: 9, kind: input, shape index: {}]   ;;  %s4515_s10 = inlined_call_operand.vmem [shape: bf16[16,288], index: 10, kind: input, shape index: {}]   ;;  %s4516_s11 = inlined_call_operand.vmem [shape: bf16[8,216], index: 11, kind: input, shape index: {}]   ;;  %s4517_s12 = inlined_call_operand.vmem [shape: bf16[4,72], index: 12, kind: input, shape index: {}]   ;;  %s4518_s13 = inlined_call_operand.vmem [shape: f32[8,256], index: 13, kind: input, shape index: {}]   ;;  %s4519_s14 = inlined_call_operand.vmem [shape: f32[8,128], index: 14, kind: input, shape index: {}]   ;;  %s4520_s15 = inlined_call_operand.vmem [shape: bf16[256,128], index: 15, kind: input, shape index: {}]   ;;  %s4521_s16 = inlined_call_operand.vmem [shape: bf16[128,256], index: 16, kind: input, shape index: {}]   ;;  %s4522_s17 = inlined_call_operand.hbm [shape: f32[2,4,256], index: 17, kind: output, shape index: {}]  }
   0x1   :  { %4557 = sst [smem:[#allocation28_spill]] %s4505_s0 }
   0x2   :  { %4558 = sst [smem:[#allocation29_spill]] %s4506_s1 }
   0x3   :  { %4559 = sst [smem:[#allocation30_spill]] %s4509_s4 }
   0x4   :  { %4560 = sst [smem:[#allocation31_spill]] %s4513_s8 }
   0x5   :  { %4561 = sst [smem:[#allocation32_spill]] %s4514_s9 }
   0x6   :  { %4562 = sst [smem:[#allocation33_spill]] %s4515_s10 }
   0x7   :  { %4563 = sst [smem:[#allocation34_spill]] %s4516_s11 }
   0x8   :  { %4564 = sst [smem:[#allocation35_spill]] %s4517_s12 }
   0x9   :  { %4565 = sst [smem:[#allocation36_spill]] %s4521_s16 }
   0xa   :  { %4566 = sst [smem:[#allocation37_spill]] %s4522_s17 }
   0xb   :  { %22 = vsyncpa [#allocation6], 0 }
   0xc   :  { %23 = vsyncpa [#allocation5], 0 }
   0xd   :  { %25 = vsyncpa [#allocation5 + $0x1], 0  ;;  %s3212_s24 = smov 0   ;;  %s3214_s25 = smov 0  }
   0xe   :  { %s3216_s26 = smov 0   ;;  %s3218_s27 = smov 0  }
   0xf   :  { %s3220_s28 = smov 0   ;;  %s3222_s29 = smov 0  }
  0x10   :  { %s3224_s0 = smov 0   ;;  %s3226_s30 = smov 0  }
  0x11 LB: > { %4567 = sst [smem:[#allocation10_spill]] %s3072_s24  ;;  %s2614_s18 = sadd.s32 4294967295, %s3100_s30   ;;  %s3100_s30 = sphi %s3226_s30, %s31_s30   ;;  %s3096_s0 = sphi %s3224_s0, %s4628_s0   ;;  %s3092_s29 = sphi %s3222_s29, %s4627_s29   ;;  %s3088_s28 = sphi %s3220_s28, %s4626_s28   ;;  %s3084_s27 = sphi %s3218_s27, %s4625_s27   ;;  %s3080_s26 = sphi %s3216_s26, %s4624_s26   ;;  %s3076_s25 = sphi %s3214_s25, %s4623_s25   ;;  %s3072_s24 = sphi %s3212_s24, %s4622_s24  }
  0x12   : > { %4568 = sst [smem:[#allocation11_spill]] %s3076_s25  ;;  %s2615_s19 = sadd.s32 4294967294, %s3100_s30  }
  0x13   : > { %4569 = sst [smem:[#allocation12_spill]] %s3080_s26  ;;  %s40_s1 = sadd.s32 1, %s3092_s29 }
  0x14   : > { %4570 = sst [smem:[#allocation13_spill]] %s3088_s28  ;;  %s43_s20 = sadd.s32 1, %s3096_s0 }
  0x15   : > { %4571 = sst [smem:[#allocation14_spill]] %s3092_s29  ;;  %p41_p0 = scmp.ge.s32.totalorder %s40_s1, 8 }
  0x16   : > { %4572 = sst [smem:[#allocation15_spill]] %s3096_s0  ;;  %s429_s21 = sadd.s32 1, %s3080_s26 }
  0x17   : > { %4573 = sst [smem:[#allocation16_spill]] %s3100_s30  ;;  %p439_p1 = scmp.ne.s32.totalorder %s3080_s26, %s3076_s25 }
  0x18   : > { %p440_p2 = scmp.eq.s32.totalorder %s2614_s18, 15  ;;  %s4630_s1 = smov (%p41_p0, %s40_s1), 0 }
  0x19   : > { %4574 = sst [smem:[#allocation17_spill]] %s4630_s1  ;;  %s4632_s20 = smov (!%p41_p0, %s43_s20), %s3096_s0 }
  0x1a   : > { %p3262_p3 = por %p440_p2, %p439_p1  ;;  %p445_p4 = scmp.ne.s32.totalorder %s3076_s25, %s3072_s24 }
  0x1b   : > { %p45_p5 = scmp.ge.s32.totalorder %s4632_s20, 2  ;;  %p446_p6 = scmp.eq.s32.totalorder %s2615_s19, 15 }
  0x1c   : > { %s4575_s22 = scalar_select %p3262_p3, 1, 0 }
  0x1d   : > { %p2616_p7 = scmp.ge.s32.totalorder %s3100_s30, 1  ;;  %p453_p8 = scmp.lt.s32.totalorder %s3100_s30, 17 }
  0x1e   : > { %4576 = sst [smem:[#allocation18_spill]] %s4575_s22  ;;  %s4634_s20 = smov (%p45_p5, %s4632_s20), 0 }
  0x1f   : > { %4577 = sst [smem:[#allocation19_spill]] %s4634_s20  ;;  %p3272_p9 = por %p446_p6, %p445_p4 }
  0x20   : > { %p3276_p10 = pnand %p2616_p7, %p453_p8  ;;  %s426_s29 = ssub.s32 %s3096_s0, %s4634_s20 }
  0x21   : > { %s4578_s23 = scalar_select %p3272_p9, 1, 0 }
  0x22   : > { %p427_p11 = scmp.eq.s32.totalorder %s426_s29, 0  ;;  %p2793_p12 = pneg %p3276_p10 }
  0x23   : > { %4579 = sst [smem:[#allocation20_spill]] %s4578_s23  ;;  %p3284_p13 = scmp.eq.s32.totalorder %s2614_s18, 0 }
  0x24   : > { %s4582_s4 = sld [smem:[#allocation30_spill]] }
  0x25   : > { %s3292_s22 = scalar_select %p427_p11, %s3080_s26, %s429_s21  }
  0x26   : > { %p2794_p0 = pnand %p3284_p13, %p2793_p12 }
  0x27   : > { %4583 = sst [smem:[#allocation21_spill]] %s3292_s22 }
  0x28   : > { %p2989_p2 = pneg %p2794_p0 }
  0x2a   : > { %s466_s17 = sshll.u32 %s4582_s4, 4  ;;  %s467_s17 = int_to_ptr.vmem [resolvable:$true] %s466_s17 }
  0x2b   : > { %s2987_s23 = scalar_lea.vmem %s467_s17, 128  ;;  %p2995_p6 = scmp.lt.s32.totalorder %s467_s17, %s467_s17 }
  0x2c   : > { %p2988_p1 = scmp.ne.s32.totalorder %s467_s17, %s2987_s23  ;;  %p2996_p7 = scmp.lt.s32.totalorder %s2987_s23, %s2987_s23 }
  0x2e   : > { %p2990_p4 = pnand %p2989_p2, %p2988_p1  ;;  %p2997_p8 = por %p2996_p7, %p2995_p6 }
  0x30   : > { %p2991_p5 = pneg %p2990_p4 }
  0x32   : > { %p2998_p9 = pnand %p2997_p8, %p2991_p5 }
  0x34   : > { %3001 = shalt.err (!%p2998_p9)
}
  0x35   : > { %s3102_s29 = smov [#allocation4]   ;;  %551 = sbr.rel (%p3276_p10) target bundleno = 4207 (0x106f), region = 88 }
  0x36   : > { %2796 = dma.vmem_to_smem (!%p2794_p0), %s467_s17, 128, %s3102_s29, [#allocation6]  }
  0x3c   : > { %3063 = dma.done.wait (%p3284_p13), [#allocation6], 128  }
  0x3d   : > { %3065 = vsyncadd (%p3284_p13), [#allocation6], 4294967168 }
  0x3e   : > { %557 = sfence }
  0x3f   : > { %s4535_s24 = sand.u32 1, %s3076_s25   ;;  %p623_p9 = scmp.lt.s32.totalorder %s3088_s28, 1 }
  0x40   : > { %s3306_s17 = sshll.u32 %s4535_s24, 3  ;;  %p635_p10 = scmp.lt.s32.totalorder %s3084_s27, 7 }
  0x41   : > { %s624_s30 = scalar_select %p623_p9, %s3088_s28, 1 }
  0x42   : > { %s636_s18 = scalar_select %p635_p10, %s3084_s27, 7 }
  0x43   : > { %s2702_s1 = sshll.u32 %s624_s30, 4  ;;  %s2703_s21 = sshll.u32 %s624_s30, 3 }
  0x44   : > { %s4584_s29 = sld [smem:[#allocation28_spill]]  ;;  %s4585_s22 = sld [smem:[#allocation29_spill]] }
  0x45   : > { %s2626_s12 = sshll.u32 %s636_s18, 1  ;;  %s2780_s11 = smul.u32 88, %s636_s18 }
  0x46   : > { %s639_s25 = sadd.s32 %s2702_s1, %s2626_s12  ;;  %p2630_p11 = scmp.ne.s32.totalorder %s3084_s27, 0 }
  0x47   : > { %s2628_s24 = sshll.u32 %s639_s25, 2  ;;  %s3322_s28 = scalar_lea.vmem %s4508_s3, %s2780_s11  ;;  %vm654_vm0 = vcmask (!%p2630_p11), 1045504   ;;  %v3103_v28 = vmov (!%p2630_p11), 0.0  }
  0x48   : > { %s3327_s8 = scalar_lea.vmem %s4507_s2, %s2628_s24  ;;  %651 = sbr.rel (%p2630_p11) target bundleno = 583 (0x247), region = 96  ;;  %708 = vst [vmem:[#allocation3 + $0x10] sm:$0xf] (!%p2630_p11), %v3103_v28  ;;  %709 = vst [vmem:[#allocation3 + $0x18] sm:$0xf] (!%p2630_p11), %v3103_v28 }
  0x4a   : > { %s627_s4 = scalar_lea.vmem %s4584_s29, %s2702_s1  ;;  %s3317_s26 = scalar_lea.vmem %s4585_s22, %s2703_s21 }
  0x4b   : > { %v652_v0 = vld [vmem:[%s627_s4] sm:$0x3f] (!%p2630_p11)  ;;  %v653_v1 = vld [vmem:[%s627_s4 + $0x8] sm:$0x3f] (!%p2630_p11) }
  0x4c   : > { %v655_v2 = vsel (!%p2630_p11), %vm654_vm0, %v652_v0, 0.0  ;;  %v656_v3 = vsel (!%p2630_p11), %vm654_vm0, %v653_v1, 0.0  ;;  %v710_v27 = vld [vmem:[%s3317_s26] sm:$0xff] (!%p2630_p11) }
  0x4d   : > { %v657_v4 = vadd.f32 (!%p2630_p11), %v656_v3, %v655_v2  ;;  %711 = vst [vmem:[#allocation2] sm:$0xff] (!%p2630_p11), %v710_v27 }
  0x4f   : > { %658 = vadd.xlane.f32.xlu0 %v657_v4 }
  0xdc   : > { %v659_v5 = vpop.xlane.xlu0 %658 }
  0xdd   : > { %v660_v6 = vrot.slane %v659_v5, 4 }
  0xdf   : > { %v661_v7 = vadd.f32 %v660_v6, %v659_v5 }
  0xe1   : > { %v662_v8 = vrot.slane %v661_v7, 2 }
  0xe3   : > { %v663_v9 = vadd.f32 %v662_v8, %v661_v7 }
  0xe5   : > { %v664_v10 = vrot.slane %v663_v9, 1 }
  0xe7   : > { %v665_v11 = vadd.f32 %v664_v10, %v663_v9 }
  0xe9   : > { %2781 = vpush %v665_v11 }
 0x11a   : > { %s2782_s9 = spop %2781 }
 0x11b   : > { %s669_s10 = smul.f32 0.0006510417, %s2782_s9 }
 0x11d   : > { %v670_v12 = vstv %s669_s10 }
 0x11e   : > { %v671_v13 = vsub.f32 %v652_v0, %v670_v12  ;;  %v672_v14 = vsub.f32 %v653_v1, %v670_v12 }
 0x120   : > { %v673_v15 = vmul.f32 %v671_v13, %v671_v13  ;;  %v674_v16 = vmul.f32 %v672_v14, %v672_v14 }
 0x122   : > { %v675_v17 = vsel %vm654_vm0, %v673_v15, 0.0  ;;  %v676_v18 = vsel %vm654_vm0, %v674_v16, 0.0 }
 0x123   : > { %v677_v19 = vadd.f32 %v676_v18, %v675_v17 }
 0x125   : > { %678 = vadd.xlane.f32.xlu0 %v677_v19 }
 0x1b2   : > { %v679_v20 = vpop.xlane.xlu0 %678 }
 0x1b3   : > { %v680_v21 = vrot.slane %v679_v20, 4 }
 0x1b5   : > { %v681_v22 = vadd.f32 %v680_v21, %v679_v20 }
 0x1b7   : > { %v682_v23 = vrot.slane %v681_v22, 2 }
 0x1b9   : > { %v683_v24 = vadd.f32 %v682_v23, %v681_v22 }
 0x1bb   : > { %v684_v25 = vrot.slane %v683_v24, 1 }
 0x1bd   : > { %v685_v26 = vadd.f32 %v684_v25, %v683_v24 }
 0x1bf   : > { %2783 = vpush %v685_v26 }
 0x1f0   : > { %s2784_s4 = spop %2783 }
 0x1f1   : > { %s689_s11 = smul.f32 0.0006514658, %s2784_s4 }
 0x1f3   : > { %v690_v29 = vstv %s689_s11 }
 0x1f4   : > { %2887 = vrsqrt.f32 %v690_v29  ;;  %vm693_vm1 = vcmp.eq.f32.partialorder %v690_v29, inf  ;;  %v696_v32 = vand.u32 2147483648, %v690_v29  ;;  %vm695_vm2 = vcmp.eq.f32.partialorder %v690_v29, 0.0 }
 0x1fe   : > { %v2888_v30 = vpop.eup %2887 }
 0x1ff   : > { %v692_v31 = vmul.f32 %v2888_v30, %v690_v29 }
 0x201   : > { %v694_v33 = vsel %vm693_vm1, %v690_v29, %v692_v31 }
 0x202   : > { %v697_v34 = vsel %vm695_vm2, %v696_v32, %v694_v33 }
 0x203   : > { %2785 = vpush %v697_v34 }
 0x234   : > { %s2786_s12 = spop %2785 }
 0x235   : > { %s699_s16 = sadd.f32 1e-08, %s2786_s12 }
 0x237   : > { %v700_v35 = vstv %s699_s16 }
 0x238   : > { %2889 = vrcp.f32 %v700_v35 }
 0x242   : > { %v2890_v36 = vpop.eup %2889 }
 0x243   : > { %v702_v37 = vmul.f32 %v2890_v36, %v671_v13  ;;  %v703_v38 = vmul.f32 %v2890_v36, %v672_v14 }
 0x245   : > { %v704_v39 = vsel %vm654_vm0, %v702_v37, 0.0  ;;  %v705_v40 = vsel %vm654_vm0, %v703_v38, 0.0 }
 0x246   : > { %706 = vst [vmem:[#allocation3] sm:$0xff] %v704_v39  ;;  %707 = vst [vmem:[#allocation3 + $0x8] sm:$0xff] %v705_v40 }
 0x247 PF: > { %vm751_vm3 = vcmask 1043456   ;;  %v742_v47 = vld [vmem:[#allocation3 + $0x10] sm:$0xf]  ;;  %v743_v48 = vld [vmem:[#allocation3 + $0x18] sm:$0xf]  ;;  %s3104_s25 = smov 17   ;;  %v772_v61 = vlaneseq }
 0x248   : > { %v754_v49 = vrot.slane %v742_v47, 4  ;;  %v756_v50 = vrot.slane %v743_v48, 4  ;;  %s3105_s26 = smov 16   ;;  %s3106_s0 = smov 15   ;;  %v3413_v57 = vld [vmem:[%s4510_s5] sm:$0xff]  ;;  %vm995_vm4 = vcmask 130048  }
 0x249   : > { %s3107_s20 = smov 1   ;;  %s3108_s22 = smov 127   ;;  %v2632_v58 = vcombine.high %v3413_v57, %v3413_v57  ;;  %v4540_v59 = vmov 0   ;;  %v712_v60 = vld [vmem:[%s3322_s28] sm:$0xff]  ;;  %v3430_v62 = vshrl.u32 %v772_v61, 7  ;;  %v3432_v63 = vand.u32 127, %v772_v61 }
 0x24a   : > { %s4555_s24 = smov 113   ;;  %s4553_s18 = smov 112   ;;  %2891 = vset.pattern.permute.xlu0 %v4540_v59  ;;  %1161 = vmatprep.mubr.bf16.mxu1 %v4540_v59  ;;  %v3440_v1 = vld [vmem:[%s4518_s13 + $0x8] sm:$0xff]  ;;  %v3445_v2 = vld [vmem:[%s4518_s13] sm:$0xff]  ;;  %vm1119_vm13 = vcmask 588800   ;;  %vm3118_vm14 = vmmov 0  }
 0x24b   : > { %2633 = vmatprep.mubr.msk.bf16.mxu0 %vm995_vm4, %v2632_v58  ;;  %s4551_s19 = smov 111   ;;  %2892 = vset.pattern.permute.xlu1 %v4540_v59  ;;  %v3435_v0 = vsub.s32 0, %v3430_v62  ;;  %vm774_vm5 = vcmp.lt.s32.totalorder %v3432_v63, 17  ;;  %v3465_v13 = vsub.s32 1, %v3430_v62  ;;  %vm799_vm6 = vcmp.lt.s32.totalorder %v3432_v63, 16  ;;  %s3114_s29 = smov 8  }
 0x24c   : > { %v739_v41 = vld [vmem:[#allocation2] sm:$0xff]  ;;  %v3481_v26 = vsub.s32 2, %v3430_v62  ;;  %vm824_vm7 = vcmp.lt.s32.totalorder %v3432_v63, 15  ;;  %vm849_vm8 = vcmp.lt.s32.totalorder %v3432_v63, 1  ;;  %vm874_vm9 = vcmp.lt.s32.totalorder %v3432_v63, 127  ;;  %s3115_s30 = smov 9  }
 0x24d   : > { %v740_v42 = vld [vmem:[#allocation3] sm:$0xff]  ;;  %v741_v43 = vld [vmem:[#allocation3 + $0x8] sm:$0xff]  ;;  %v745_v45 = vcombine.high %v739_v41, %v739_v41  ;;  %v3450_v5 = vrot.slane %v3440_v1, %v3435_v0  ;;  %v3454_v6 = vrot.slane %v3445_v2, %v3435_v0  ;;  %v3474_v22 = vrot.slane %v3445_v2, %v3465_v13  ;;  %s3116_s9 = smov 7   ;;  %s3117_s10 = smov 121  }
 0x24e   : > { %v752_v44 = vrot.slane %v740_v42, 4  ;;  %v753_v46 = vrot.slane %v741_v43, 4  ;;  %v3478_v23 = vrot.slane %v3440_v1, %v3465_v13  ;;  %v3498_v39 = vrot.slane %v3445_v2, %v3481_v26  ;;  %s3119_s4 = smov 119   ;;  %s3120_s11 = smov 120  }
 0x24f   : > { %v3502_v40 = vrot.slane %v3440_v1, %v3481_v26  ;;  %v3505_v43 = vsub.s32 3, %v3430_v62  ;;  %vm899_vm10 = vcmp.lt.s32.totalorder %v3432_v63, 113  ;;  %vm924_vm11 = vcmp.lt.s32.totalorder %v3432_v63, 112  ;;  %s4592_s12 = sld [smem:[#allocation31_spill]]  ;;  %s4593_s21 = sld [smem:[#allocation32_spill]] }
 0x250   : > { %v3339_v51 = vsel %vm751_vm3, %v739_v41, %v752_v44  ;;  %v3342_v52 = vsel %vm751_vm3, %v745_v45, %v753_v46  ;;  %v3349_v53 = vsel %vm751_vm3, %v752_v44, %v754_v49  ;;  %v3352_v54 = vsel %vm751_vm3, %v753_v46, %v756_v50  ;;  %s4600_s16 = smov 112   ;;  %p2696_p12 = scmp.ne.s32.totalorder %s3084_s27, 7 }
 0x251   : > { %764 = vrot.lane.b32.xlu0 %v3339_v51, %s3104_s25  ;;  %768 = vrot.lane.b32.xlu1 %v3342_v52, %s3104_s25  ;;  %v975_v55 = vpack.c.bf16 %v3352_v54, %v3342_v52  ;;  %v974_v56 = vpack.c.bf16 %v3349_v53, %v3339_v51  ;;  %vm949_vm12 = vcmp.lt.s32.totalorder %v3432_v63, 111  ;;  %vm1836_vm15 = vcmask 261120  }
 0x252   : > { %vm2241_vm0 = vcmask 719872  }
 0x255   : > { %766 = vrot.lane.b32.xlu0 %v3349_v53, %s3104_s25  ;;  %770 = vrot.lane.b32.xlu1 %v3352_v54, %s3104_s25 }
 0x259   : > { %791 = vrot.lane.b32.xlu0 %v3339_v51, %s3105_s26  ;;  %793 = vrot.lane.b32.xlu1 %v3349_v53, %s3105_s26 }
 0x25d   : > { %795 = vrot.lane.b32.xlu0 %v3342_v52, %s3105_s26  ;;  %797 = vrot.lane.b32.xlu1 %v3352_v54, %s3105_s26 }
 0x261   : > { %816 = vrot.lane.b32.xlu0 %v3339_v51, %s3106_s0  ;;  %818 = vrot.lane.b32.xlu1 %v3349_v53, %s3106_s0 }
 0x265   : > { %820 = vrot.lane.b32.xlu0 %v3342_v52, %s3106_s0  ;;  %822 = vrot.lane.b32.xlu1 %v3352_v54, %s3106_s0 }
 0x269   : > { %841 = vrot.lane.b32.xlu0 %v3339_v51, %s3107_s20  ;;  %843 = vrot.lane.b32.xlu1 %v3349_v53, %s3107_s20 }
 0x26d   : > { %845 = vrot.lane.b32.xlu0 %v3342_v52, %s3107_s20  ;;  %847 = vrot.lane.b32.xlu1 %v3352_v54, %s3107_s20 }
 0x271   : > { %866 = vrot.lane.b32.xlu0 %v3339_v51, %s3108_s22  ;;  %868 = vrot.lane.b32.xlu1 %v3349_v53, %s3108_s22 }
 0x275   : > { %870 = vrot.lane.b32.xlu0 %v3342_v52, %s3108_s22  ;;  %872 = vrot.lane.b32.xlu1 %v3352_v54, %s3108_s22 }
 0x279   : > { %891 = vrot.lane.b32.xlu0 %v3339_v51, %s4555_s24  ;;  %893 = vrot.lane.b32.xlu1 %v3349_v53, %s4555_s24 }
 0x27d   : > { %895 = vrot.lane.b32.xlu0 %v3342_v52, %s4555_s24  ;;  %897 = vrot.lane.b32.xlu1 %v3352_v54, %s4555_s24 }
 0x281   : > { %916 = vrot.lane.b32.xlu0 %v3339_v51, %s4553_s18  ;;  %918 = vrot.lane.b32.xlu1 %v3349_v53, %s4553_s18 }
 0x285   : > { %920 = vrot.lane.b32.xlu0 %v3342_v52, %s4553_s18  ;;  %922 = vrot.lane.b32.xlu1 %v3352_v54, %s4553_s18 }
 0x289   : > { %941 = vrot.lane.b32.xlu0 %v3339_v51, %s4551_s19  ;;  %943 = vrot.lane.b32.xlu1 %v3349_v53, %s4551_s19  ;;  %v3583_v51 = vsub.s32 6, %v3430_v62 }
 0x28d   : > { %945 = vrot.lane.b32.xlu0 %v3342_v52, %s4551_s19  ;;  %947 = vrot.lane.b32.xlu1 %v3352_v54, %s4551_s19 }
 0x291   : > { %986 = vperm.xlu0 %2891, %v712_v60  }
 0x2c3   : > { %v765_v3 = vpop.permute.xlu0 %764  ;;  %v769_v4 = vpop.permute.xlu1 %768 }
 0x2c4   : > { %v777_v7 = vsel %vm774_vm5, %v769_v4, %v765_v3  ;;  %v775_v8 = vsel %vm774_vm5, %v765_v3, %v769_v4 }
 0x2c5   : > { %v788_v14 = vmul.f32 %v3450_v5, %v775_v8  ;;  %v787_v16 = vmul.f32 %v3454_v6, %v777_v7  ;;  %v3522_v7 = vrot.slane %v3445_v2, %v3505_v43  ;;  %v3526_v8 = vrot.slane %v3440_v1, %v3505_v43 }
 0x2c7   : > { %v767_v9 = vpop.permute.xlu0 %766  ;;  %v771_v10 = vpop.permute.xlu1 %770 }
 0x2c8   : > { %v778_v11 = vsel %vm774_vm5, %v771_v10, %v767_v9  ;;  %v776_v12 = vsel %vm774_vm5, %v767_v9, %v771_v10 }
 0x2c9   : > { %v790_v15 = vmul.f32 %v3450_v5, %v776_v12  ;;  %v789_v17 = vmul.f32 %v3454_v6, %v778_v11  ;;  %v3529_v11 = vsub.s32 4, %v3430_v62 }
 0x2cb   : > { %v792_v18 = vpop.permute.xlu0 %791  ;;  %v794_v19 = vpop.permute.xlu1 %793  ;;  %v967_v20 = vpack.c.bf16 %v790_v15, %v788_v14  ;;  %v966_v21 = vpack.c.bf16 %v789_v17, %v787_v16 }
 0x2cd   : > { %999 = vmatprep.subr.bf16.mxu0 %v967_v20 }
 0x2ce   : > { %1000 = vmatpush1.bf16.msra.mxu0 %v966_v21 }
 0x2cf   : > { %v796_v24 = vpop.permute.xlu0 %795  ;;  %v798_v25 = vpop.permute.xlu1 %797 }
 0x2d0   : > { %v800_v27 = vsel %vm799_vm6, %v792_v18, %v796_v24  ;;  %v802_v28 = vsel %vm799_vm6, %v796_v24, %v792_v18  ;;  %v801_v29 = vsel %vm799_vm6, %v794_v19, %v798_v25  ;;  %v803_v30 = vsel %vm799_vm6, %v798_v25, %v794_v19 }
 0x2d1   : > { %v812_v31 = vmul.f32 %v3474_v22, %v802_v28  ;;  %v813_v32 = vmul.f32 %v3478_v23, %v800_v27  ;;  %v814_v33 = vmul.f32 %v3474_v22, %v803_v30  ;;  %v815_v34 = vmul.f32 %v3478_v23, %v801_v29 }
 0x2d2   : > { %v3546_v28 = vrot.slane %v3445_v2, %v3529_v11  ;;  %v3550_v29 = vrot.slane %v3440_v1, %v3529_v11 }
 0x2d3   : > { %v817_v35 = vpop.permute.xlu0 %816  ;;  %v819_v36 = vpop.permute.xlu1 %818  ;;  %v969_v37 = vpack.c.bf16 %v815_v34, %v813_v32  ;;  %v968_v38 = vpack.c.bf16 %v814_v33, %v812_v31  ;;  %v3556_v32 = vsub.s32 5, %v3430_v62 }
 0x2d5   : > { %1001 = vmatprep.subr.bf16.mxu0 %v969_v37 }
 0x2d6   : > { %1002 = vmatpush1.bf16.msra.mxu0 %v968_v38 }
 0x2d7   : > { %v821_v41 = vpop.permute.xlu0 %820  ;;  %v823_v42 = vpop.permute.xlu1 %822 }
 0x2d8   : > { %v825_v44 = vsel %vm824_vm7, %v817_v35, %v821_v41  ;;  %v827_v45 = vsel %vm824_vm7, %v821_v41, %v817_v35  ;;  %v826_v46 = vsel %vm824_vm7, %v819_v36, %v823_v42  ;;  %v828_v47 = vsel %vm824_vm7, %v823_v42, %v819_v36 }
 0x2d9   : > { %v837_v48 = vmul.f32 %v3498_v39, %v827_v45  ;;  %v838_v49 = vmul.f32 %v3502_v40, %v825_v44  ;;  %v839_v50 = vmul.f32 %v3498_v39, %v828_v47  ;;  %v840_v58 = vmul.f32 %v3502_v40, %v826_v46 }
 0x2da   : > { %v3576_v45 = vrot.slane %v3445_v2, %v3556_v32  ;;  %v3580_v46 = vrot.slane %v3440_v1, %v3556_v32 }
 0x2db   : > { %v842_v60 = vpop.permute.xlu0 %841  ;;  %v844_v61 = vpop.permute.xlu1 %843  ;;  %v971_v3 = vpack.c.bf16 %v840_v58, %v838_v49  ;;  %v970_v4 = vpack.c.bf16 %v839_v50, %v837_v48 }
 0x2dd   : > { %1003 = vmatprep.subr.bf16.mxu0 %v971_v3 }
 0x2de   : > { %1004 = vmatpush1.bf16.msra.mxu0 %v970_v4 }
 0x2df   : > { %v846_v9 = vpop.permute.xlu0 %845  ;;  %v848_v10 = vpop.permute.xlu1 %847 }
 0x2e0   : > { %v850_v12 = vsel %vm849_vm8, %v842_v60, %v846_v9  ;;  %v852_v14 = vsel %vm849_vm8, %v846_v9, %v842_v60  ;;  %v851_v15 = vsel %vm849_vm8, %v844_v61, %v848_v10  ;;  %v853_v16 = vsel %vm849_vm8, %v848_v10, %v844_v61 }
 0x2e1   : > { %v862_v17 = vmul.f32 %v3522_v7, %v852_v14  ;;  %v863_v18 = vmul.f32 %v3526_v8, %v850_v12  ;;  %v864_v19 = vmul.f32 %v3522_v7, %v853_v16  ;;  %v865_v20 = vmul.f32 %v3526_v8, %v851_v15 }
 0x2e2   : > { %v3600_v14 = vrot.slane %v3445_v2, %v3583_v51  ;;  %v3604_v15 = vrot.slane %v3440_v1, %v3583_v51 }
 0x2e3   : > { %v867_v21 = vpop.permute.xlu0 %866  ;;  %v869_v24 = vpop.permute.xlu1 %868  ;;  %v973_v25 = vpack.c.bf16 %v865_v20, %v863_v18  ;;  %v972_v27 = vpack.c.bf16 %v864_v19, %v862_v17  ;;  %v3607_v18 = vsub.s32 7, %v3430_v62 }
 0x2e5   : > { %1005 = vmatprep.subr.bf16.mxu0 %v973_v25 }
 0x2e6   : > { %1006 = vmatpush1.bf16.msra.mxu0 %v972_v27 }
 0x2e7   : > { %v871_v30 = vpop.permute.xlu0 %870  ;;  %v873_v31 = vpop.permute.xlu1 %872  ;;  %1007 = vmatprep.subr.bf16.mxu0 %v975_v55 }
 0x2e8   : > { %v875_v33 = vsel %vm874_vm9, %v867_v21, %v871_v30  ;;  %v877_v34 = vsel %vm874_vm9, %v871_v30, %v867_v21  ;;  %v876_v35 = vsel %vm874_vm9, %v869_v24, %v873_v31  ;;  %v878_v36 = vsel %vm874_vm9, %v873_v31, %v869_v24 }
 0x2e9   : > { %v887_v37 = vmul.f32 %v3546_v28, %v875_v33  ;;  %v888_v52 = vmul.f32 %v3550_v29, %v877_v34  ;;  %v889_v54 = vmul.f32 %v3546_v28, %v876_v35  ;;  %v890_v55 = vmul.f32 %v3550_v29, %v878_v36 }
 0x2ea   : > { %1008 = vmatpush1.bf16.msra.mxu0 %v974_v56  ;;  %v3624_v36 = vrot.slane %v3445_v2, %v3607_v18 }
 0x2eb   : > { %v892_v38 = vpop.permute.xlu0 %891  ;;  %v894_v41 = vpop.permute.xlu1 %893  ;;  %v977_v42 = vpack.c.bf16 %v890_v55, %v888_v52  ;;  %v976_v44 = vpack.c.bf16 %v889_v54, %v887_v37  ;;  %v3628_v37 = vrot.slane %v3440_v1, %v3607_v18 }
 0x2ec   : > { %4586 = vst [vmem:[#allocation22_spill] sm:$0xff] %v3624_v36 }
 0x2ed   : > { %1009 = vmatprep.subr.bf16.mxu0 %v977_v42  ;;  %4587 = vst [vmem:[#allocation23_spill] sm:$0xff] %v3628_v37 }
 0x2ee   : > { %1010 = vmatpush1.bf16.msra.mxu0 %v976_v44 }
 0x2ef   : > { %v896_v47 = vpop.permute.xlu0 %895  ;;  %v898_v48 = vpop.permute.xlu1 %897 }
 0x2f0   : > { %v900_v53 = vsel %vm899_vm10, %v892_v38, %v896_v47  ;;  %v902_v56 = vsel %vm899_vm10, %v896_v47, %v892_v38  ;;  %v901_v49 = vsel %vm899_vm10, %v894_v41, %v898_v48  ;;  %v903_v50 = vsel %vm899_vm10, %v898_v48, %v894_v41 }
 0x2f1   : > { %v912_v58 = vmul.f32 %v3576_v45, %v900_v53  ;;  %v913_v60 = vmul.f32 %v3580_v46, %v902_v56  ;;  %v914_v61 = vmul.f32 %v3576_v45, %v901_v49  ;;  %v915_v3 = vmul.f32 %v3580_v46, %v903_v50 }
 0x2f2   : > { %v2631_v56 = vcombine.low %v3413_v57, %v3413_v57  ;;  %v713_v57 = vld [vmem:[%s3322_s28 + $0x8] sm:$0xff] }
 0x2f3   : > { %v917_v4 = vpop.permute.xlu0 %916  ;;  %v919_v9 = vpop.permute.xlu1 %918  ;;  %v979_v10 = vpack.c.bf16 %v915_v3, %v913_v60  ;;  %v978_v12 = vpack.c.bf16 %v914_v61, %v912_v58 }
 0x2f5   : > { %1011 = vmatprep.subr.bf16.mxu0 %v979_v10 }
 0x2f6   : > { %1012 = vmatpush1.bf16.msra.mxu0 %v978_v12 }
 0x2f7   : > { %v921_v16 = vpop.permute.xlu0 %920  ;;  %v923_v17 = vpop.permute.xlu1 %922 }
 0x2f8   : > { %v925_v19 = vsel %vm924_vm11, %v917_v4, %v921_v16  ;;  %v927_v20 = vsel %vm924_vm11, %v921_v16, %v917_v4  ;;  %v926_v21 = vsel %vm924_vm11, %v919_v9, %v923_v17  ;;  %v928_v24 = vsel %vm924_vm11, %v923_v17, %v919_v9 }
 0x2f9   : > { %v937_v25 = vmul.f32 %v3600_v14, %v925_v19  ;;  %v938_v27 = vmul.f32 %v3604_v15, %v927_v20  ;;  %v939_v30 = vmul.f32 %v3600_v14, %v926_v21  ;;  %v940_v62 = vmul.f32 %v3604_v15, %v928_v24 }
 0x2fb   : > { %v942_v31 = vpop.permute.xlu0 %941  ;;  %v944_v33 = vpop.permute.xlu1 %943  ;;  %v981_v34 = vpack.c.bf16 %v940_v62, %v938_v27  ;;  %v980_v35 = vpack.c.bf16 %v939_v30, %v937_v25 }
 0x2fd   : > { %1013 = vmatprep.subr.bf16.mxu0 %v981_v34 }
 0x2fe   : > { %1014 = vmatpush1.bf16.msra.mxu0 %v980_v35 }
 0x2ff   : > { %v946_v52 = vpop.permute.xlu0 %945  ;;  %v948_v54 = vpop.permute.xlu1 %947 }
 0x300   : > { %v950_v55 = vsel %vm949_vm12, %v942_v31, %v946_v52  ;;  %v952_v38 = vsel %vm949_vm12, %v946_v52, %v942_v31  ;;  %v951_v41 = vsel %vm949_vm12, %v944_v33, %v948_v54  ;;  %v953_v2 = vsel %vm949_vm12, %v948_v54, %v944_v33 }
 0x301   : > { %v962_v42 = vmul.f32 %v3624_v36, %v950_v55  ;;  %v963_v1 = vmul.f32 %v3628_v37, %v952_v38  ;;  %v964_v44 = vmul.f32 %v3624_v36, %v951_v41  ;;  %v965_v47 = vmul.f32 %v3628_v37, %v953_v2 }
 0x303   : > { %v983_v48 = vpack.c.bf16 %v965_v47, %v963_v1  ;;  %v982_v53 = vpack.c.bf16 %v964_v44, %v962_v42 }
 0x305   : > { %1015 = vmatprep.subr.bf16.mxu0 %v983_v48 }
 0x306   : > { %1016 = vmatpush1.bf16.msra.mxu0 %v982_v53 }
 0x309   : > { %1032 = vmatmul.mubr.bf16.vlgmr.msra.gmra.mrb[0].mxu0 %v2631_v56 }
 0x310   : > { %v987_v49 = vpop.permute.xlu0 %986 }
 0x3dc   : > { %v1033_v50 = vpop.f32.mrb[0].mxu0 }
 0x3dd   : > { %v3644_v58 = vadd.f32 %v1033_v50, %v987_v49  ;;  %v1035_v60 = vpop.f32.mrb[1].mxu0 }
 0x3de   : > { %v1037_v61 = vpop.f32.mrb[2].mxu0  ;;  %v1036_v4 = vadd.f32 %v1035_v60, %v987_v49 }
 0x3df   : > { %v1038_v3 = vpop.f32.mrb[3].mxu0  ;;  %1048 = vrot.lane.b32.xlu0 %v3644_v58, %s3105_s26  ;;  %1040 = vrot.lane.b32.xlu1 %v3644_v58, %s3104_s25 }
 0x3e3   : > { %1056 = vrot.lane.b32.xlu0 %v3644_v58, %s3106_s0  ;;  %1042 = vrot.lane.b32.xlu1 %v1036_v4, %s3104_s25 }
 0x3e7   : > { %1064 = vrot.lane.b32.xlu0 %v3644_v58, %s3107_s20  ;;  %1050 = vrot.lane.b32.xlu1 %v1036_v4, %s3105_s26 }
 0x3eb   : > { %1072 = vrot.lane.b32.xlu0 %v3644_v58, %s3108_s22  ;;  %1058 = vrot.lane.b32.xlu1 %v1036_v4, %s3106_s0 }
 0x3ef   : > { %1080 = vrot.lane.b32.xlu0 %v3644_v58, %s4555_s24  ;;  %1066 = vrot.lane.b32.xlu1 %v1036_v4, %s3107_s20 }
 0x3f3   : > { %1088 = vrot.lane.b32.xlu0 %v3644_v58, %s4553_s18  ;;  %1074 = vrot.lane.b32.xlu1 %v1036_v4, %s3108_s22 }
 0x3f7   : > { %1096 = vrot.lane.b32.xlu0 %v3644_v58, %s4551_s19  ;;  %1082 = vrot.lane.b32.xlu1 %v1036_v4, %s4555_s24 }
 0x3fb   : > { %1116 = vperm.xlu0 %2891, %v713_v57   ;;  %1090 = vrot.lane.b32.xlu1 %v1036_v4, %s4553_s18 }
 0x3ff   : > { %1098 = vrot.lane.b32.xlu1 %v1036_v4, %s4551_s19 }
 0x451   : > { %v1049_v9 = vpop.permute.xlu0 %1048  ;;  %v1041_v10 = vpop.permute.xlu1 %1040 }
 0x455   : > { %v1057_v12 = vpop.permute.xlu0 %1056  ;;  %v1043_v16 = vpop.permute.xlu1 %1042 }
 0x456   : > { %v1045_v17 = vsel %vm774_vm5, %v1043_v16, %v1041_v10  ;;  %v1044_v19 = vsel %vm774_vm5, %v1041_v10, %v1043_v16 }
 0x457   : > { %v1047_v27 = vmul.f32 %v1044_v19, %v3450_v5  ;;  %v1046_v62 = vmul.f32 %v1045_v17, %v3454_v6 }
 0x459   : > { %v1065_v20 = vpop.permute.xlu0 %1064  ;;  %v1051_v21 = vpop.permute.xlu1 %1050 }
 0x45a   : > { %v1053_v24 = vsel %vm799_vm6, %v1051_v21, %v1049_v9  ;;  %v1052_v25 = vsel %vm799_vm6, %v1049_v9, %v1051_v21 }
 0x45b   : > { %v1055_v30 = vmul.f32 %v1052_v25, %v3478_v23  ;;  %v1054_v31 = vmul.f32 %v1053_v24, %v3474_v22 }
 0x45d   : > { %v1059_v33 = vpop.permute.xlu1 %1058  ;;  %v1105_v34 = vpack.c.bf16 %v1055_v30, %v1047_v27  ;;  %v1104_v35 = vpack.c.bf16 %v1054_v31, %v1046_v62  ;;  %v1073_v52 = vpop.permute.xlu0 %1072 }
 0x45e   : > { %v1060_v54 = vsel %vm824_vm7, %v1057_v12, %v1059_v33  ;;  %v1061_v55 = vsel %vm824_vm7, %v1059_v33, %v1057_v12 }
 0x45f   : > { %1129 = vmatprep.subr.bf16.mxu1 %v1105_v34  ;;  %v1062_v42 = vmul.f32 %v1061_v55, %v3498_v39  ;;  %v1063_v1 = vmul.f32 %v1060_v54, %v3502_v40 }
 0x460   : > { %1130 = vmatpush1.bf16.msra.mxu1 %v1104_v35 }
 0x461   : > { %v1067_v38 = vpop.permute.xlu1 %1066  ;;  %v1081_v48 = vpop.permute.xlu0 %1080 }
 0x462   : > { %v1068_v41 = vsel %vm849_vm8, %v1065_v20, %v1067_v38  ;;  %v1069_v2 = vsel %vm849_vm8, %v1067_v38, %v1065_v20 }
 0x463   : > { %v1070_v44 = vmul.f32 %v1069_v2, %v3522_v7  ;;  %v1071_v47 = vmul.f32 %v1068_v41, %v3526_v8  ;;  %v724_v41 = vld [vmem:[%s4511_s6] sm:$0xf] }
 0x465   : > { %v1075_v53 = vpop.permute.xlu1 %1074  ;;  %v1107_v56 = vpack.c.bf16 %v1071_v47, %v1063_v1  ;;  %v1106_v49 = vpack.c.bf16 %v1070_v44, %v1062_v42  ;;  %v1089_v12 = vpop.permute.xlu0 %1088 }
 0x466   : > { %v1076_v50 = vsel %vm874_vm9, %v1073_v52, %v1075_v53  ;;  %v1077_v60 = vsel %vm874_vm9, %v1075_v53, %v1073_v52 }
 0x467   : > { %v1078_v61 = vmul.f32 %v1076_v50, %v3546_v28  ;;  %v1079_v3 = vmul.f32 %v1077_v60, %v3550_v29  ;;  %1131 = vmatprep.subr.bf16.mxu1 %v1107_v56 }
 0x468   : > { %1132 = vmatpush1.bf16.msra.mxu1 %v1106_v49 }
 0x469   : > { %v1083_v57 = vpop.permute.xlu1 %1082  ;;  %v1109_v9 = vpack.c.bf16 %v1079_v3, %v1036_v4  ;;  %v1108_v10 = vpack.c.bf16 %v1078_v61, %v3644_v58  ;;  %v1097_v27 = vpop.permute.xlu0 %1096 }
 0x46a   : > { %v1084_v16 = vsel %vm899_vm10, %v1081_v48, %v1083_v57  ;;  %v1085_v17 = vsel %vm899_vm10, %v1083_v57, %v1081_v48 }
 0x46b   : > { %1133 = vmatprep.subr.bf16.mxu1 %v1109_v9  ;;  %v1086_v4 = vmul.f32 %v1084_v16, %v3576_v45  ;;  %v1087_v58 = vmul.f32 %v1085_v17, %v3580_v46  ;;  %v2896_v16 = vld [vmem:[%s4520_s15 + $0x40] sm:$0xff]  }
 0x46c   : > { %1134 = vmatpush1.bf16.msra.mxu1 %v1108_v10  ;;  %v2897_v17 = vld [vmem:[%s4520_s15] sm:$0xff]   ;;  %2705 = vmatprep.subr.bf16.mxu0 %v2896_v16 }
 0x46d   : > { %v1091_v19 = vpop.permute.xlu1 %1090  ;;  %2706 = vmatpush3.bf16.msra.mxu0 %v2897_v17 }
 0x46e   : > { %v1092_v20 = vsel %vm924_vm11, %v1089_v12, %v1091_v19  ;;  %v1093_v21 = vsel %vm924_vm11, %v1091_v19, %v1089_v12  ;;  %v2898_v19 = vld [vmem:[%s4520_s15 + $0x48] sm:$0xff]  }
 0x46f   : > { %v1094_v24 = vmul.f32 %v1092_v20, %v3600_v14  ;;  %v1095_v25 = vmul.f32 %v1093_v21, %v3604_v15  ;;  %v2899_v20 = vld [vmem:[%s4520_s15 + $0x8] sm:$0xff]   ;;  %v714_v21 = vld [vmem:[%s3322_s28 + $0x10] sm:$0xff]  ;;  %2707 = vmatprep.subr.bf16.mxu0 %v2898_v19 }
 0x471   : > { %v1099_v30 = vpop.permute.xlu1 %1098  ;;  %v1111_v62 = vpack.c.bf16 %v1095_v25, %v1087_v58  ;;  %v1110_v31 = vpack.c.bf16 %v1094_v24, %v1086_v4  ;;  %v2900_v4 = vld [vmem:[%s4520_s15 + $0x50] sm:$0xff]   ;;  %2708 = vmatpush3.bf16.msra.mxu0 %v2899_v20  ;;  %v2902_v24 = vld [vmem:[%s4520_s15 + $0x58] sm:$0xff]  }
 0x472   : > { %v1100_v33 = vsel %vm949_vm12, %v1097_v27, %v1099_v30  ;;  %v1101_v34 = vsel %vm949_vm12, %v1099_v30, %v1097_v27  ;;  %v2901_v58 = vld [vmem:[%s4520_s15 + $0x10] sm:$0xff]   ;;  %2709 = vmatprep.subr.bf16.mxu0 %v2900_v4  ;;  %v2903_v25 = vld [vmem:[%s4520_s15 + $0x18] sm:$0xff]   ;;  %v2904_v27 = vld [vmem:[%s4520_s15 + $0x60] sm:$0xff]  }
 0x473   : > { %v1103_v35 = vmul.f32 %v1101_v34, %v3628_v37  ;;  %1135 = vmatprep.subr.bf16.mxu1 %v1111_v62  ;;  %v1102_v52 = vmul.f32 %v1100_v33, %v3624_v36  ;;  %v2905_v30 = vld [vmem:[%s4520_s15 + $0x20] sm:$0xff]   ;;  %v2906_v62 = vld [vmem:[%s4520_s15 + $0x68] sm:$0xff]   ;;  %v2908_v33 = vld [vmem:[%s4520_s15 + $0x70] sm:$0xff]  }
 0x474   : > { %1136 = vmatpush1.bf16.msra.mxu1 %v1110_v31  ;;  %v2907_v31 = vld [vmem:[%s4520_s15 + $0x28] sm:$0xff]  }
 0x475   : > { %v1113_v54 = vpack.c.bf16 %v1103_v35, %v1103_v35  ;;  %v1112_v55 = vpack.c.bf16 %v1102_v52, %v1102_v52  ;;  %2710 = vmatpush3.bf16.msra.mxu0 %v2901_v58 }
 0x476   : > { %2711 = vmatprep.subr.bf16.mxu0 %v2902_v24 }
 0x477   : > { %2634 = vmatprep.subr.msk.bf16.mxu1 %vm751_vm3, %v1113_v54  ;;  %v1124_v38 = vsel %vm751_vm3, %v1112_v55, 0 }
 0x478   : > { %1138 = vmatpush1.bf16.msra.mxu1 %v1124_v38 }
 0x479   : > { %2712 = vmatpush3.bf16.msra.mxu0 %v2903_v25 }
 0x47a   : > { %v1117_v2 = vpop.permute.xlu0 %1116  ;;  %2713 = vmatprep.subr.bf16.mxu0 %v2904_v27 }
 0x47b   : > { %2635 = vmatmul.mubr.msk.bf16.vlgmr.msra.gmra.mrb[0].mxu1 %vm1119_vm13, %v724_v41 }
 0x47c   : > { %1304 = vmatprep.mubr.bf16.mxu1 %v4540_v59 }
 0x47d   : > { %2714 = vmatpush3.bf16.msra.mxu0 %v2905_v30 }
 0x47e   : > { %2715 = vmatprep.subr.bf16.mxu0 %v2906_v62 }
 0x481   : > { %2716 = vmatpush3.bf16.msra.mxu0 %v2907_v31 }
 0x482   : > { %2717 = vmatprep.subr.bf16.mxu0 %v2908_v33 }
 0x54e   : > { %v1163_v42 = vpop.f32.mrb[0].mxu1 }
 0x54f   : > { %v1164_v1 = vadd.f32 %v1163_v42, %v1117_v2  ;;  %v1165_v44 = vpop.f32.mrb[1].mxu1 }
 0x550   : > { %v1166_v47 = vadd.f32 %v1165_v44, %v1117_v2  ;;  %v1167_v48 = vpop.f32.mrb[2].mxu1 }
 0x551   : > { %v2636_v53 = vmul.f32 -1.442695, %v1164_v1  ;;  %v1168_v56 = vpop.f32.mrb[3].mxu1 }
 0x552   : > { %v2637_v49 = vmul.f32 -1.442695, %v1166_v47 }
 0x553   : > { %2946 = vpow2.f32 %v2636_v53 }
 0x554   : > { %2948 = vpow2.f32 %v2637_v49 }
 0x55d   : > { %v2947_v50 = vpop.eup %2946 }
 0x55e   : > { %v2949_v60 = vpop.eup %2948  ;;  %v1176_v61 = vadd.f32 1.0, %v2947_v50 }
 0x55f   : > { %v1177_v3 = vadd.f32 1.0, %v2949_v60 }
 0x560   : > { %2950 = vrcp.f32 %v1176_v61 }
 0x561   : > { %2952 = vrcp.f32 %v1177_v3 }
 0x56a   : > { %v2951_v57 = vpop.eup %2950 }
 0x56b   : > { %v2953_v9 = vpop.eup %2952  ;;  %v3727_v10 = vmul.f32 %v2951_v57, %v1164_v1 }
 0x56c   : > { %v3729_v12 = vmul.f32 %v2953_v9, %v1166_v47 }
 0x56d   : > { %1184 = vrot.lane.b32.xlu1 %v3727_v10, %s3104_s25 }
 0x56e   : > { %1186 = vrot.lane.b32.xlu0 %v3729_v12, %s3104_s25 }
 0x571   : > { %1192 = vrot.lane.b32.xlu1 %v3727_v10, %s3105_s26 }
 0x572   : > { %1194 = vrot.lane.b32.xlu0 %v3729_v12, %s3105_s26 }
 0x575   : > { %1200 = vrot.lane.b32.xlu1 %v3727_v10, %s3106_s0 }
 0x576   : > { %1202 = vrot.lane.b32.xlu0 %v3729_v12, %s3106_s0 }
 0x579   : > { %1208 = vrot.lane.b32.xlu1 %v3727_v10, %s3107_s20 }
 0x57a   : > { %1210 = vrot.lane.b32.xlu0 %v3729_v12, %s3107_s20 }
 0x57d   : > { %1216 = vrot.lane.b32.xlu1 %v3727_v10, %s3108_s22 }
 0x57e   : > { %1218 = vrot.lane.b32.xlu0 %v3729_v12, %s3108_s22 }
 0x581   : > { %1224 = vrot.lane.b32.xlu1 %v3727_v10, %s4555_s24 }
 0x582   : > { %1226 = vrot.lane.b32.xlu0 %v3729_v12, %s4555_s24 }
 0x585   : > { %1232 = vrot.lane.b32.xlu1 %v3727_v10, %s4553_s18 }
 0x586   : > { %1234 = vrot.lane.b32.xlu0 %v3729_v12, %s4553_s18 }
 0x589   : > { %1240 = vrot.lane.b32.xlu1 %v3727_v10, %s4551_s19 }
 0x58a   : > { %1242 = vrot.lane.b32.xlu0 %v3729_v12, %s4551_s19  ;;  %s4602_s19 = sld [smem:[#allocation34_spill]] }
 0x58d   : > { %1260 = vperm.xlu1 %2892, %v714_v21  }
 0x5df   : > { %v1185_v34 = vpop.permute.xlu1 %1184 }
 0x5e0   : > { %v1187_v35 = vpop.permute.xlu0 %1186 }
 0x5e1   : > { %v1188_v52 = vsel %vm774_vm5, %v1185_v34, %v1187_v35  ;;  %v1189_v54 = vsel %vm774_vm5, %v1187_v35, %v1185_v34 }
 0x5e2   : > { %v3812_v42 = vmul.f32 %v1189_v54, %v3454_v6  ;;  %v3815_v1 = vmul.f32 %v1188_v52, %v3450_v5 }
 0x5e3   : > { %v1193_v55 = vpop.permute.xlu1 %1192 }
 0x5e4   : > { %v1195_v38 = vpop.permute.xlu0 %1194 }
 0x5e5   : > { %v1196_v41 = vsel %vm799_vm6, %v1193_v55, %v1195_v38  ;;  %v1197_v2 = vsel %vm799_vm6, %v1195_v38, %v1193_v55 }
 0x5e6   : > { %v3818_v44 = vmul.f32 %v1197_v2, %v3474_v22  ;;  %v3821_v47 = vmul.f32 %v1196_v41, %v3478_v23 }
 0x5e7   : > { %v1201_v48 = vpop.permute.xlu1 %1200 }
 0x5e8   : > { %v1248_v53 = vpack.c.bf16 %v3818_v44, %v3812_v42  ;;  %v1203_v56 = vpop.permute.xlu0 %1202  ;;  %v1249_v49 = vpack.c.bf16 %v3821_v47, %v3815_v1 }
 0x5e9   : > { %v1204_v50 = vsel %vm824_vm7, %v1201_v48, %v1203_v56  ;;  %v1205_v60 = vsel %vm824_vm7, %v1203_v56, %v1201_v48 }
 0x5ea   : > { %1272 = vmatprep.subr.bf16.mxu1 %v1249_v49  ;;  %v3836_v16 = vmul.f32 %v1205_v60, %v3498_v39  ;;  %v3839_v17 = vmul.f32 %v1204_v50, %v3502_v40 }
 0x5eb   : > { %1273 = vmatpush1.bf16.msra.mxu1 %v1248_v53  ;;  %v1209_v61 = vpop.permute.xlu1 %1208 }
 0x5ec   : > { %v1211_v3 = vpop.permute.xlu0 %1210 }
 0x5ed   : > { %v1212_v57 = vsel %vm849_vm8, %v1209_v61, %v1211_v3  ;;  %v1213_v9 = vsel %vm849_vm8, %v1211_v3, %v1209_v61 }
 0x5ee   : > { %v3842_v19 = vmul.f32 %v1213_v9, %v3522_v7  ;;  %v3845_v20 = vmul.f32 %v1212_v57, %v3526_v8 }
 0x5ef   : > { %v1217_v21 = vpop.permute.xlu1 %1216 }
 0x5f0   : > { %v1250_v4 = vpack.c.bf16 %v3842_v19, %v3836_v16  ;;  %v1219_v58 = vpop.permute.xlu0 %1218  ;;  %v1251_v24 = vpack.c.bf16 %v3845_v20, %v3839_v17 }
 0x5f1   : > { %v1220_v25 = vsel %vm874_vm9, %v1217_v21, %v1219_v58  ;;  %v1221_v27 = vsel %vm874_vm9, %v1219_v58, %v1217_v21 }
 0x5f2   : > { %v3856_v30 = vmul.f32 %v1220_v25, %v3546_v28  ;;  %v3859_v62 = vmul.f32 %v1221_v27, %v3550_v29  ;;  %1274 = vmatprep.subr.bf16.mxu1 %v1251_v24  ;;  %v725_v27 = vld [vmem:[%s4512_s7] sm:$0xf] }
 0x5f3   : > { %1275 = vmatpush1.bf16.msra.mxu1 %v1250_v4  ;;  %v1225_v31 = vpop.permute.xlu1 %1224 }
 0x5f4   : > { %v1252_v33 = vpack.c.bf16 %v3856_v30, %v3727_v10  ;;  %v1227_v34 = vpop.permute.xlu0 %1226  ;;  %v1253_v35 = vpack.c.bf16 %v3859_v62, %v3729_v12 }
 0x5f5   : > { %v1228_v52 = vsel %vm899_vm10, %v1225_v31, %v1227_v34  ;;  %v1229_v54 = vsel %vm899_vm10, %v1227_v34, %v1225_v31  ;;  %v2909_v31 = vld [vmem:[%s4520_s15 + $0x30] sm:$0xff]   ;;  %v2911_v34 = vld [vmem:[%s4520_s15 + $0x38] sm:$0xff]  }
 0x5f6   : > { %1276 = vmatprep.subr.bf16.mxu1 %v1253_v35  ;;  %v3874_v48 = vmul.f32 %v1228_v52, %v3576_v45  ;;  %v3877_v53 = vmul.f32 %v1229_v54, %v3580_v46  ;;  %2718 = vmatpush3.bf16.msra.mxu0 %v2909_v31  ;;  %v738_v31 = vld [vmem:[%s4519_s14] sm:$0xff] }
 0x5f7   : > { %1277 = vmatpush1.bf16.msra.mxu1 %v1252_v33  ;;  %v1233_v55 = vpop.permute.xlu1 %1232  ;;  %v2910_v33 = vld [vmem:[%s4520_s15 + $0x78] sm:$0xff]  }
 0x5f8   : > { %v1235_v38 = vpop.permute.xlu0 %1234  ;;  %2719 = vmatprep.subr.bf16.mxu0 %v2910_v33  ;;  %v3933_v33 = vrot.slane %v738_v31, %v3465_v13 }
 0x5f9   : > { %v1236_v41 = vsel %vm924_vm11, %v1233_v55, %v1235_v38  ;;  %v1237_v2 = vsel %vm924_vm11, %v1235_v38, %v1233_v55 }
 0x5fa   : > { %v3880_v56 = vmul.f32 %v1236_v41, %v3600_v14  ;;  %v3883_v49 = vmul.f32 %v1237_v2, %v3604_v15  ;;  %2720 = vmatpush3.bf16.msra.mxu0 %v2911_v34  ;;  %v3936_v34 = vrot.slane %v738_v31, %v3435_v0 }
 0x5fb   : > { %v1241_v50 = vpop.permute.xlu1 %1240 }
 0x5fc   : > { %4588 = vst [vmem:[#allocation24_spill] sm:$0xff] %v3880_v56  ;;  %4589 = vst [vmem:[#allocation25_spill] sm:$0xff] %v3883_v49  ;;  %v1254_v60 = vpack.c.bf16 %v3880_v56, %v3874_v48  ;;  %v1243_v61 = vpop.permute.xlu0 %1242  ;;  %v1255_v3 = vpack.c.bf16 %v3883_v49, %v3877_v53 }
 0x5fd   : > { %v1244_v57 = vsel %vm949_vm12, %v1241_v50, %v1243_v61  ;;  %v1245_v9 = vsel %vm949_vm12, %v1243_v61, %v1241_v50  ;;  %v4548_v61 = vmov 0.0  }
 0x5fe   : > { %v1246_v21 = vmul.f32 %v1244_v57, %v3624_v36  ;;  %v1247_v4 = vmul.f32 %v1245_v9, %v3628_v37  ;;  %1278 = vmatprep.subr.bf16.mxu1 %v1255_v3 }
 0x5ff   : > { %1279 = vmatpush1.bf16.msra.mxu1 %v1254_v60 }
 0x600   : > { %v1256_v58 = vpack.c.bf16 %v1246_v21, %v1246_v21  ;;  %v3895_v24 = vpack.c.bf16 %v1247_v4, %v1247_v4 }
 0x602   : > { %4590 = vst [vmem:[#allocation26_spill] sm:$0xff] %v3895_v24  ;;  %2638 = vmatprep.subr.msk.bf16.mxu1 %vm751_vm3, %v3895_v24  ;;  %v3900_v25 = vsel %vm751_vm3, %v1256_v58, 0  ;;  %v716_v58 = vld [vmem:[%s3322_s28 + $0x20] sm:$0xff] }
 0x603   : > { %4591 = vst [vmem:[#allocation27_spill] sm:$0xff] %v3900_v25  ;;  %1281 = vmatpush1.bf16.msra.mxu1 %v3900_v25 }
 0x604   : > { %2758 = vmatprep.subr.bf16.mxu1 %v4548_v61 }
 0x606   : > { %2639 = vmatmul.mubr.msk.bf16.vlgmr.msra.gmra.mrb[4].mxu1 %vm1119_vm13, %v725_v27  ;;  %v715_v27 = vld [vmem:[%s3322_s28 + $0x18] sm:$0xff] }
 0x607   : > { %2768 = vmatprep.mubr.msk.bf16.mxu1 %vm3118_vm14, %v4548_v61 }
 0x60c   : > { %v1261_v35 = vpop.permute.xlu1 %1260 }
 0x6d9   : > { %v1306_v52 = vpop.f32.mrb[4].mxu1 }
 0x6da   : > { %v1307_v54 = vadd.f32 %v1306_v52, %v1261_v35  ;;  %v1308_v55 = vpop.f32.mrb[5].mxu1 }
 0x6db   : > { %v1309_v38 = vadd.f32 %v1308_v55, %v1261_v35  ;;  %v1310_v41 = vpop.f32.mrb[6].mxu1 }
 0x6dc   : > { %v1311_v2 = vpop.f32.mrb[7].mxu1  ;;  %v1313_v60 = vpack.c.bf16 %v1307_v54, %v1307_v54  ;;  %v3944_v41 = vrot.slane %v738_v31, %v3481_v26 }
 0x6dd   : > { %v1314_v50 = vpack.c.bf16 %v1309_v38, %v1309_v38  ;;  %v3941_v38 = vrot.slane %v738_v31, %v3505_v43 }
 0x6df   : > { %1475 = vmatprep.mubr.bf16.mxu0 %v1314_v50 }
 0x6e0   : > { %1476 = vmatmul.mubr.bf16.vlgmr.msra.gmra.mrb[4].mxu0 %v1313_v60 }
 0x7b3   : > { %v2721_v3 = vpop.f32.mrb[4].mxu0 }
 0x7b4   : > { %v2722_v57 = vpop.f32.mrb[5].mxu0 }
 0x7b5   : > { %v2723_v9 = vadd.f32 %v2722_v57, %v2721_v3  ;;  %v2724_v21 = vpop.f32.mrb[6].mxu0  ;;  %v3949_v3 = vrot.slane %v738_v31, %v3529_v11 }
 0x7b6   : > { %v2725_v4 = vpop.f32.mrb[7].mxu0 }
 0x7b7   : > { %1490 = vrot.lane.b32.xlu1 %v2723_v9, %s3114_s29  ;;  %1483 = vrot.lane.b32.xlu0 %v2723_v9, %s3115_s30  ;;  %v3953_v4 = vrot.slane %v738_v31, %v3556_v32 }
 0x7bb   : > { %1504 = vrot.lane.b32.xlu1 %v2723_v9, %s3107_s20  ;;  %1497 = vrot.lane.b32.xlu0 %v2723_v9, %s3116_s9 }
 0x7bf   : > { %1518 = vrot.lane.b32.xlu1 %v2723_v9, %s3117_s10  ;;  %1511 = vrot.lane.b32.xlu0 %v2723_v9, %s3108_s22 }
 0x7c3   : > { %1532 = vrot.lane.b32.xlu1 %v2723_v9, %s3119_s4  ;;  %1525 = vrot.lane.b32.xlu0 %v2723_v9, %s3120_s11 }
 0x7c7   : > { %1551 = vperm.xlu1 %2892, %v716_v58   ;;  %1546 = vperm.xlu0 %2891, %v715_v27   ;;  %v3957_v58 = vrot.slane %v738_v31, %v3607_v18  ;;  %v3960_v27 = vrot.slane %v738_v31, %v3583_v51 }
 0x829   : > { %v1491_v35 = vpop.permute.xlu1 %1490  ;;  %v1484_v52 = vpop.permute.xlu0 %1483 }
 0x82a   : > { %v1496_v54 = vmul.f32 %v3933_v33, %v1491_v35  ;;  %v1489_v55 = vmul.f32 %v3936_v34, %v1484_v52 }
 0x82c   : > { %v1539_v2 = vpack.c.bf16 %v1496_v54, %v1489_v55 }
 0x82d   : > { %v1505_v50 = vpop.permute.xlu1 %1504  ;;  %v1498_v60 = vpop.permute.xlu0 %1497 }
 0x82e   : > { %v1510_v13 = vmul.f32 %v3941_v38, %v1505_v50  ;;  %v1503_v0 = vmul.f32 %v3944_v41, %v1498_v60  ;;  %2759 = vmatpush3.bf16.msra.mxu1 %v1539_v2 }
 0x82f   : > { %2760 = vmatprep.subr.bf16.mxu1 %v4548_v61 }
 0x830   : > { %v1540_v57 = vpack.c.bf16 %v1510_v13, %v1503_v0 }
 0x831   : > { %v1519_v21 = vpop.permute.xlu1 %1518  ;;  %v1512_v43 = vpop.permute.xlu0 %1511 }
 0x832   : > { %v1517_v26 = vmul.f32 %v3949_v3, %v1512_v43  ;;  %2761 = vmatpush3.bf16.msra.mxu1 %v1540_v57  ;;  %v1524_v54 = vmul.f32 %v3953_v4, %v1519_v21 }
 0x833   : > { %2762 = vmatprep.subr.bf16.mxu1 %v4548_v61 }
 0x834   : > { %v1541_v11 = vpack.c.bf16 %v1517_v26, %v2723_v9  ;;  %v2912_v9 = vld [vmem:[%s4592_s12] sm:$0xff]   ;;  %s4594_s12 = sld [smem:[#allocation33_spill]] }
 0x835   : > { %v1533_v35 = vpop.permute.xlu1 %1532  ;;  %v1526_v52 = vpop.permute.xlu0 %1525 }
 0x836   : > { %v1538_v55 = vmul.f32 %v3957_v58, %v1533_v35  ;;  %v1531_v32 = vmul.f32 %v3960_v27, %v1526_v52  ;;  %2763 = vmatpush3.bf16.msra.mxu1 %v1541_v11 }
 0x837   : > { %2764 = vmatprep.subr.bf16.mxu1 %v4548_v61 }
 0x838   : > { %v1542_v2 = vpack.c.bf16 %v1531_v32, %v1524_v54  ;;  %v1543_v18 = vpack.c.bf16 %v1538_v55, %v1538_v55 }
 0x83a   : > { %2765 = vmatpush3.bf16.msra.mxu1 %v1542_v2  ;;  %v1563_v51 = vsel %vm751_vm3, %v1543_v18, 0 }
 0x83b   : > { %2766 = vmatprep.subr.bf16.mxu1 %v4548_v61 }
 0x83e   : > { %2767 = vmatpush3.bf16.msra.mxu1 %v1563_v51 }
 0x83f   : > { %1699 = vmatprep.subr.bf16.mxu1 %v4540_v59 }
 0x841   : > { %2769 = vmatmul.mubr.msk.bf16.vlgmr.msra.gmra.mrb[8].mxu1 %vm1119_vm13, %v2912_v9 }
 0x846   : > { %v1547_v31 = vpop.permute.xlu0 %1546  ;;  %v1552_v0 = vpop.permute.xlu1 %1551 }
 0x914   : > { %v1599_v50 = vpop.f32.mrb[8].mxu1 }
 0x915   : > { %v1600_v60 = vadd.f32 %v1599_v50, %v1547_v31  ;;  %v2770_v13 = vpop.f32.mrb[9].mxu1  ;;  %v2913_v31 = vld [vmem:[%s4593_s21 + $0x4] ss:$8 sps:$4 sm:$0xff]  }
 0x916   : > { %v1602_v57 = vpop.f32.mrb[10].mxu1  ;;  %2662 = vmatprep.mubr.msk.bf16.mxu1 %vm995_vm4, %v2913_v31  ;;  %v717_v50 = vld [vmem:[%s3322_s28 + $0x28] sm:$0xff] }
 0x917   : > { %v2658_v21 = vmul.f32 -1.442695, %v1600_v60  ;;  %v1603_v43 = vadd.f32 %v1602_v57, %v1552_v0  ;;  %v2771_v26 = vpop.f32.mrb[11].mxu1 }
 0x919   : > { %2954 = vpow2.f32 %v2658_v21  ;;  %v2659_v11 = vmul.f32 -1.442695, %v1603_v43 }
 0x91b   : > { %2956 = vpow2.f32 %v2659_v11 }
 0x923   : > { %v2955_v35 = vpop.eup %2954 }
 0x924   : > { %v1612_v52 = vadd.f32 1.0, %v2955_v35 }
 0x925   : > { %v2957_v54 = vpop.eup %2956 }
 0x926   : > { %2958 = vrcp.f32 %v1612_v52  ;;  %v1613_v55 = vadd.f32 1.0, %v2957_v54 }
 0x928   : > { %2960 = vrcp.f32 %v1613_v55 }
 0x930   : > { %v2959_v32 = vpop.eup %2958 }
 0x931   : > { %v1618_v2 = vmul.f32 %v2959_v32, %v1600_v60  ;;  %v718_v60 = vld [vmem:[%s3322_s28 + $0x30] sm:$0xff] }
 0x932   : > { %v2961_v18 = vpop.eup %2960 }
 0x933   : > { %v1619_v51 = vmul.f32 %v2961_v18, %v1603_v43  ;;  %1620 = vrot.lane.b32.xlu0 %v1618_v2, %s3115_s30 }
 0x935   : > { %1622 = vrot.lane.b32.xlu1 %v1619_v51, %s3115_s30  ;;  %v3976_v9 = vpack.c.bf16 %v1619_v51, %v1618_v2 }
 0x937   : > { %1626 = vrot.lane.b32.xlu0 %v1618_v2, %s3114_s29 }
 0x939   : > { %1628 = vrot.lane.b32.xlu1 %v1619_v51, %s3114_s29 }
 0x93b   : > { %1632 = vrot.lane.b32.xlu0 %v1618_v2, %s3116_s9 }
 0x93d   : > { %1634 = vrot.lane.b32.xlu1 %v1619_v51, %s3116_s9 }
 0x93f   : > { %1638 = vrot.lane.b32.xlu0 %v1618_v2, %s3107_s20 }
 0x941   : > { %1640 = vrot.lane.b32.xlu1 %v1619_v51, %s3107_s20 }
 0x943   : > { %1644 = vrot.lane.b32.xlu0 %v1618_v2, %s3108_s22 }
 0x945   : > { %1646 = vrot.lane.b32.xlu1 %v1619_v51, %s3108_s22 }
 0x947   : > { %1650 = vrot.lane.b32.xlu0 %v1618_v2, %s3117_s10 }
 0x949   : > { %1652 = vrot.lane.b32.xlu1 %v1619_v51, %s3117_s10 }
 0x94b   : > { %1656 = vrot.lane.b32.xlu0 %v1618_v2, %s3120_s11 }
 0x94d   : > { %1658 = vrot.lane.b32.xlu1 %v1619_v51, %s3120_s11 }
 0x94f   : > { %1662 = vrot.lane.b32.xlu0 %v1618_v2, %s3119_s4 }
 0x951   : > { %1664 = vrot.lane.b32.xlu1 %v1619_v51, %s3119_s4 }
 0x953   : > { %1679 = vperm.xlu0 %2891, %v717_v50  }
 0x955   : > { %1684 = vperm.xlu1 %2892, %v718_v60  }
 0x9a5   : > { %v1621_v13 = vpop.permute.xlu0 %1620 }
 0x9a6   : > { %v1624_v57 = vmul.f32 %v1621_v13, %v3936_v34 }
 0x9a7   : > { %v1623_v0 = vpop.permute.xlu1 %1622 }
 0x9a8   : > { %v1625_v21 = vmul.f32 %v1623_v0, %v3936_v34 }
 0x9a9   : > { %v1627_v43 = vpop.permute.xlu0 %1626 }
 0x9aa   : > { %v4000_v26 = vpack.c.bf16 %v1625_v21, %v1624_v57  ;;  %v1630_v35 = vmul.f32 %v1627_v43, %v3933_v33 }
 0x9ab   : > { %v1629_v11 = vpop.permute.xlu1 %1628 }
 0x9ac   : > { %v1631_v52 = vmul.f32 %v1629_v11, %v3933_v33  ;;  %1700 = vmatpush1.bf16.msra.mxu1 %v4000_v26 }
 0x9ad   : > { %v1633_v54 = vpop.permute.xlu0 %1632  ;;  %1701 = vmatprep.subr.bf16.mxu1 %v4540_v59 }
 0x9ae   : > { %v4006_v55 = vpack.c.bf16 %v1631_v52, %v1630_v35  ;;  %v1636_v2 = vmul.f32 %v1633_v54, %v3944_v41 }
 0x9af   : > { %v1635_v32 = vpop.permute.xlu1 %1634 }
 0x9b0   : > { %v1637_v18 = vmul.f32 %v1635_v32, %v3944_v41  ;;  %1702 = vmatpush1.bf16.msra.mxu1 %v4006_v55 }
 0x9b1   : > { %v1639_v51 = vpop.permute.xlu0 %1638  ;;  %1703 = vmatprep.subr.bf16.mxu1 %v4540_v59 }
 0x9b2   : > { %v4012_v31 = vpack.c.bf16 %v1637_v18, %v1636_v2  ;;  %v1642_v60 = vmul.f32 %v1639_v51, %v3941_v38 }
 0x9b3   : > { %v1641_v50 = vpop.permute.xlu1 %1640 }
 0x9b4   : > { %v1643_v13 = vmul.f32 %v1641_v50, %v3941_v38  ;;  %1704 = vmatpush1.bf16.msra.mxu1 %v4012_v31 }
 0x9b5   : > { %v1645_v0 = vpop.permute.xlu0 %1644  ;;  %1705 = vmatprep.subr.bf16.mxu1 %v4540_v59 }
 0x9b6   : > { %v4018_v57 = vpack.c.bf16 %v1643_v13, %v1642_v60  ;;  %v1648_v52 = vmul.f32 %v1645_v0, %v3949_v3 }
 0x9b7   : > { %v1647_v21 = vpop.permute.xlu1 %1646 }
 0x9b8   : > { %1706 = vmatpush1.bf16.msra.mxu1 %v4018_v57  ;;  %v1649_v11 = vmul.f32 %v1647_v21, %v3949_v3 }
 0x9b9   : > { %v1651_v43 = vpop.permute.xlu0 %1650  ;;  %1707 = vmatprep.subr.bf16.mxu1 %v4540_v59 }
 0x9ba   : > { %v4026_v54 = vpack.c.bf16 %v1649_v11, %v1648_v52  ;;  %v1654_v51 = vmul.f32 %v1651_v43, %v3953_v4 }
 0x9bb   : > { %v1653_v35 = vpop.permute.xlu1 %1652 }
 0x9bc   : > { %1708 = vmatpush1.bf16.msra.mxu1 %v3976_v9  ;;  %v1655_v32 = vmul.f32 %v1653_v35, %v3953_v4 }
 0x9bd   : > { %1709 = vmatprep.subr.bf16.mxu1 %v4540_v59  ;;  %v1657_v2 = vpop.permute.xlu0 %1656 }
 0x9be   : > { %v4032_v50 = vpack.c.bf16 %v1655_v32, %v1654_v51  ;;  %v1660_v0 = vmul.f32 %v1657_v2, %v3960_v27  ;;  %v2915_v32 = vld [vmem:[%s4593_s21] ss:$8 sps:$4 sm:$0xff]  }
 0x9bf   : > { %v1659_v18 = vpop.permute.xlu1 %1658 }
 0x9c0   : > { %1710 = vmatpush1.bf16.msra.mxu1 %v4026_v54  ;;  %v1661_v60 = vmul.f32 %v1659_v18, %v3960_v27 }
 0x9c1   : > { %1711 = vmatprep.subr.bf16.mxu1 %v4540_v59  ;;  %v1663_v21 = vpop.permute.xlu0 %1662 }
 0x9c2   : > { %v4038_v11 = vpack.c.bf16 %v1661_v60, %v1660_v0  ;;  %v1666_v35 = vmul.f32 %v1663_v21, %v3957_v58 }
 0x9c3   : > { %v1665_v13 = vpop.permute.xlu1 %1664 }
 0x9c4   : > { %1712 = vmatpush1.bf16.msra.mxu1 %v4032_v50  ;;  %v1667_v43 = vmul.f32 %v1665_v13, %v3957_v58 }
 0x9c5   : > { %1713 = vmatprep.subr.bf16.mxu1 %v4540_v59 }
 0x9c6   : > { %v4044_v52 = vpack.c.bf16 %v1667_v43, %v1666_v35 }
 0x9c8   : > { %1714 = vmatpush1.bf16.msra.mxu1 %v4038_v11 }
 0x9c9   : > { %1715 = vmatprep.subr.bf16.mxu1 %v4540_v59 }
 0x9cc   : > { %1716 = vmatpush1.bf16.msra.mxu1 %v4044_v52 }
 0x9cd   : > { %2772 = vmatprep.subr.bf16.mxu1 %v4548_v61 }
 0x9cf   : > { %1732 = vmatmul.mubr.bf16.vlgmr.msra.gmra.mrb[12].mxu1 %v2915_v32 }
 0x9d0   : > { %2776 = vmatprep.mubr.msk.bf16.mxu1 %vm3118_vm14, %v4548_v61 }
 0x9d2   : > { %v1680_v2 = vpop.permute.xlu0 %1679 }
 0x9d4   : > { %v1685_v13 = vpop.permute.xlu1 %1684 }
 0xaa2   : > { %v1733_v18 = vpop.f32.mrb[12].mxu1 }
 0xaa3   : > { %v1734_v51 = vadd.f32 %v1733_v18, %v1680_v2  ;;  %v1735_v60 = vpop.f32.mrb[13].mxu1 }
 0xaa4   : > { %v1736_v0 = vpop.f32.mrb[14].mxu1 }
 0xaa5   : > { %v2663_v21 = vmul.f32 -1.442695, %v1734_v51  ;;  %v1737_v43 = vadd.f32 %v1736_v0, %v1685_v13  ;;  %v1738_v35 = vpop.f32.mrb[15].mxu1 }
 0xaa7   : > { %2962 = vpow2.f32 %v2663_v21  ;;  %v2664_v59 = vmul.f32 -1.442695, %v1737_v43 }
 0xaa9   : > { %2964 = vpow2.f32 %v2664_v59  ;;  %v2918_v59 = vld [vmem:[%s4594_s12 + $0x4] ss:$12 sps:$4 sm:$0xff]  }
 0xaaa   : > { %1872 = vmatprep.mubr.bf16.mxu0 %v2918_v59 }
 0xab1   : > { %v2963_v25 = vpop.eup %2962 }
 0xab2   : > { %v1746_v24 = vadd.f32 1.0, %v2963_v25 }
 0xab3   : > { %v2965_v37 = vpop.eup %2964 }
 0xab4   : > { %2966 = vrcp.f32 %v1746_v24  ;;  %v1747_v32 = vadd.f32 1.0, %v2965_v37  ;;  %v720_v37 = vld [vmem:[%s3322_s28 + $0x40] sm:$0xff] }
 0xab6   : > { %2968 = vrcp.f32 %v1747_v32 }
 0xabe   : > { %v2967_v36 = vpop.eup %2966 }
 0xabf   : > { %v1752_v61 = vmul.f32 %v2967_v36, %v1734_v51  ;;  %v719_v36 = vld [vmem:[%s3322_s28 + $0x38] sm:$0xff] }
 0xac0   : > { %v2969_v49 = vpop.eup %2968 }
 0xac1   : > { %v1753_v56 = vmul.f32 %v2969_v49, %v1737_v43  ;;  %1754 = vrot.lane.b32.xlu0 %v1752_v61, %s3115_s30 }
 0xac3   : > { %1756 = vrot.lane.b32.xlu1 %v1753_v56, %s3115_s30  ;;  %v1806_v2 = vpack.c.bf16 %v1753_v56, %v1752_v61  ;;  %s4597_s30 = sld [smem:[#allocation36_spill]] }
 0xac5   : > { %1778 = vrot.lane.b32.xlu0 %v1752_v61, %s3108_s22  ;;  %2733 = vmatprep.subr.bf16.mxu0 %v1806_v2 }
 0xac7   : > { %1780 = vrot.lane.b32.xlu1 %v1753_v56, %s3108_s22 }
 0xac9   : > { %1760 = vrot.lane.b32.xlu0 %v1752_v61, %s3114_s29  ;;  %s4598_s1 = smov %s4597_s30 }
 0xacb   : > { %1762 = vrot.lane.b32.xlu1 %v1753_v56, %s3114_s29 }
 0xacd   : > { %1784 = vrot.lane.b32.xlu0 %v1752_v61, %s3117_s10 }
 0xacf   : > { %1786 = vrot.lane.b32.xlu1 %v1753_v56, %s3117_s10 }
 0xad1   : > { %1766 = vrot.lane.b32.xlu0 %v1752_v61, %s3116_s9 }
 0xad3   : > { %1768 = vrot.lane.b32.xlu1 %v1753_v56, %s3116_s9 }
 0xad5   : > { %1790 = vrot.lane.b32.xlu0 %v1752_v61, %s3120_s11 }
 0xad7   : > { %1792 = vrot.lane.b32.xlu1 %v1753_v56, %s3120_s11  ;;  %s4599_s11 = smov 113  }
 0xad9   : > { %1772 = vrot.lane.b32.xlu0 %v1752_v61, %s3107_s20 }
 0xadb   : > { %1774 = vrot.lane.b32.xlu1 %v1753_v56, %s3107_s20 }
 0xadd   : > { %1796 = vrot.lane.b32.xlu0 %v1752_v61, %s3119_s4 }
 0xadf   : > { %1798 = vrot.lane.b32.xlu1 %v1753_v56, %s3119_s4 }
 0xae1   : > { %1813 = vperm.xlu0 %2891, %v719_v36  }
 0xae3   : > { %1818 = vperm.xlu1 %2892, %v720_v37  }
 0xb33   : > { %v1755_v49 = vpop.permute.xlu0 %1754 }
 0xb34   : > { %v1758_v25 = vmul.f32 %v1755_v49, %v3936_v34 }
 0xb35   : > { %v1757_v24 = vpop.permute.xlu1 %1756 }
 0xb36   : > { %v1759_v18 = vmul.f32 %v1757_v24, %v3936_v34 }
 0xb37   : > { %v1779_v51 = vpop.permute.xlu0 %1778 }
 0xb38   : > { %v1802_v60 = vpack.c.bf16 %v1759_v18, %v1758_v25  ;;  %v1782_v0 = vmul.f32 %v1779_v51, %v3949_v3 }
 0xb39   : > { %v1781_v13 = vpop.permute.xlu1 %1780 }
 0xb3a   : > { %v1783_v21 = vmul.f32 %v1781_v13, %v3949_v3  ;;  %2734 = vmatpush3.bf16.msra.mxu0 %v1802_v60 }
 0xb3b   : > { %v1761_v61 = vpop.permute.xlu0 %1760  ;;  %2735 = vmatprep.subr.bf16.mxu0 %v3976_v9 }
 0xb3c   : > { %v1807_v56 = vpack.c.bf16 %v1783_v21, %v1782_v0  ;;  %v1764_v35 = vmul.f32 %v1761_v61, %v3933_v33 }
 0xb3d   : > { %v1763_v43 = vpop.permute.xlu1 %1762 }
 0xb3e   : > { %v1765_v32 = vmul.f32 %v1763_v43, %v3933_v33  ;;  %2736 = vmatpush3.bf16.msra.mxu0 %v4000_v26  ;;  %v2916_v43 = vld [vmem:[%s4594_s12] ss:$12 sps:$4 sm:$0xff]  }
 0xb3f   : > { %v1785_v34 = vpop.permute.xlu0 %1784  ;;  %2737 = vmatprep.subr.bf16.mxu0 %v1807_v56 }
 0xb40   : > { %v1803_v2 = vpack.c.bf16 %v1765_v32, %v1764_v35  ;;  %v1788_v36 = vmul.f32 %v1785_v34, %v3953_v4  ;;  %v2925_v35 = vld [vmem:[%s4598_s1 + $0x14] ss:$8 sps:$4 sm:$0xff]   ;;  %v2928_v32 = vld [vmem:[%s4598_s1 + $0x24] ss:$8 sps:$4 sm:$0xff]   ;;  %v2926_v34 = vld [vmem:[%s4598_s1 + $0x20] ss:$8 sps:$4 sm:$0xff]  }
 0xb41   : > { %v1787_v59 = vpop.permute.xlu1 %1786 }
 0xb42   : > { %v1789_v3 = vmul.f32 %v1787_v59, %v3953_v4  ;;  %2738 = vmatpush3.bf16.msra.mxu0 %v1803_v2  ;;  %v2931_v2 = vld [vmem:[%s4598_s1 + $0x34] ss:$8 sps:$4 sm:$0xff]   ;;  %v2929_v59 = vld [vmem:[%s4598_s1 + $0x30] ss:$8 sps:$4 sm:$0xff]  }
 0xb43   : > { %v1767_v37 = vpop.permute.xlu0 %1766  ;;  %2739 = vmatprep.subr.bf16.mxu0 %v4026_v54 }
 0xb44   : > { %v1808_v9 = vpack.c.bf16 %v1789_v3, %v1788_v36  ;;  %v1770_v24 = vmul.f32 %v1767_v37, %v3944_v41  ;;  %v2934_v36 = vld [vmem:[%s4598_s1 + $0x44] ss:$8 sps:$4 sm:$0xff]   ;;  %v2932_v3 = vld [vmem:[%s4598_s1 + $0x40] ss:$8 sps:$4 sm:$0xff]   ;;  %v2937_v37 = vld [vmem:[%s4598_s1 + $0x54] ss:$8 sps:$4 sm:$0xff]  }
 0xb45   : > { %v1769_v49 = vpop.permute.xlu1 %1768 }
 0xb46   : > { %v1771_v33 = vmul.f32 %v1769_v49, %v3944_v41  ;;  %2740 = vmatpush3.bf16.msra.mxu0 %v4006_v55  ;;  %v2940_v49 = vld [vmem:[%s4598_s1 + $0x64] ss:$8 sps:$4 sm:$0xff]  }
 0xb47   : > { %v1791_v26 = vpop.permute.xlu0 %1790  ;;  %2741 = vmatprep.subr.bf16.mxu0 %v1808_v9  ;;  %v2935_v9 = vld [vmem:[%s4598_s1 + $0x50] ss:$8 sps:$4 sm:$0xff]  }
 0xb48   : > { %v1804_v25 = vpack.c.bf16 %v1771_v33, %v1770_v24  ;;  %v1794_v51 = vmul.f32 %v1791_v26, %v3960_v27  ;;  %v2938_v24 = vld [vmem:[%s4598_s1 + $0x60] ss:$8 sps:$4 sm:$0xff]   ;;  %v2943_v33 = vld [vmem:[%s4598_s1 + $0x74] ss:$8 sps:$4 sm:$0xff]   ;;  %v2941_v26 = vld [vmem:[%s4598_s1 + $0x70] ss:$8 sps:$4 sm:$0xff]  }
 0xb49   : > { %v1793_v18 = vpop.permute.xlu1 %1792 }
 0xb4a   : > { %v1795_v4 = vmul.f32 %v1793_v18, %v3960_v27  ;;  %2742 = vmatpush3.bf16.msra.mxu0 %v1804_v25 }
 0xb4b   : > { %v1773_v60 = vpop.permute.xlu0 %1772  ;;  %2743 = vmatprep.subr.bf16.mxu0 %v4032_v50 }
 0xb4c   : > { %v1809_v54 = vpack.c.bf16 %v1795_v4, %v1794_v51  ;;  %v1776_v0 = vmul.f32 %v1773_v60, %v3941_v38 }
 0xb4d   : > { %v1775_v13 = vpop.permute.xlu1 %1774 }
 0xb4e   : > { %v1777_v41 = vmul.f32 %v1775_v13, %v3941_v38  ;;  %2744 = vmatpush3.bf16.msra.mxu0 %v4012_v31  ;;  %v4595_v38 = vmov 0.0   ;;  %v2919_v31 = vld [vmem:[%s4594_s12 + $0x8] ss:$12 sps:$4 sm:$0xff]  }
 0xb4f   : > { %v1797_v55 = vpop.permute.xlu0 %1796  ;;  %2745 = vmatprep.subr.bf16.mxu0 %v1809_v54 }
 0xb50   : > { %v1805_v21 = vpack.c.bf16 %v1777_v41, %v1776_v0  ;;  %v1800_v56 = vmul.f32 %v1797_v55, %v3957_v58 }
 0xb51   : > { %v1799_v61 = vpop.permute.xlu1 %1798 }
 0xb52   : > { %v1801_v27 = vmul.f32 %v1799_v61, %v3957_v58  ;;  %2746 = vmatpush3.bf16.msra.mxu0 %v1805_v21  ;;  %v4596_v58 = vmov 0  }
 0xb53   : > { %2747 = vmatprep.subr.bf16.mxu0 %v4038_v11  ;;  %v2922_v11 = vld [vmem:[%s4597_s30 + $0x4] ss:$8 sps:$4 sm:$0xff]   ;;  %s4601_s30 = smov 111  }
 0xb54   : > { %v1810_v50 = vpack.c.bf16 %v1801_v27, %v1800_v56 }
 0xb56   : > { %2748 = vmatpush3.bf16.msra.mxu0 %v4018_v57  ;;  %2773 = vmatpush3.bf16.msra.mxu1 %v1810_v50  ;;  %v2920_v57 = vld [vmem:[%s4598_s1] ss:$8 sps:$4 sm:$0xff]  }
 0xb57   : > { %2774 = vmatprep.subr.bf16.mxu1 %v4595_v38  ;;  %2033 = vmatprep.subr.bf16.mxu0 %v2922_v11 }
 0xb59   : > { %1873 = vmatmul.mubr.bf16.vlgmr.msra.gmra.mrb[8].mxu0 %v2916_v43 }
 0xb5a   : > { %2775 = vmatpush3.bf16.msra.mxu1 %v4044_v52  ;;  %2065 = vmatprep.mubr.bf16.mxu0 %v4596_v58  ;;  %v2923_v52 = vld [vmem:[%s4598_s1 + $0x10] ss:$8 sps:$4 sm:$0xff]  }
 0xb5b   : > { %2034 = vmatpush1.bf16.msra.mxu0 %v2920_v57 }
 0xb5c   : > { %2035 = vmatprep.subr.bf16.mxu0 %v2925_v35 }
 0xb5d   : > { %2777 = vmatmul.mubr.msk.bf16.vlgmr.msra.gmra.mrb[16].mxu1 %vm1836_vm15, %v2919_v31 }
 0xb5f   : > { %2036 = vmatpush1.bf16.msra.mxu0 %v2923_v52 }
 0xb60   : > { %2037 = vmatprep.subr.bf16.mxu0 %v2928_v32  ;;  %v1814_v60 = vpop.permute.xlu0 %1813 }
 0xb62   : > { %v1819_v55 = vpop.permute.xlu1 %1818 }
 0xb63   : > { %2038 = vmatpush1.bf16.msra.mxu0 %v2926_v34 }
 0xb64   : > { %2039 = vmatprep.subr.bf16.mxu0 %v2931_v2 }
 0xb67   : > { %2040 = vmatpush1.bf16.msra.mxu0 %v2929_v59 }
 0xb68   : > { %2041 = vmatprep.subr.bf16.mxu0 %v2934_v36 }
 0xb6b   : > { %2042 = vmatpush1.bf16.msra.mxu0 %v2932_v3 }
 0xb6c   : > { %2043 = vmatprep.subr.bf16.mxu0 %v2937_v37 }
 0xb6f   : > { %2044 = vmatpush1.bf16.msra.mxu0 %v2935_v9 }
 0xb70   : > { %2045 = vmatprep.subr.bf16.mxu0 %v2940_v49 }
 0xb73   : > { %2046 = vmatpush1.bf16.msra.mxu0 %v2938_v24 }
 0xb74   : > { %2047 = vmatprep.subr.bf16.mxu0 %v2943_v33  ;;  %v4231_v33 = vld [vmem:[%s4602_s19] sm:$0xff] }
 0xb77   : > { %2048 = vmatpush1.bf16.msra.mxu0 %v2941_v26  ;;  %v2688_v26 = vcombine.high %v4231_v33, %v4231_v33 }
 0xb79   : > { %2690 = vmatprep.mubr.msk.bf16.mxu1 %vm2241_vm0, %v2688_v26 }
 0xc2c   : > { %v2749_v25 = vpop.f32.mrb[8].mxu0 }
 0xc2d   : > { %v2750_v18 = vpop.f32.mrb[9].mxu0 }
 0xc2e   : > { %v2751_v51 = vadd.f32 %v2750_v18, %v2749_v25  ;;  %v2752_v4 = vpop.f32.mrb[10].mxu0  ;;  %v721_v25 = vld [vmem:[%s3322_s28 + $0x48] sm:$0xff] }
 0xc2f   : > { %v2753_v54 = vpop.f32.mrb[11].mxu0 }
 0xc30   : > { %v2754_v13 = vadd.f32 %v2753_v54, %v2752_v4  ;;  %v1875_v0 = vadd.f32 %v2751_v51, %v1814_v60  ;;  %v1915_v41 = vpop.f32.mrb[16].mxu1 }
 0xc31   : > { %v2778_v21 = vpop.f32.mrb[17].mxu1 }
 0xc32   : > { %v1916_v61 = vadd.f32 %v1915_v41, %v1875_v0  ;;  %v1878_v56 = vadd.f32 %v2754_v13, %v1819_v55  ;;  %v1918_v27 = vpop.f32.mrb[18].mxu1 }
 0xc33   : > { %v2779_v50 = vpop.f32.mrb[19].mxu1 }
 0xc34   : > { %v2669_v43 = vmul.f32 -1.442695, %v1916_v61  ;;  %v1919_v38 = vadd.f32 %v1918_v27, %v1878_v56 }
 0xc36   : > { %2970 = vpow2.f32 %v2669_v43  ;;  %v2670_v31 = vmul.f32 -1.442695, %v1919_v38 }
 0xc38   : > { %2972 = vpow2.f32 %v2670_v31 }
 0xc40   : > { %v2971_v11 = vpop.eup %2970 }
 0xc41   : > { %v1928_v57 = vadd.f32 1.0, %v2971_v11 }
 0xc42   : > { %v2973_v35 = vpop.eup %2972 }
 0xc43   : > { %2974 = vrcp.f32 %v1928_v57  ;;  %v1929_v52 = vadd.f32 1.0, %v2973_v35 }
 0xc45   : > { %2976 = vrcp.f32 %v1929_v52 }
 0xc4d   : > { %v2975_v32 = vpop.eup %2974 }
 0xc4e   : > { %v1934_v2 = vmul.f32 %v2975_v32, %v1916_v61 }
 0xc4f   : > { %v2977_v34 = vpop.eup %2976 }
 0xc50   : > { %v1935_v59 = vmul.f32 %v2977_v34, %v1919_v38 }
 0xc52   : > { %v1936_v36 = vpack.c.bf16 %v1935_v59, %v1934_v2 }
 0xc54   : > { %2066 = vmatmul.mubr.bf16.vlgmr.msra.gmra.mrb[12].mxu0 %v1936_v36 }
 0xc55   : > { %2420 = vmatprep.mubr.bf16.mxu0 %v4596_v58 }
 0xd27   : > { %v4156_v3 = vpop.f32.mrb[12].mxu0 }
 0xd28   : > { %2076 = vrot.lane.b32.xlu0 %v4156_v3, %s3104_s25  ;;  %v4160_v37 = vpop.f32.mrb[13].mxu0 }
 0xd29   : > { %2096 = vrot.lane.b32.xlu1 %v4160_v37, %s3105_s26  ;;  %v4164_v9 = vpop.f32.mrb[14].mxu0 }
 0xd2a   : > { %v4166_v49 = vpop.f32.mrb[15].mxu0  ;;  %v2216_v24 = vpack.c.bf16 %v4164_v9, %v4156_v3 }
 0xd2b   : > { %v2217_v58 = vpack.c.bf16 %v4166_v49, %v4160_v37 }
 0xd2c   : > { %2092 = vrot.lane.b32.xlu0 %v4156_v3, %s3105_s26 }
 0xd2d   : > { %2078 = vrot.lane.b32.xlu1 %v4164_v9, %s3104_s25 }
 0xd30   : > { %2108 = vrot.lane.b32.xlu0 %v4156_v3, %s3106_s0 }
 0xd31   : > { %2110 = vrot.lane.b32.xlu1 %v4164_v9, %s3106_s0 }
 0xd34   : > { %2080 = vrot.lane.b32.xlu0 %v4160_v37, %s3104_s25 }
 0xd35   : > { %2082 = vrot.lane.b32.xlu1 %v4166_v49, %s3104_s25 }
 0xd38   : > { %2112 = vrot.lane.b32.xlu0 %v4160_v37, %s3106_s0 }
 0xd39   : > { %2128 = vrot.lane.b32.xlu1 %v4160_v37, %s3107_s20 }
 0xd3c   : > { %2094 = vrot.lane.b32.xlu0 %v4164_v9, %s3105_s26 }
 0xd3d   : > { %2098 = vrot.lane.b32.xlu1 %v4166_v49, %s3105_s26 }
 0xd40   : > { %2124 = vrot.lane.b32.xlu0 %v4156_v3, %s3107_s20 }
 0xd41   : > { %2114 = vrot.lane.b32.xlu1 %v4166_v49, %s3106_s0 }
 0xd44   : > { %2126 = vrot.lane.b32.xlu0 %v4164_v9, %s3107_s20 }
 0xd45   : > { %2144 = vrot.lane.b32.xlu1 %v4160_v37, %s3108_s22 }
 0xd48   : > { %2140 = vrot.lane.b32.xlu0 %v4156_v3, %s3108_s22 }
 0xd49   : > { %2130 = vrot.lane.b32.xlu1 %v4166_v49, %s3107_s20 }
 0xd4c   : > { %2142 = vrot.lane.b32.xlu0 %v4164_v9, %s3108_s22 }
 0xd4d   : > { %2158 = vrot.lane.b32.xlu1 %v4164_v9, %s4599_s11 }
 0xd50   : > { %2156 = vrot.lane.b32.xlu0 %v4156_v3, %s4599_s11 }
 0xd51   : > { %2176 = vrot.lane.b32.xlu1 %v4160_v37, %s4600_s16 }
 0xd54   : > { %2160 = vrot.lane.b32.xlu0 %v4160_v37, %s4599_s11 }
 0xd55   : > { %2146 = vrot.lane.b32.xlu1 %v4166_v49, %s3108_s22 }
 0xd58   : > { %2172 = vrot.lane.b32.xlu0 %v4156_v3, %s4600_s16 }
 0xd59   : > { %2162 = vrot.lane.b32.xlu1 %v4166_v49, %s4599_s11 }
 0xd5c   : > { %2174 = vrot.lane.b32.xlu0 %v4164_v9, %s4600_s16 }
 0xd5d   : > { %2190 = vrot.lane.b32.xlu1 %v4164_v9, %s4601_s30 }
 0xd60   : > { %2188 = vrot.lane.b32.xlu0 %v4156_v3, %s4601_s30 }
 0xd61   : > { %2178 = vrot.lane.b32.xlu1 %v4166_v49, %s4600_s16 }
 0xd64   : > { %2192 = vrot.lane.b32.xlu0 %v4160_v37, %s4601_s30 }
 0xd65   : > { %2194 = vrot.lane.b32.xlu1 %v4166_v49, %s4601_s30 }
 0xd68   : > { %2232 = vperm.xlu0 %2891, %v721_v25  }
 0xd9a   : > { %v2077_v18 = vpop.permute.xlu0 %2076 }
 0xd9b   : > { %v2097_v51 = vpop.permute.xlu1 %2096 }
 0xd9e   : > { %v2093_v4 = vpop.permute.xlu0 %2092 }
 0xd9f   : > { %v2079_v60 = vpop.permute.xlu1 %2078  ;;  %v2100_v0 = vsel %vm799_vm6, %v2093_v4, %v2097_v51  ;;  %v2102_v38 = vsel %vm799_vm6, %v2097_v51, %v2093_v4 }
 0xda0   : > { %v2105_v31 = vmul.f32 %v2100_v0, %v3478_v23  ;;  %v2104_v2 = vmul.f32 %v2102_v38, %v3474_v22 }
 0xda2   : > { %v2109_v54 = vpop.permute.xlu0 %2108  ;;  %v2207_v59 = vpack.c.bf16 %v2105_v31, %v3815_v1  ;;  %v2206_v25 = vpack.c.bf16 %v2104_v2, %v3812_v42 }
 0xda3   : > { %v2111_v13 = vpop.permute.xlu1 %2110 }
 0xda6   : > { %v2081_v41 = vpop.permute.xlu0 %2080 }
 0xda7   : > { %v2084_v55 = vsel %vm774_vm5, %v2077_v18, %v2081_v41  ;;  %v2086_v21 = vsel %vm774_vm5, %v2081_v41, %v2077_v18  ;;  %v2083_v61 = vpop.permute.xlu1 %2082 }
 0xda8   : > { %v2088_v56 = vmul.f32 %v2086_v21, %v3454_v6  ;;  %v2089_v27 = vmul.f32 %v2084_v55, %v3450_v5  ;;  %v2085_v50 = vsel %vm774_vm5, %v2079_v60, %v2083_v61  ;;  %v2087_v43 = vsel %vm774_vm5, %v2083_v61, %v2079_v60 }
 0xda9   : > { %v2090_v11 = vmul.f32 %v2087_v43, %v3454_v6  ;;  %v2091_v57 = vmul.f32 %v2085_v50, %v3450_v5 }
 0xdaa   : > { %v2113_v35 = vpop.permute.xlu0 %2112 }
 0xdab   : > { %v2204_v52 = vpack.c.bf16 %v2090_v11, %v2088_v56  ;;  %v2129_v32 = vpop.permute.xlu1 %2128  ;;  %v2205_v34 = vpack.c.bf16 %v2091_v57, %v2089_v27  ;;  %v2116_v4 = vsel %vm824_vm7, %v2109_v54, %v2113_v35  ;;  %v2118_v60 = vsel %vm824_vm7, %v2113_v35, %v2109_v54 }
 0xdac   : > { %v2120_v56 = vmul.f32 %v2118_v60, %v3498_v39  ;;  %v2121_v27 = vmul.f32 %v2116_v4, %v3502_v40 }
 0xdad   : > { %2245 = vmatprep.subr.bf16.mxu1 %v2205_v34 }
 0xdae   : > { %v2095_v36 = vpop.permute.xlu0 %2094  ;;  %2246 = vmatpush1.bf16.msra.mxu1 %v2204_v52 }
 0xdaf   : > { %2247 = vmatprep.subr.bf16.mxu1 %v2207_v59  ;;  %v2099_v26 = vpop.permute.xlu1 %2098 }
 0xdb0   : > { %v2101_v18 = vsel %vm799_vm6, %v2095_v36, %v2099_v26  ;;  %v2103_v51 = vsel %vm799_vm6, %v2099_v26, %v2095_v36 }
 0xdb1   : > { %v2106_v1 = vmul.f32 %v2103_v51, %v3474_v22  ;;  %v2107_v0 = vmul.f32 %v2101_v18, %v3478_v23 }
 0xdb2   : > { %v2125_v41 = vpop.permute.xlu0 %2124  ;;  %2248 = vmatpush1.bf16.msra.mxu1 %v2206_v25 }
 0xdb3   : > { %v2208_v42 = vpack.c.bf16 %v3818_v44, %v2106_v1  ;;  %v2132_v55 = vsel %vm849_vm8, %v2125_v41, %v2129_v32  ;;  %v2115_v21 = vpop.permute.xlu1 %2114  ;;  %v2209_v61 = vpack.c.bf16 %v3821_v47, %v2107_v0  ;;  %v2134_v43 = vsel %vm849_vm8, %v2129_v32, %v2125_v41 }
 0xdb4   : > { %v2117_v54 = vsel %vm824_vm7, %v2111_v13, %v2115_v21  ;;  %v2119_v50 = vsel %vm824_vm7, %v2115_v21, %v2111_v13  ;;  %v2137_v44 = vmul.f32 %v2132_v55, %v3526_v8  ;;  %v2136_v52 = vmul.f32 %v2134_v43, %v3522_v7 }
 0xdb5   : > { %v2122_v38 = vmul.f32 %v2119_v50, %v3498_v39  ;;  %v2123_v31 = vmul.f32 %v2117_v54, %v3502_v40  ;;  %2249 = vmatprep.subr.bf16.mxu1 %v2209_v61 }
 0xdb6   : > { %v2127_v47 = vpop.permute.xlu0 %2126  ;;  %2250 = vmatpush1.bf16.msra.mxu1 %v2208_v42  ;;  %v2213_v13 = vpack.c.bf16 %v2137_v44, %v3839_v17  ;;  %v2212_v2 = vpack.c.bf16 %v2136_v52, %v3836_v16 }
 0xdb7   : > { %v2210_v11 = vpack.c.bf16 %v2122_v38, %v2120_v56  ;;  %v2145_v57 = vpop.permute.xlu1 %2144  ;;  %v2211_v35 = vpack.c.bf16 %v2123_v31, %v2121_v27 }
 0xdb9   : > { %2251 = vmatprep.subr.bf16.mxu1 %v2211_v35 }
 0xdba   : > { %v2141_v34 = vpop.permute.xlu0 %2140  ;;  %2252 = vmatpush1.bf16.msra.mxu1 %v2210_v11 }
 0xdbb   : > { %2253 = vmatprep.subr.bf16.mxu1 %v2213_v13  ;;  %v2131_v32 = vpop.permute.xlu1 %2130  ;;  %v2150_v18 = vsel %vm874_vm9, %v2145_v57, %v2141_v34  ;;  %v2148_v60 = vsel %vm874_vm9, %v2141_v34, %v2145_v57 }
 0xdbc   : > { %v2133_v59 = vsel %vm849_vm8, %v2127_v47, %v2131_v32  ;;  %v2135_v36 = vsel %vm849_vm8, %v2131_v32, %v2127_v47  ;;  %v2153_v1 = vmul.f32 %v2150_v18, %v3550_v29  ;;  %v2152_v42 = vmul.f32 %v2148_v60, %v3546_v28 }
 0xdbd   : > { %v2138_v26 = vmul.f32 %v2135_v36, %v3522_v7  ;;  %v2139_v25 = vmul.f32 %v2133_v59, %v3526_v8 }
 0xdbe   : > { %v2143_v17 = vpop.permute.xlu0 %2142  ;;  %2254 = vmatpush1.bf16.msra.mxu1 %v2212_v2  ;;  %v2218_v21 = vpack.c.bf16 %v2152_v42, %v3727_v10 }
 0xdbf   : > { %v2214_v51 = vpack.c.bf16 %v3842_v19, %v2138_v26  ;;  %v2159_v4 = vpop.permute.xlu1 %2158  ;;  %v2215_v16 = vpack.c.bf16 %v3845_v20, %v2139_v25  ;;  %v2219_v19 = vpack.c.bf16 %v2153_v1, %v3729_v12  ;;  %v4605_v1 = vld [vmem:[#allocation22_spill] sm:$0xff] }
 0xdc1   : > { %2255 = vmatprep.subr.bf16.mxu1 %v2215_v16  ;;  %v4604_v16 = vld [vmem:[#allocation25_spill] sm:$0xff] }
 0xdc2   : > { %v2157_v0 = vpop.permute.xlu0 %2156  ;;  %2256 = vmatpush1.bf16.msra.mxu1 %v2214_v51 }
 0xdc3   : > { %v2177_v41 = vpop.permute.xlu1 %2176  ;;  %2257 = vmatprep.subr.bf16.mxu1 %v2217_v58 }
 0xdc6   : > { %v2161_v55 = vpop.permute.xlu0 %2160  ;;  %2258 = vmatpush1.bf16.msra.mxu1 %v2216_v24 }
 0xdc7   : > { %v2147_v20 = vpop.permute.xlu1 %2146  ;;  %2259 = vmatprep.subr.bf16.mxu1 %v2219_v19  ;;  %v2164_v49 = vsel %vm899_vm10, %v2157_v0, %v2161_v55  ;;  %v2166_v12 = vsel %vm899_vm10, %v2161_v55, %v2157_v0 }
 0xdc8   : > { %v2149_v61 = vsel %vm874_vm9, %v2143_v17, %v2147_v20  ;;  %v2151_v37 = vsel %vm874_vm9, %v2147_v20, %v2143_v17  ;;  %v2168_v54 = vmul.f32 %v2164_v49, %v3576_v45  ;;  %v2169_v50 = vmul.f32 %v2166_v12, %v3580_v46  ;;  %v4603_v17 = vld [vmem:[#allocation24_spill] sm:$0xff]  ;;  %v4607_v49 = vld [vmem:[#allocation26_spill] sm:$0xff] }
 0xdc9   : > { %v2154_v58 = vmul.f32 %v2149_v61, %v3546_v28  ;;  %v2155_v3 = vmul.f32 %v2151_v37, %v3550_v29  ;;  %v2687_v12 = vcombine.low %v4231_v33, %v4231_v33 }
 0xdca   : > { %v2173_v9 = vpop.permute.xlu0 %2172  ;;  %2260 = vmatpush1.bf16.msra.mxu1 %v2218_v21 }
 0xdcb   : > { %v2220_v10 = vpack.c.bf16 %v3856_v30, %v2154_v58  ;;  %v2182_v24 = vsel %vm924_vm11, %v2177_v41, %v2173_v9  ;;  %v2163_v56 = vpop.permute.xlu1 %2162  ;;  %v2221_v27 = vpack.c.bf16 %v3859_v62, %v2155_v3  ;;  %v2180_v38 = vsel %vm924_vm11, %v2173_v9, %v2177_v41  ;;  %v4606_v41 = vld [vmem:[#allocation23_spill] sm:$0xff] }
 0xdcc   : > { %v2165_v43 = vsel %vm899_vm10, %v2159_v4, %v2163_v56  ;;  %v2167_v44 = vsel %vm899_vm10, %v2163_v56, %v2159_v4  ;;  %v2185_v30 = vmul.f32 %v2182_v24, %v3604_v15  ;;  %v2184_v52 = vmul.f32 %v2180_v38, %v3600_v14  ;;  %v4608_v58 = vld [vmem:[#allocation27_spill] sm:$0xff] }
 0xdcd   : > { %v2170_v31 = vmul.f32 %v2165_v43, %v3576_v45  ;;  %v2171_v47 = vmul.f32 %v2167_v44, %v3580_v46  ;;  %2261 = vmatprep.subr.bf16.mxu1 %v2221_v27 }
 0xdce   : > { %v2175_v62 = vpop.permute.xlu0 %2174  ;;  %2262 = vmatpush1.bf16.msra.mxu1 %v2220_v10  ;;  %v2225_v13 = vpack.c.bf16 %v2185_v30, %v3877_v53  ;;  %v2224_v2 = vpack.c.bf16 %v2184_v52, %v3874_v48 }
 0xdcf   : > { %v2222_v11 = vpack.c.bf16 %v2170_v31, %v2168_v54  ;;  %v2191_v57 = vpop.permute.xlu1 %2190  ;;  %v2223_v35 = vpack.c.bf16 %v2171_v47, %v2169_v50 }
 0xdd1   : > { %2263 = vmatprep.subr.bf16.mxu1 %v2223_v35 }
 0xdd2   : > { %v2189_v34 = vpop.permute.xlu0 %2188  ;;  %2264 = vmatpush1.bf16.msra.mxu1 %v2222_v11 }
 0xdd3   : > { %v2179_v32 = vpop.permute.xlu1 %2178  ;;  %2265 = vmatprep.subr.bf16.mxu1 %v2225_v13 }
 0xdd4   : > { %v2181_v59 = vsel %vm924_vm11, %v2175_v62, %v2179_v32  ;;  %v2183_v36 = vsel %vm924_vm11, %v2179_v32, %v2175_v62 }
 0xdd5   : > { %v2186_v26 = vmul.f32 %v2181_v59, %v3600_v14  ;;  %v2187_v25 = vmul.f32 %v2183_v36, %v3604_v15 }
 0xdd6   : > { %v2193_v18 = vpop.permute.xlu0 %2192  ;;  %2266 = vmatpush1.bf16.msra.mxu1 %v2224_v2 }
 0xdd7   : > { %v2226_v53 = vpack.c.bf16 %v4603_v17, %v2186_v26  ;;  %v2196_v51 = vsel %vm949_vm12, %v2189_v34, %v2193_v18  ;;  %v2198_v48 = vsel %vm949_vm12, %v2193_v18, %v2189_v34  ;;  %v2195_v4 = vpop.permute.xlu1 %2194  ;;  %v2227_v60 = vpack.c.bf16 %v4604_v16, %v2187_v25 }
 0xdd8   : > { %v2200_v0 = vmul.f32 %v2196_v51, %v4605_v1  ;;  %v2201_v42 = vmul.f32 %v2198_v48, %v4606_v41  ;;  %v2197_v19 = vsel %vm949_vm12, %v2191_v57, %v2195_v4  ;;  %v2199_v55 = vsel %vm949_vm12, %v2195_v4, %v2191_v57  ;;  %v722_v57 = vld [vmem:[%s3322_s28 + $0x50] sm:$0xff] }
 0xdd9   : > { %v2202_v20 = vmul.f32 %v2197_v19, %v4605_v1  ;;  %v2203_v21 = vmul.f32 %v2199_v55, %v4606_v41  ;;  %2267 = vmatprep.subr.bf16.mxu1 %v2227_v60 }
 0xdda   : > { %2268 = vmatpush1.bf16.msra.mxu1 %v2226_v53 }
 0xddb   : > { %v2228_v61 = vpack.c.bf16 %v2202_v20, %v2200_v0  ;;  %v2229_v37 = vpack.c.bf16 %v2203_v21, %v2201_v42 }
 0xddd   : > { %2269 = vmatprep.subr.bf16.mxu1 %v2229_v37 }
 0xdde   : > { %2270 = vmatpush1.bf16.msra.mxu1 %v2228_v61 }
 0xddf   : > { %2689 = vmatprep.subr.msk.bf16.mxu1 %vm751_vm3, %v4607_v49 }
 0xde2   : > { %2272 = vmatpush1.bf16.msra.mxu1 %v4608_v58 }
 0xde5   : > { %2278 = vmatmul.mubr.bf16.vlgmr.msra.gmra.mrb[20].mxu1 %v2687_v12 }
 0xde7   : > { %v2233_v3 = vpop.permute.xlu0 %2232 }
 0xeb8   : > { %v2279_v9 = vpop.f32.mrb[20].mxu1 }
 0xeb9   : > { %v2280_v10 = vadd.f32 %v2279_v9, %v2233_v3  ;;  %v2281_v24 = vpop.f32.mrb[21].mxu1 }
 0xeba   : > { %v2282_v56 = vadd.f32 %v2281_v24, %v2233_v3  ;;  %v2283_v27 = vpop.f32.mrb[22].mxu1 }
 0xebb   : > { %v2691_v54 = vmul.f32 -1.442695, %v2280_v10  ;;  %v2284_v50 = vpop.f32.mrb[23].mxu1 }
 0xebc   : > { %v2692_v43 = vmul.f32 -1.442695, %v2282_v56 }
 0xebd   : > { %2978 = vpow2.f32 %v2691_v54 }
 0xebe   : > { %2980 = vpow2.f32 %v2692_v43 }
 0xec7   : > { %v2979_v44 = vpop.eup %2978 }
 0xec8   : > { %v2981_v38 = vpop.eup %2980  ;;  %v2292_v30 = vadd.f32 1.0, %v2979_v44 }
 0xec9   : > { %v2293_v31 = vadd.f32 1.0, %v2981_v38 }
 0xeca   : > { %2982 = vrcp.f32 %v2292_v30 }
 0xecb   : > { %2984 = vrcp.f32 %v2293_v31 }
 0xed4   : > { %v2983_v33 = vpop.eup %2982 }
 0xed5   : > { %v2985_v47 = vpop.eup %2984  ;;  %v4363_v62 = vmul.f32 %v2983_v33, %v2280_v10 }
 0xed6   : > { %v2299_v11 = vmul.f32 %v2985_v47, %v2282_v56 }
 0xed7   : > { %2300 = vrot.lane.b32.xlu1 %v4363_v62, %s3104_s25 }
 0xed8   : > { %2302 = vrot.lane.b32.xlu0 %v2299_v11, %s3104_s25 }
 0xedb   : > { %2308 = vrot.lane.b32.xlu1 %v4363_v62, %s3105_s26 }
 0xedc   : > { %2310 = vrot.lane.b32.xlu0 %v2299_v11, %s3105_s26  ;;  %s4609_s26 = sld [smem:[#allocation35_spill]] }
 0xedf   : > { %2316 = vrot.lane.b32.xlu1 %v4363_v62, %s3106_s0 }
 0xee0   : > { %2318 = vrot.lane.b32.xlu0 %v2299_v11, %s3106_s0  ;;  %s2695_s0 = sshll.u32 %s3084_s27, 7 }
 0xee1   : > { %s2433_s10 = sadd.s32 2, %s2695_s0  ;;  %s2430_s4 = sld [smem:[#allocation4 + %s2695_s0]] }
 0xee2   : > { %s2434_s18 = sld [smem:[#allocation4 + %s2433_s10]] }
 0xee3   : > { %2324 = vrot.lane.b32.xlu1 %v4363_v62, %s3107_s20 }
 0xee4   : > { %2326 = vrot.lane.b32.xlu0 %v2299_v11, %s3107_s20  ;;  %s2435_s20 = sadd.s32 3, %s2695_s0 }
 0xee5   : > { %s2436_s9 = sld [smem:[#allocation4 + %s2435_s20]] }
 0xee7   : > { %2332 = vrot.lane.b32.xlu1 %v4363_v62, %s3108_s22 }
 0xee8   : > { %2334 = vrot.lane.b32.xlu0 %v2299_v11, %s3108_s22  ;;  %s2431_s22 = sadd.s32 1, %s2695_s0 }
 0xee9   : > { %s2432_s24 = sld [smem:[#allocation4 + %s2431_s22]] }
 0xeeb   : > { %2340 = vrot.lane.b32.xlu1 %v4363_v62, %s4599_s11 }
 0xeec   : > { %2342 = vrot.lane.b32.xlu0 %v2299_v11, %s4599_s11  ;;  %s2437_s11 = ssub.f32 0.0, %s2436_s9 }
 0xeef   : > { %2348 = vrot.lane.b32.xlu1 %v4363_v62, %s4600_s16  ;;  %v2447_v63 = vstv %s2432_s24 }
 0xef0   : > { %2350 = vrot.lane.b32.xlu0 %v2299_v11, %s4600_s16 }
 0xef3   : > { %2356 = vrot.lane.b32.xlu1 %v4363_v62, %s4601_s30 }
 0xef4   : > { %2358 = vrot.lane.b32.xlu0 %v2299_v11, %s4601_s30 }
 0xef7   : > { %2376 = vperm.xlu1 %2892, %v722_v57   ;;  %v2438_v57 = vstv %s2437_s11 }
 0xf49   : > { %v2301_v35 = vpop.permute.xlu1 %2300 }
 0xf4a   : > { %v2303_v52 = vpop.permute.xlu0 %2302 }
 0xf4b   : > { %v2304_v13 = vsel %vm774_vm5, %v2301_v35, %v2303_v52  ;;  %v2305_v34 = vsel %vm774_vm5, %v2303_v52, %v2301_v35  ;;  %v2454_v52 = vld [vmem:[%s3327_s8] sm:$0xff]  ;;  %s4610_s8 = scalar_lea.vmem (!%p2696_p12), [#allocation7], %s3306_s17 }
 0xf4c   : > { %v2306_v26 = vmul.f32 %v2305_v34, %v3454_v6  ;;  %v2307_v25 = vmul.f32 %v2304_v13, %v3450_v5  ;;  %v2455_v13 = vstv %s2434_s18 }
 0xf4d   : > { %v2309_v32 = vpop.permute.xlu1 %2308 }
 0xf4e   : > { %v2311_v2 = vpop.permute.xlu0 %2310 }
 0xf4f   : > { %v2312_v59 = vsel %vm799_vm6, %v2309_v32, %v2311_v2  ;;  %v2313_v36 = vsel %vm799_vm6, %v2311_v2, %v2309_v32  ;;  %v2441_v32 = vstv %s2436_s9  ;;  %v2986_v2 = vld [vmem:[#allocation2] sm:$0xff] }
 0xf50   : > { %v2314_v18 = vmul.f32 %v2313_v36, %v3474_v22  ;;  %v2315_v17 = vmul.f32 %v2312_v59, %v3478_v23  ;;  %v2448_v59 = vmul.f32 %v2986_v2, %v2447_v63 }
 0xf51   : > { %v2317_v53 = vpop.permute.xlu1 %2316 }
 0xf52   : > { %v2364_v51 = vpack.c.bf16 %v2314_v18, %v2306_v26  ;;  %v2319_v48 = vpop.permute.xlu0 %2318  ;;  %v2365_v4 = vpack.c.bf16 %v2315_v17, %v2307_v25  ;;  %v2444_v17 = vstv %s2430_s4 }
 0xf53   : > { %v2320_v16 = vsel %vm824_vm7, %v2317_v53, %v2319_v48  ;;  %v2321_v60 = vsel %vm824_vm7, %v2319_v48, %v2317_v53  ;;  %v2456_v53 = vmul.f32 %v2455_v13, %v2454_v52 }
 0xf54   : > { %2388 = vmatprep.subr.bf16.mxu0 %v2365_v4  ;;  %v2322_v23 = vmul.f32 %v2321_v60, %v3498_v39  ;;  %v2323_v42 = vmul.f32 %v2320_v16, %v3502_v40  ;;  %v2450_v16 = vcombine.high %v2448_v59, %v2448_v59 }
 0xf55   : > { %2389 = vmatpush1.bf16.msra.mxu0 %v2364_v51  ;;  %v2325_v0 = vpop.permute.xlu1 %2324 }
 0xf56   : > { %v2327_v6 = vpop.permute.xlu0 %2326 }
 0xf57   : > { %v2328_v5 = vsel %vm849_vm8, %v2325_v0, %v2327_v6  ;;  %v2329_v22 = vsel %vm849_vm8, %v2327_v6, %v2325_v0  ;;  %v2458_v6 = vcombine.high %v2456_v53, %v2456_v53 }
 0xf58   : > { %v2330_v19 = vmul.f32 %v2329_v22, %v3522_v7  ;;  %v2331_v55 = vmul.f32 %v2328_v5, %v3526_v8 }
 0xf59   : > { %v2333_v20 = vpop.permute.xlu1 %2332 }
 0xf5a   : > { %v2366_v21 = vpack.c.bf16 %v2330_v19, %v2322_v23  ;;  %v2335_v61 = vpop.permute.xlu0 %2334  ;;  %v2367_v37 = vpack.c.bf16 %v2331_v55, %v2323_v42 }
 0xf5b   : > { %v2336_v49 = vsel %vm874_vm9, %v2333_v20, %v2335_v61  ;;  %v2337_v12 = vsel %vm874_vm9, %v2335_v61, %v2333_v20 }
 0xf5c   : > { %v2338_v58 = vmul.f32 %v2336_v49, %v3546_v28  ;;  %v2339_v39 = vmul.f32 %v2337_v12, %v3550_v29  ;;  %2390 = vmatprep.subr.bf16.mxu0 %v2367_v37 }
 0xf5d   : > { %2391 = vmatpush1.bf16.msra.mxu0 %v2366_v21  ;;  %v2341_v40 = vpop.permute.xlu1 %2340 }
 0xf5e   : > { %v2368_v7 = vpack.c.bf16 %v2338_v58, %v4363_v62  ;;  %v2343_v8 = vpop.permute.xlu0 %2342  ;;  %v2369_v3 = vpack.c.bf16 %v2339_v39, %v2299_v11  ;;  %v735_v11 = vld [vmem:[%s4609_s26] sm:$0x3] }
 0xf5f   : > { %v2344_v9 = vsel %vm899_vm10, %v2341_v40, %v2343_v8  ;;  %v2345_v10 = vsel %vm899_vm10, %v2343_v8, %v2341_v40 }
 0xf60   : > { %2392 = vmatprep.subr.bf16.mxu0 %v2369_v3  ;;  %v2346_v27 = vmul.f32 %v2344_v9, %v3576_v45  ;;  %v2347_v54 = vmul.f32 %v2345_v10, %v3580_v46 }
 0xf61   : > { %2393 = vmatpush1.bf16.msra.mxu0 %v2368_v7  ;;  %v2349_v24 = vpop.permute.xlu1 %2348 }
 0xf62   : > { %v2351_v56 = vpop.permute.xlu0 %2350 }
 0xf63   : > { %v2352_v28 = vsel %vm924_vm11, %v2349_v24, %v2351_v56  ;;  %v2353_v29 = vsel %vm924_vm11, %v2351_v56, %v2349_v24 }
 0xf64   : > { %v2354_v50 = vmul.f32 %v2352_v28, %v3600_v14  ;;  %v2355_v43 = vmul.f32 %v2353_v29, %v3604_v15 }
 0xf65   : > { %v2357_v44 = vpop.permute.xlu1 %2356 }
 0xf66   : > { %v2370_v38 = vpack.c.bf16 %v2354_v50, %v2346_v27  ;;  %v2359_v30 = vpop.permute.xlu0 %2358  ;;  %v2371_v31 = vpack.c.bf16 %v2355_v43, %v2347_v54 }
 0xf67   : > { %v2360_v33 = vsel %vm949_vm12, %v2357_v44, %v2359_v30  ;;  %v2361_v47 = vsel %vm949_vm12, %v2359_v30, %v2357_v44 }
 0xf68   : > { %v2362_v62 = vmul.f32 %v2360_v33, %v4605_v1  ;;  %v2363_v45 = vmul.f32 %v2361_v47, %v4606_v41  ;;  %2394 = vmatprep.subr.bf16.mxu0 %v2371_v31 }
 0xf69   : > { %2395 = vmatpush1.bf16.msra.mxu0 %v2370_v38 }
 0xf6a   : > { %v2372_v46 = vpack.c.bf16 %v2362_v62, %v2362_v62  ;;  %v2373_v14 = vpack.c.bf16 %v2363_v45, %v2363_v45 }
 0xf6c   : > { %2693 = vmatprep.subr.msk.bf16.mxu0 %vm751_vm3, %v2373_v14  ;;  %v2383_v15 = vsel %vm751_vm3, %v2372_v46, 0 }
 0xf6d   : > { %2397 = vmatpush1.bf16.msra.mxu0 %v2383_v15 }
 0xf70   : > { %2694 = vmatmul.mubr.msk.bf16.vlgmr.msra.gmra.mrb[16].mxu0 %vm1119_vm13, %v735_v11 }
 0xf76   : > { %v2377_v1 = vpop.permute.xlu1 %2376 }
0x1043   : > { %v2422_v41 = vpop.f32.mrb[16].mxu0 }
0x1044   : > { %v2423_v35 = vadd.f32 %v2422_v41, %v2377_v1  ;;  %v2424_v34 = vpop.f32.mrb[17].mxu0 }
0x1045   : > { %v2425_v36 = vadd.f32 %v2424_v34, %v2377_v1  ;;  %v2426_v26 = vpop.f32.mrb[18].mxu0 }
0x1046   : > { %v2439_v25 = vmax.f32 %v2438_v57, %v2423_v35  ;;  %v2427_v18 = vpop.f32.mrb[19].mxu0 }
0x1047   : > { %v2440_v51 = vmax.f32 %v2438_v57, %v2425_v36 }
0x1048   : > { %v2442_v48 = vmin.f32 %v2441_v32, %v2439_v25 }
0x1049   : > { %v2443_v4 = vmin.f32 %v2441_v32, %v2440_v51 }
0x104a   : > { %v2445_v60 = vmul.f32 %v2444_v17, %v2442_v48 }
0x104b   : > { %v2446_v0 = vmul.f32 %v2444_v17, %v2443_v4 }
0x104c   : > { %v2452_v5 = vadd.f32 %v2448_v59, %v2445_v60 }
0x104d   : > { %v2453_v22 = vadd.f32 %v2450_v16, %v2446_v0  ;;  %2470 = sbr.rel (%p2696_p12) target bundleno = 4180 (0x1054), region = 100 }
0x104e   : > { %v2460_v23 = vadd.f32 %v2456_v53, %v2452_v5 }
0x104f   : > { %v2461_v42 = vadd.f32 %v2458_v6, %v2453_v22 }
0x1051   : > { %v2464_v19 = vcombine.low %v2460_v23, %v2461_v42 }
0x1053   : > { %2466 = vst [vmem:[#allocation2] sm:$0xff] %v2464_v19  ;;  %2471 = vst [vmem:[%s4610_s8] sm:$0xff] (!%p2696_p12), %v2464_v19 }
0x1054 PF: > { %s4611_s16 = sld [smem:[#allocation13_spill]]  ;;  %s4614_s25 = sld [smem:[#allocation37_spill]] }
0x1055   : > { %s4612_s30 = sld [smem:[#allocation11_spill]]  ;;  %s4616_s0 = scalar_lea.vmem [#allocation7], %s3306_s17 }
0x1056   : > { %s2487_s22 = sshll.u32 %s4616_s0, 4  ;;  %s3121_s24 = smov [#allocation7]   ;;  %s2488_s22 = int_to_ptr.vmem [resolvable:$true] %s2487_s22 }
0x1057   : > { %s3002_s10 = scalar_lea.vmem %s2488_s22, 128  ;;  %s3006_s18 = sshll.u32 %s3121_s24, 4  ;;  %s3007_s18 = int_to_ptr.vmem [resolvable:$false] %s3006_s18 }
0x1058   : > { %p3003_p13 = scmp.ne.s32.totalorder %s2488_s22, %s3002_s10  ;;  %s3008_s4 = scalar_lea.vmem %s3007_s18, 256 }
0x1059   : > { %p3009_p2 = scmp.lt.s32.totalorder %s2488_s22, %s3007_s18  ;;  %p3010_p4 = scmp.lt.s32.totalorder %s3008_s4, %s3002_s10 }
0x105a   : > { %s2704_s23 = sshll.u32 %s4611_s16, 7  ;;  %s4615_s20 = smov %s4614_s25 }
0x105b   : > { %s4454_s26 = scalar_lea.hbm %s4614_s25, %s2704_s23  ;;  %s4617_s9 = sand.u32 1, %s4612_s30  }
0x105c   : > { %s2473_s27 = scalar_lea.sflag [#allocation5], %s4617_s9  ;;  %p3004_p0 = pnand %p3003_p13, %p3262_p3 }
0x105d   : > { %p3011_p5 = por %p3010_p4, %p3009_p2 }
0x105e   : > { %p3005_p1 = pneg %p3004_p0 }
0x1060   : > { %p3012_p6 = pnand %p3011_p5, %p3005_p1 }
0x1062   : > { %3015 = shalt.err (!%p3012_p6)
}
0x1063   : > { %s3016_s17 = scalar_lea.hbm %s4454_s26, 128  ;;  %s3020_s16 = scalar_lea.hbm %s4615_s20, 256 }
0x1064   : > { %p3017_p7 = scmp.ne.s32.totalorder %s4454_s26, %s3016_s17  ;;  %p3021_p10 = scmp.lt.u32.totalorder %s4454_s26, %s4615_s20 }
0x1065   : > { %p3022_p11 = scmp.lt.u32.totalorder %s3020_s16, %s3016_s17  ;;  %p3024_p13 = scmp.lt.u32.totalorder %s3016_s17, %s4454_s26 }
0x1066   : > { %p3018_p8 = pnand %p3017_p7, %p3262_p3 }
0x1067   : > { %p3023_p12 = por %p3022_p11, %p3021_p10 }
0x1068   : > { %p3019_p9 = pneg %p3018_p8 }
0x1069   : > { %p3025_p0 = por %p3024_p13, %p3023_p12 }
0x106b   : > { %p3026_p1 = pnand %p3025_p0, %p3019_p9 }
0x106d   : > { %3029 = shalt.err (!%p3026_p1)
}
0x106e   : > { %2791 = dma.vmem_to_hbm [thread:$0]  (%p3262_p3), %s2488_s22, 128, %s4454_s26, %s2473_s27  }
0x106f PF: > { %s4618_s19 = sld [smem:[#allocation16_spill]]  ;;  %s4619_s28 = sld [smem:[#allocation10_spill]] }
0x1070   : > { %s4620_s25 = sld [smem:[#allocation20_spill]] }
0x1075   : > { %p2803_p2 = scmp.ge.s32.totalorder %s4618_s19, 2  ;;  %s2499_s0 = sand.u32 1, %s4619_s28  }
0x1076   : > { %p4621_p4 = scmp.ne.s32.totalorder %s4620_s25, 0  ;;  %s2500_s9 = scalar_lea.sflag [#allocation5], %s2499_s0 }
0x1078   : > { %p2798_p5 = pnand %p2803_p2, %p4621_p4 }
0x107a   : > { %3067 = dma.done.wait (!%p2798_p5), %s2500_s9, 128  }
0x107b   : > { %3069 = vsyncadd (!%p2798_p5), %s2500_s9, 4294967168  ;;  %s31_s30 = sadd.s32 1, %s4618_s19   ;;  %s4622_s24 = sld [smem:[#allocation11_spill]] }
0x107c   : > { %p28_p6 = scmp.ge.s32.totalorder %s31_s30, 18   ;;  %s4623_s25 = sld [smem:[#allocation12_spill]] }
0x107d   : > { %s4624_s26 = sld [smem:[#allocation21_spill]]  ;;  %s4625_s27 = sld [smem:[#allocation14_spill]] }
0x107e   : > { %s4626_s28 = sld [smem:[#allocation15_spill]]  ;;  %s4627_s29 = sld [smem:[#allocation17_spill]] }
0x107f   : > { %s4628_s0 = sld [smem:[#allocation19_spill]]  ;;  %30 = sbr.rel (!%p28_p6) target bundleno = 17 (0x11), region = 145 }
0x1086   :  { %2505 = vsyncpa [#allocation5], 1 }
0x1087   :  { %2507 = vsyncpa [#allocation5 + $0x1], 1 }
0x1088   :  { %2508 = vsyncpa [#allocation6], 1 }
0x1089   :  { %2510 = vsyncpa [#allocation6 + $0x1], 1 }

</bundles_post_ra>
